<compile_context>
chip_gen: v7x
topology: tpu7x:2x2x1
jax: 0.10.0
libtpu: 0.0.40
codegen_flags: <defaults>
</compile_context>

<pallas_src>
import jax
import jax.numpy as jnp
from jax.experimental import pallas as pl
from jax.experimental.pallas import tpu as pltpu

_HIDDEN = 1024


def _round_up(x, m):
    return pl.cdiv(x, m) * m


def _mlp_kernel(x_ref, w1_ref, b1_ref, w2_ref, b2_ref, w3_ref, b3_ref, o_ref):
    """(tm, D) bf16 -> (tm, bit_padded) f32."""
    # Layer 1: Linear + ReLU.  bf16 operands, f32 accumulation on the MXU.
    h1 = jnp.dot(x_ref[...], w1_ref[...], preferred_element_type=jnp.float32)
    h1 = jnp.maximum(h1 + b1_ref[...], 0.0).astype(jnp.bfloat16)

    # Layer 2: Linear + ReLU.
    h2 = jnp.dot(h1, w2_ref[...], preferred_element_type=jnp.float32)
    h2 = jnp.maximum(h2 + b2_ref[...], 0.0).astype(jnp.bfloat16)

    # Dropout(0.3): identity in eval mode.

    # Layer 3: Linear + Tanh (output is lane-padded to a multiple of 128).
    h3 = jnp.dot(h2, w3_ref[...], preferred_element_type=jnp.float32)
    o_ref[...] = jnp.tanh(h3 + b3_ref[...]).astype(o_ref.dtype)


def surrogate_text_forward(x, w1, b1, w2, b2, w3, b3, *, tm=256):
    """x: (B, input_dim) f32 -> (B, bit) f32."""
    B, D = x.shape
    H = w1.shape[1]
    bit = w3.shape[1]

    # Adaptive batch tile: large enough to fill MXU rows on big batches,
    # shrunk (multiple of 8 sublanes) for tiny batches so padding stays small.
    tm_eff = int(min(tm, _round_up(B, 8)))
    Bp = int(_round_up(B, tm_eff))
    bitp = int(_round_up(bit, 128))  # lane-dense output stores

    # Pad batch rows / output lanes outside the kernel; padded region is sliced off.
    x_p = x if Bp == B else jnp.pad(x, ((0, Bp - B), (0, 0)))
    if bitp == bit:
        w3_p, b3_p = w3, b3
    else:
        w3_p = jnp.pad(w3, ((0, 0), (0, bitp - bit)))
        b3_p = jnp.pad(b3.reshape(1, bit), ((0, 0), (0, bitp - bit)))

    # bf16 MXU operands; biases / epilogue math stay in f32.
    x_bf = x_p.astype(jnp.bfloat16)
    w1_bf = w1.astype(jnp.bfloat16)
    w2_bf = w2.astype(jnp.bfloat16)
    w3_bf = w3_p.astype(jnp.bfloat16)
    b1_f = b1.reshape(1, H).astype(jnp.float32)
    b2_f = b2.reshape(1, H).astype(jnp.float32)
    b3_f = b3_p.reshape(1, bitp).astype(jnp.float32)

    # VMEM budget: resident weights (double-buffered by default), IO tiles, activations.
    est = (
        2 * 2 * (D * H + H * H + H * bitp)            # bf16 weights  x2 buffers
        + 2 * 4 * (2 * H + bitp)                      # f32 biases    x2 buffers
        + 2 * (tm_eff * D * 2 + tm_eff * bitp * 4)    # x / out tiles x2 buffers
        + 4 * tm_eff * H * 4                          # h1/h2 f32 + bf16 copies
    )
    vmem_limit = int(min(64 << 20, max(16 << 20, est + (12 << 20))))

    grid_spec = pltpu.PrefetchScalarGridSpec(
        num_scalar_prefetch=0,
        grid=(Bp // tm_eff,),
        in_specs=[
            pl.BlockSpec((tm_eff, D), lambda i: (i, 0)),   # x  : tiled over batch
            pl.BlockSpec((D, H), lambda i: (0, 0)),        # W1 : resident
            pl.BlockSpec((1, H), lambda i: (0, 0)),        # b1
            pl.BlockSpec((H, H), lambda i: (0, 0)),        # W2 : resident
            pl.BlockSpec((1, H), lambda i: (0, 0)),        # b2
            pl.BlockSpec((H, bitp), lambda i: (0, 0)),     # W3 : resident (padded)
            pl.BlockSpec((1, bitp), lambda i: (0, 0)),     # b3
        ],
        out_specs=pl.BlockSpec((tm_eff, bitp), lambda i: (i, 0)),
    )

    out = pl.pallas_call(
        _mlp_kernel,
        out_shape=jax.ShapeDtypeStruct((Bp, bitp), jnp.float32),
        grid_spec=grid_spec,
        compiler_params=pltpu.CompilerParams(
            dimension_semantics=("parallel",),
            vmem_limit_bytes=vmem_limit,
        ),
    )(x_bf, w1_bf, b1_f, w2_bf, b2_f, w3_bf, b3_f)

    return out[:B, :bit]


def init_params(key, input_dim, bit, hidden=_HIDDEN):
    """Deterministic init mimicking PyTorch Linear default U(-1/sqrt(in), 1/sqrt(in))."""
    ks = jax.random.split(key, 6)

    def lin(kw, kb, fan_in, fan_out):
        bound = 1.0 / jnp.sqrt(fan_in)
        w = jax.random.uniform(kw, (fan_in, fan_out), jnp.float32, -bound, bound)
        b = jax.random.uniform(kb, (1, fan_out), jnp.float32, -bound, bound)
        return w, b

    w1, b1 = lin(ks[0], ks[1], input_dim, hidden)
    w2, b2 = lin(ks[2], ks[3], hidden, hidden)
    w3, b3 = lin(ks[4], ks[5], hidden, bit)
    return w1, b1, w2, b2, w3, b3


def _reference(x, w1, b1, w2, b2, w3, b3):
    """Pure-JAX reference mirroring the kernel's bf16-operand / f32-accumulate precision."""
    bf = jnp.bfloat16
    h = jnp.dot(x.astype(bf), w1.astype(bf), preferred_element_type=jnp.float32)
    h = jnp.maximum(h + b1, 0.0)
    h = jnp.dot(h.astype(bf), w2.astype(bf), preferred_element_type=jnp.float32)
    h = jnp.maximum(h + b2, 0.0)
    h = jnp.dot(h.astype(bf), w3.astype(bf), preferred_element_type=jnp.float32)
    return jnp.tanh(h + b3)


if __name__ == "__main__":
    input_dim = 32
    bit = 64
    batch = 16

    key = jax.random.PRNGKey(0)
    kx, kp = jax.random.split(key)
    x = jax.random.normal(kx, (batch, input_dim), jnp.float32)
    params = init_params(kp, input_dim, bit)

    out = surrogate_text_forward(x, *params)
    out = jax.block_until_ready(out)

    ref = _reference(x, *params)
    assert out.shape == (batch, bit)
    assert jnp.allclose(out, ref, atol=5e-3, rtol=5e-3), "mismatch vs pure-JAX reference"

    print("KERNEL_OK")
</pallas_src>

<mosaic_0001>
module attributes {stable_mosaic.version = 11 : i64} {
  func.func @_mlp_kernel(%arg0: i32, %arg1: memref<16x32xbf16, #tpu.memory_space<vmem>>, %arg2: memref<32x1024xbf16, #tpu.memory_space<vmem>>, %arg3: memref<1x1024xf32, #tpu.memory_space<vmem>>, %arg4: memref<1024x1024xbf16, #tpu.memory_space<vmem>>, %arg5: memref<1x1024xf32, #tpu.memory_space<vmem>>, %arg6: memref<1024x128xbf16, #tpu.memory_space<vmem>>, %arg7: memref<1x128xf32, #tpu.memory_space<vmem>>, %arg8: memref<16x128xf32, #tpu.memory_space<vmem>>) attributes {dimension_semantics = [#tpu.dimension_semantics<parallel>], iteration_bounds = array<i64: 1>, scalar_prefetch = 0 : i64, scratch_operands = 0 : i64, tpu.core_type = #tpu.core_type<tc>, window_params = [{transform_indices = @transform_0, window_bounds = array<i64: 16, 32>}, {pipeline_mode = #tpu.pipeline_mode<synchronous>, transform_indices = @transform_1, window_bounds = array<i64: 32, 1024>}, {pipeline_mode = #tpu.pipeline_mode<synchronous>, transform_indices = @transform_2, window_bounds = array<i64: 1, 1024>}, {pipeline_mode = #tpu.pipeline_mode<synchronous>, transform_indices = @transform_3, window_bounds = array<i64: 1024, 1024>}, {pipeline_mode = #tpu.pipeline_mode<synchronous>, transform_indices = @transform_4, window_bounds = array<i64: 1, 1024>}, {pipeline_mode = #tpu.pipeline_mode<synchronous>, transform_indices = @transform_5, window_bounds = array<i64: 1024, 128>}, {pipeline_mode = #tpu.pipeline_mode<synchronous>, transform_indices = @transform_6, window_bounds = array<i64: 1, 128>}, {transform_indices = @transform_7, window_bounds = array<i64: 16, 128>}]} {
    %c0 = arith.constant 0 : index
    %c0_0 = arith.constant 0 : index
    %0 = vector.load %arg1[%c0, %c0_0] : memref<16x32xbf16, #tpu.memory_space<vmem>>, vector<16x32xbf16>
    %c0_1 = arith.constant 0 : index
    %c0_2 = arith.constant 0 : index
    %1 = vector.load %arg2[%c0_1, %c0_2] : memref<32x1024xbf16, #tpu.memory_space<vmem>>, vector<32x1024xbf16>
    %cst = arith.constant dense<0.000000e+00> : vector<16x1024xf32>
    %2 = tpu.matmul %0, %1, %cst {dimension_numbers = #tpu.dot_dimension_numbers<[1], [0], [0], [1], [0, 0, 1, 1], [], []>} : vector<16x32xbf16>, vector<32x1024xbf16>, vector<16x1024xf32> -> vector<16x1024xf32>
    %c0_3 = arith.constant 0 : index
    %c0_4 = arith.constant 0 : index
    %3 = vector.load %arg3[%c0_3, %c0_4] : memref<1x1024xf32, #tpu.memory_space<vmem>>, vector<1x1024xf32>
    %4 = vector.broadcast %3 : vector<1x1024xf32> to vector<16x1024xf32>
    %5 = arith.addf %2, %4 : vector<16x1024xf32>
    %cst_5 = arith.constant 0.000000e+00 : f32
    %6 = vector.broadcast %cst_5 : f32 to vector<16x1024xf32>
    %7 = arith.maximumf %5, %6 : vector<16x1024xf32>
    %8 = arith.truncf %7 : vector<16x1024xf32> to vector<16x1024xbf16>
    %c0_6 = arith.constant 0 : index
    %c0_7 = arith.constant 0 : index
    %9 = vector.load %arg4[%c0_6, %c0_7] : memref<1024x1024xbf16, #tpu.memory_space<vmem>>, vector<1024x1024xbf16>
    %cst_8 = arith.constant dense<0.000000e+00> : vector<16x1024xf32>
    %10 = tpu.matmul %8, %9, %cst_8 {dimension_numbers = #tpu.dot_dimension_numbers<[1], [0], [0], [1], [0, 0, 1, 1], [], []>} : vector<16x1024xbf16>, vector<1024x1024xbf16>, vector<16x1024xf32> -> vector<16x1024xf32>
    %c0_9 = arith.constant 0 : index
    %c0_10 = arith.constant 0 : index
    %11 = vector.load %arg5[%c0_9, %c0_10] : memref<1x1024xf32, #tpu.memory_space<vmem>>, vector<1x1024xf32>
    %12 = vector.broadcast %11 : vector<1x1024xf32> to vector<16x1024xf32>
    %13 = arith.addf %10, %12 : vector<16x1024xf32>
    %cst_11 = arith.constant 0.000000e+00 : f32
    %14 = vector.broadcast %cst_11 : f32 to vector<16x1024xf32>
    %15 = arith.maximumf %13, %14 : vector<16x1024xf32>
    %16 = arith.truncf %15 : vector<16x1024xf32> to vector<16x1024xbf16>
    %c0_12 = arith.constant 0 : index
    %c0_13 = arith.constant 0 : index
    %17 = vector.load %arg6[%c0_12, %c0_13] : memref<1024x128xbf16, #tpu.memory_space<vmem>>, vector<1024x128xbf16>
    %cst_14 = arith.constant dense<0.000000e+00> : vector<16x128xf32>
    %18 = tpu.matmul %16, %17, %cst_14 {dimension_numbers = #tpu.dot_dimension_numbers<[1], [0], [0], [1], [0, 0, 1, 1], [], []>} : vector<16x1024xbf16>, vector<1024x128xbf16>, vector<16x128xf32> -> vector<16x128xf32>
    %c0_15 = arith.constant 0 : index
    %c0_16 = arith.constant 0 : index
    %19 = vector.load %arg7[%c0_15, %c0_16] : memref<1x128xf32, #tpu.memory_space<vmem>>, vector<1x128xf32>
    %20 = vector.broadcast %19 : vector<1x128xf32> to vector<16x128xf32>
    %21 = arith.addf %18, %20 : vector<16x128xf32>
    %22 = math.tanh %21 : vector<16x128xf32>
    %c0_17 = arith.constant 0 : index
    %c0_18 = arith.constant 0 : index
    %23 = vector.load %arg8[%c0_17, %c0_18] : memref<16x128xf32, #tpu.memory_space<vmem>>, vector<16x128xf32>
    tpu.vector_store %arg8[%c0_17, %c0_18], %22 {strides = array<i32>} : memref<16x128xf32, #tpu.memory_space<vmem>>, vector<16x128xf32>,
    return
  }
  func.func @transform_0(%arg0: i32) -> (i32, i32) {
    %c0_i32 = arith.constant 0 : i32
    %c0_i32_0 = arith.constant 0 : i32
    return %arg0, %c0_i32 : i32, i32
  }
  func.func @transform_1(%arg0: i32) -> (i32, i32) {
    %c0_i32 = arith.constant 0 : i32
    %c0_i32_0 = arith.constant 0 : i32
    %c0_i32_1 = arith.constant 0 : i32
    return %c0_i32, %c0_i32_0 : i32, i32
  }
  func.func @transform_2(%arg0: i32) -> (i32, i32) {
    %c0_i32 = arith.constant 0 : i32
    %c0_i32_0 = arith.constant 0 : i32
    %c0_i32_1 = arith.constant 0 : i32
    return %c0_i32, %c0_i32_0 : i32, i32
  }
  func.func @transform_3(%arg0: i32) -> (i32, i32) {
    %c0_i32 = arith.constant 0 : i32
    %c0_i32_0 = arith.constant 0 : i32
    %c0_i32_1 = arith.constant 0 : i32
    return %c0_i32, %c0_i32_0 : i32, i32
  }
  func.func @transform_4(%arg0: i32) -> (i32, i32) {
    %c0_i32 = arith.constant 0 : i32
    %c0_i32_0 = arith.constant 0 : i32
    %c0_i32_1 = arith.constant 0 : i32
    return %c0_i32, %c0_i32_0 : i32, i32
  }
  func.func @transform_5(%arg0: i32) -> (i32, i32) {
    %c0_i32 = arith.constant 0 : i32
    %c0_i32_0 = arith.constant 0 : i32
    %c0_i32_1 = arith.constant 0 : i32
    return %c0_i32, %c0_i32_0 : i32, i32
  }
  func.func @transform_6(%arg0: i32) -> (i32, i32) {
    %c0_i32 = arith.constant 0 : i32
    %c0_i32_0 = arith.constant 0 : i32
    %c0_i32_1 = arith.constant 0 : i32
    return %c0_i32, %c0_i32_0 : i32, i32
  }
  func.func @transform_7(%arg0: i32) -> (i32, i32) {
    %c0_i32 = arith.constant 0 : i32
    %c0_i32_0 = arith.constant 0 : i32
    return %arg0, %c0_i32 : i32, i32
  }
}

</mosaic_0001>

<bundles_post_ra>
// kernel: tpu_custom_call.1
= control target key start
LH: loop header
LB: loop body
LE: loop exit
PB: predicated region body
PF: predicated region fallthrough
CT: control target
= control target key end

     0   :  { %12 = vsyncpa [#allocation3], 0  ;;  %s6321_s0 = inlined_call_operand.hbm [shape: bf16[16,32], index: 0, kind: input, shape index: {}]   ;;  %s6322_s1 = inlined_call_operand.hbm [shape: bf16[32,1024], index: 1, kind: input, shape index: {}]   ;;  %s6323_s2 = inlined_call_operand.hbm [shape: f32[1,1024], index: 2, kind: input, shape index: {}]   ;;  %s6324_s3 = inlined_call_operand.hbm [shape: bf16[1024,1024], index: 3, kind: input, shape index: {}]   ;;  %s6325_s4 = inlined_call_operand.hbm [shape: f32[1,1024], index: 4, kind: input, shape index: {}]   ;;  %s6326_s5 = inlined_call_operand.hbm [shape: bf16[1024,128], index: 5, kind: input, shape index: {}]   ;;  %s6327_s6 = inlined_call_operand.hbm [shape: f32[1,128], index: 6, kind: input, shape index: {}]   ;;  %s6328_s7 = inlined_call_operand.hbm [shape: f32[16,128], index: 7, kind: output, shape index: {}]  }
   0x1   :  { %13 = vsyncpa [#allocation6], 0 }
   0x2   :  { %14 = vsyncpa [#allocation9], 0 }
   0x3   :  { %15 = vsyncpa [#allocation12], 0 }
   0x4   :  { %16 = vsyncpa [#allocation4], 0  ;;  %s6015_s24 = smov [#allocation5]   ;;  %s5829_s28 = scalar_lea.hbm %s6322_s1, 2048 }
   0x5   :  { %s34_s25 = sshll.u32 %s6015_s24, 4  ;;  %p5830_p0 = scmp.ne.s32.totalorder %s6322_s1, %s5829_s28  ;;  %s35_s25 = int_to_ptr.vmem [resolvable:$true] %s34_s25 }
   0x6   :  { %p5833_p1 = scmp.lt.u32.totalorder %s5829_s28, %s6322_s1 }
   0x8   :  { %p5835_p2 = pnand %p5833_p1, %p5830_p0 }
   0xa   :  { %5838 = shalt.err (!%p5835_p2)
}
   0xb   :  { %s5839_s10 = scalar_lea.vmem %s35_s25, 2048  ;;  %p5844_p4 = scmp.lt.s32.totalorder %s35_s25, %s35_s25 }
   0xc   :  { %p5840_p3 = scmp.ne.s32.totalorder %s35_s25, %s5839_s10  ;;  %p5845_p5 = scmp.lt.s32.totalorder %s5839_s10, %s5839_s10 }
   0xe   :  { %p5846_p6 = por %p5845_p5, %p5844_p4 }
  0x10   :  { %p5847_p7 = pnand %p5846_p6, %p5840_p3 }
  0x12   :  { %5850 = shalt.err (!%p5847_p7)
}
  0x13   :  { %s6016_s11 = smov 512   ;;  %s6017_s12 = smov 32  }
  0x14   :  { %40 = dma.hbm_to_vmem [thread:$0]  %s6322_s1, 2048, %s35_s25, [#allocation6], %s6016_s11, %s6016_s11, %s6017_s12  }
  0x15   :  { %s6018_s15 = smov [#allocation8]   ;;  %s5851_s19 = scalar_lea.hbm %s6324_s3, 65536 }
  0x16   :  { %s56_s16 = sshll.u32 %s6018_s15, 4  ;;  %p5852_p8 = scmp.ne.s32.totalorder %s6324_s3, %s5851_s19  ;;  %s57_s16 = int_to_ptr.vmem [resolvable:$true] %s56_s16 }
  0x17   :  { %p5855_p9 = scmp.lt.u32.totalorder %s5851_s19, %s6324_s3 }
  0x19   :  { %p5857_p10 = pnand %p5855_p9, %p5852_p8 }
  0x1b   :  { %5860 = shalt.err (!%p5857_p10)
}
  0x1c   :  { %s5861_s24 = scalar_lea.vmem %s57_s16, 65536  ;;  %p5866_p12 = scmp.lt.s32.totalorder %s57_s16, %s57_s16 }
  0x1d   :  { %p5862_p11 = scmp.ne.s32.totalorder %s57_s16, %s5861_s24  ;;  %p5867_p13 = scmp.lt.s32.totalorder %s5861_s24, %s5861_s24 }
  0x1f   :  { %p5868_p0 = por %p5867_p13, %p5866_p12 }
  0x21   :  { %p5869_p1 = pnand %p5868_p0, %p5862_p11 }
  0x23   :  { %5872 = shalt.err (!%p5869_p1)
}
  0x24   :  { %62 = dma.hbm_to_vmem [thread:$0]  %s6324_s3, 65536, %s57_s16, [#allocation9], %s6016_s11, %s6016_s11, %s6017_s12  }
  0x25   :  { %s6019_s26 = smov [#allocation11]   ;;  %s6020_s28 = smov [#allocation2]  }
  0x26   :  { %s78_s27 = sshll.u32 %s6019_s26, 4  ;;  %s22_s29 = sshll.u32 %s6020_s28, 4  ;;  %s79_s27 = int_to_ptr.vmem [resolvable:$true] %s78_s27  ;;  %s6094_s29 = int_to_ptr.vmem [resolvable:$true] %s22_s29 }
  0x27   :  { %s5873_s9 = scalar_lea.hbm %s6326_s5, 8192 }
  0x28   :  { %p5874_p2 = scmp.ne.s32.totalorder %s6326_s5, %s5873_s9  ;;  %p5877_p3 = scmp.lt.u32.totalorder %s5873_s9, %s6326_s5 }
  0x2a   :  { %p5879_p4 = pnand %p5877_p3, %p5874_p2 }
  0x2c   :  { %5882 = shalt.err (!%p5879_p4)
}
  0x2d   :  { %s5883_s3 = scalar_lea.vmem %s79_s27, 8192  ;;  %p5888_p6 = scmp.lt.s32.totalorder %s79_s27, %s79_s27 }
  0x2e   :  { %p5884_p5 = scmp.ne.s32.totalorder %s79_s27, %s5883_s3  ;;  %p5889_p7 = scmp.lt.s32.totalorder %s5883_s3, %s5883_s3 }
  0x30   :  { %p5890_p8 = por %p5889_p7, %p5888_p6 }
  0x32   :  { %p5891_p9 = pnand %p5890_p8, %p5884_p5 }
  0x34   :  { %5894 = shalt.err (!%p5891_p9)
}
  0x35   :  { %s6021_s11 = smov 64   ;;  %s6022_s12 = smov 4  }
  0x36   :  { %84 = dma.hbm_to_vmem [thread:$0]  %s6326_s5, 8192, %s79_s27, [#allocation12], %s6021_s11, %s6021_s11, %s6022_s12  }
  0x37   :  { %s5895_s20 = scalar_lea.hbm %s6321_s0, 128 }
  0x38   :  { %p5896_p10 = scmp.ne.s32.totalorder %s6321_s0, %s5895_s20  ;;  %p5899_p11 = scmp.lt.u32.totalorder %s5895_s20, %s6321_s0 }
  0x3a   :  { %p5901_p12 = pnand %p5899_p11, %p5896_p10 }
  0x3c   :  { %5904 = shalt.err (!%p5901_p12)
}
  0x3d   :  { %s5905_s1 = scalar_lea.vmem %s6094_s29, 128  ;;  %p5910_p0 = scmp.lt.s32.totalorder %s6094_s29, %s6094_s29 }
  0x3e   :  { %p5906_p13 = scmp.ne.s32.totalorder %s6094_s29, %s5905_s1  ;;  %p5911_p1 = scmp.lt.s32.totalorder %s5905_s1, %s5905_s1 }
  0x40   :  { %p5912_p2 = por %p5911_p1, %p5910_p0 }
  0x42   :  { %p5913_p3 = pnand %p5912_p2, %p5906_p13 }
  0x44   :  { %5916 = shalt.err (!%p5913_p3)
}
  0x45   :  { %28 = dma.hbm_to_vmem [thread:$0]  %s6321_s0, 128, %s6094_s29, [#allocation3], %s6021_s11, %s6021_s11, %s6022_s12  }
  0x46   :  { %s6023_s26 = smov [#allocation7]   ;;  %s6024_s28 = smov [#allocation10]  }
  0x47   :  { %s47_s27 = sshll.u32 %s6023_s26, 4  ;;  %s69_s30 = sshll.u32 %s6024_s28, 4  ;;  %s48_s27 = int_to_ptr.vmem [resolvable:$true] %s47_s27  ;;  %s70_s30 = int_to_ptr.vmem [resolvable:$true] %s69_s30 }
  0x48   :  { %s5917_s10 = scalar_lea.hbm %s6323_s2, 128 }
  0x49   :  { %p5918_p4 = scmp.ne.s32.totalorder %s6323_s2, %s5917_s10  ;;  %p5921_p5 = scmp.lt.u32.totalorder %s5917_s10, %s6323_s2 }
  0x4b   :  { %p5923_p6 = pnand %p5921_p5, %p5918_p4 }
  0x4d   :  { %5926 = shalt.err (!%p5923_p6)
}
  0x4e   :  { %s5927_s0 = scalar_lea.vmem %s48_s27, 128  ;;  %p5932_p8 = scmp.lt.s32.totalorder %s48_s27, %s48_s27 }
  0x4f   :  { %p5928_p7 = scmp.ne.s32.totalorder %s48_s27, %s5927_s0  ;;  %p5933_p9 = scmp.lt.s32.totalorder %s5927_s0, %s5927_s0 }
  0x51   :  { %p5934_p10 = por %p5933_p9, %p5932_p8 }
  0x53   :  { %p5935_p11 = pnand %p5934_p10, %p5928_p7 }
  0x55   :  { %5938 = shalt.err (!%p5935_p11)
}
  0x56   :  { %50 = dma.hbm_to_vmem [thread:$0]  %s6323_s2, 128, %s48_s27, [#allocation6]  }
  0x57   :  { %s5939_s17 = scalar_lea.hbm %s6325_s4, 128 }
  0x58   :  { %p5940_p12 = scmp.ne.s32.totalorder %s6325_s4, %s5939_s17  ;;  %p5943_p13 = scmp.lt.u32.totalorder %s5939_s17, %s6325_s4 }
  0x5a   :  { %p5945_p0 = pnand %p5943_p13, %p5940_p12 }
  0x5c   :  { %5948 = shalt.err (!%p5945_p0)
}
  0x5d   :  { %s5949_s22 = scalar_lea.vmem %s70_s30, 128  ;;  %p5954_p2 = scmp.lt.s32.totalorder %s70_s30, %s70_s30 }
  0x5e   :  { %p5950_p1 = scmp.ne.s32.totalorder %s70_s30, %s5949_s22  ;;  %p5955_p3 = scmp.lt.s32.totalorder %s5949_s22, %s5949_s22 }
  0x60   :  { %p5956_p4 = por %p5955_p3, %p5954_p2 }
  0x62   :  { %p5957_p5 = pnand %p5956_p4, %p5950_p1 }
  0x64   :  { %5960 = shalt.err (!%p5957_p5)
}
  0x65   :  { %72 = dma.hbm_to_vmem [thread:$0]  %s6325_s4, 128, %s70_s30, [#allocation9]  }
  0x66   :  { %s6025_s24 = smov [#allocation13]   ;;  %s5961_s26 = scalar_lea.hbm %s6327_s6, 16 }
  0x67   :  { %s91_s1 = sshll.u32 %s6025_s24, 4  ;;  %p5962_p6 = scmp.ne.s32.totalorder %s6327_s6, %s5961_s26  ;;  %s92_s1 = int_to_ptr.vmem [resolvable:$true] %s91_s1 }
  0x68   :  { %p5965_p7 = scmp.lt.u32.totalorder %s5961_s26, %s6327_s6 }
  0x6a   :  { %p5967_p8 = pnand %p5965_p7, %p5962_p6 }
  0x6c   :  { %5970 = shalt.err (!%p5967_p8)
}
  0x6d   :  { %s5971_s10 = scalar_lea.vmem %s92_s1, 16  ;;  %s5975_s4 = scalar_lea.vmem %s92_s1, 32 }
  0x6e   :  { %p5972_p9 = scmp.ne.s32.totalorder %s92_s1, %s5971_s10  ;;  %p5976_p10 = scmp.lt.s32.totalorder %s92_s1, %s92_s1 }
  0x6f   :  { %p5977_p11 = scmp.lt.s32.totalorder %s5975_s4, %s5971_s10 }
  0x71   :  { %p5978_p12 = por %p5977_p11, %p5976_p10 }
  0x73   :  { %p5979_p13 = pnand %p5978_p12, %p5972_p9 }
  0x75   :  { %5982 = shalt.err (!%p5979_p13)
}
  0x76   :  { %94 = dma.hbm_to_vmem [thread:$0]  %s6327_s6, 16, %s92_s1, [#allocation12]  }
  0x77   :  { %6005 = dma.done.wait [#allocation3], 128  }
  0x78   :  { %6006 = vsyncadd [#allocation3], 4294967168 }
  0x79   :  { %6007 = dma.done.wait [#allocation6], 2176  }
  0x7a   :  { %6008 = vsyncadd [#allocation6], 4294965120 }
  0x7b   :  { %6009 = dma.done.wait [#allocation9], 65664  }
  0x7c   :  { %6010 = vsyncadd [#allocation9], 4294901632 }
  0x7d   :  { %6011 = dma.done.wait [#allocation12], 8208  }
  0x7e   :  { %6012 = vsyncadd [#allocation12], 4294959088  ;;  %v6026_v0 = vmov 0   ;;  %v119_v1 = vld [vmem:[#allocation5] sm:$0xff]  ;;  %v120_v8 = vld [vmem:[#allocation5 + $0x8] sm:$0xff]  ;;  %vm262_vm0 = vcmask 261120  }
  0x7f   :  { %298 = vmatprep.mubr.bf16.mxu0 %v6026_v0  ;;  %341 = vmatprep.mubr.bf16.mxu1 %v6026_v0  ;;  %v123_v2 = vld [vmem:[#allocation5 + $0x20] sm:$0xff]  ;;  %v124_v9 = vld [vmem:[#allocation5 + $0x28] sm:$0xff]  ;;  %v121_v14 = vld [vmem:[#allocation5 + $0x10] sm:$0xff]  ;;  %s6027_s6 = smov [#allocation14]  }
  0x80   :  { %v127_v3 = vld [vmem:[#allocation5 + $0x40] sm:$0xff]  ;;  %v4997_v4 = vcombine.high %v119_v1, %v123_v2  ;;  %v4996_v5 = vcombine.low %v119_v1, %v123_v2  ;;  %v4999_v10 = vcombine.high %v120_v8, %v124_v9  ;;  %v4998_v11 = vcombine.low %v120_v8, %v124_v9  ;;  %v128_v12 = vld [vmem:[#allocation5 + $0x48] sm:$0xff]  ;;  %v125_v17 = vld [vmem:[#allocation5 + $0x30] sm:$0xff]  ;;  %s4980_s14 = sshll.u32 %s6027_s6, 4  ;;  %s4981_s14 = int_to_ptr.vmem [resolvable:$true] %s4980_s14 }
  0x81   :  { %v131_v6 = vld [vmem:[#allocation5 + $0x60] sm:$0xff]  ;;  %v132_v13 = vld [vmem:[#allocation5 + $0x68] sm:$0xff]  ;;  %v5001_v18 = vcombine.high %v121_v14, %v125_v17  ;;  %v122_v19 = vld [vmem:[#allocation5 + $0x18] sm:$0xff]  ;;  %v5000_v26 = vcombine.low %v121_v14, %v125_v17  ;;  %s5983_s15 = scalar_lea.vmem %s4981_s14, 256  ;;  %p5988_p1 = scmp.lt.s32.totalorder %s4981_s14, %s4981_s14 }
  0x82   :  { %v5005_v7 = vcombine.high %v127_v3, %v131_v6  ;;  %266 = vmatprep.subr.bf16.mxu0 %v4997_v4  ;;  %v5004_v15 = vcombine.low %v127_v3, %v131_v6  ;;  %v5007_v16 = vcombine.high %v128_v12, %v132_v13  ;;  %309 = vmatprep.subr.bf16.mxu1 %v4999_v10  ;;  %v126_v20 = vld [vmem:[#allocation5 + $0x38] sm:$0xff]  ;;  %v129_v22 = vld [vmem:[#allocation5 + $0x50] sm:$0xff]  ;;  %v462_v31 = vld [vmem:[#allocation8] sm:$0xff]  ;;  %p5984_p0 = scmp.ne.s32.totalorder %s4981_s14, %s5983_s15  ;;  %p5989_p2 = scmp.lt.s32.totalorder %s5983_s15, %s5983_s15 }
  0x83   :  { %267 = vmatpush1.bf16.msra.mxu0 %v4996_v5  ;;  %310 = vmatpush1.bf16.msra.mxu1 %v4998_v11  ;;  %v5006_v21 = vcombine.low %v128_v12, %v132_v13  ;;  %v133_v23 = vld [vmem:[#allocation5 + $0x70] sm:$0xff]  ;;  %v5760_v24 = vld [vmem:[#allocation2] sm:$0xff]   ;;  %v5003_v25 = vcombine.high %v122_v19, %v126_v20  ;;  %v5002_v30 = vcombine.low %v122_v19, %v126_v20  ;;  %v466_v32 = vld [vmem:[#allocation8 + $0x20] sm:$0xff] }
  0x84   :  { %268 = vmatprep.subr.bf16.mxu0 %v5005_v7  ;;  %311 = vmatprep.subr.bf16.mxu1 %v5007_v16  ;;  %v130_v27 = vld [vmem:[#allocation5 + $0x58] sm:$0xff]  ;;  %v5009_v29 = vcombine.high %v129_v22, %v133_v23  ;;  %v5008_v34 = vcombine.low %v129_v22, %v133_v23  ;;  %v463_v35 = vld [vmem:[#allocation8 + $0x8] sm:$0xff]  ;;  %v5017_v37 = vcombine.high %v462_v31, %v466_v32  ;;  %v470_v39 = vld [vmem:[#allocation8 + $0x40] sm:$0xff]  ;;  %p5990_p3 = por %p5989_p2, %p5988_p1 }
  0x85   :  { %v134_v28 = vld [vmem:[#allocation5 + $0x78] sm:$0xff]  ;;  %v467_v36 = vld [vmem:[#allocation8 + $0x28] sm:$0xff]  ;;  %v474_v40 = vld [vmem:[#allocation8 + $0x60] sm:$0xff]  ;;  %v5016_v42 = vcombine.low %v462_v31, %v466_v32 }
  0x86   :  { %v5011_v33 = vcombine.high %v130_v27, %v134_v28  ;;  %v5010_v38 = vcombine.low %v130_v27, %v134_v28  ;;  %v5019_v41 = vcombine.high %v463_v35, %v467_v36  ;;  %v471_v43 = vld [vmem:[#allocation8 + $0x48] sm:$0xff]  ;;  %v5025_v45 = vcombine.high %v470_v39, %v474_v40  ;;  %v478_v47 = vld [vmem:[#allocation8 + $0x80] sm:$0xff]  ;;  %p5991_p4 = pnand %p5990_p3, %p5984_p0 }
  0x87   :  { %269 = vmatpush1.bf16.msra.mxu0 %v5004_v15  ;;  %312 = vmatpush1.bf16.msra.mxu1 %v5006_v21  ;;  %v475_v44 = vld [vmem:[#allocation8 + $0x68] sm:$0xff]  ;;  %v5018_v46 = vcombine.low %v463_v35, %v467_v36  ;;  %v482_v48 = vld [vmem:[#allocation8 + $0xa0] sm:$0xff]  ;;  %v5024_v50 = vcombine.low %v470_v39, %v474_v40 }
  0x88   :  { %352 = vmatprep.subr.bf16.mxu0 %v5001_v18  ;;  %395 = vmatprep.subr.bf16.mxu1 %v5003_v25  ;;  %v5027_v49 = vcombine.high %v471_v43, %v475_v44  ;;  %v479_v51 = vld [vmem:[#allocation8 + $0x88] sm:$0xff]  ;;  %v5033_v53 = vcombine.high %v478_v47, %v482_v48  ;;  %v5026_v54 = vcombine.low %v471_v43, %v475_v44  ;;  %v486_v55 = vld [vmem:[#allocation8 + $0xc0] sm:$0xff] }
  0x89   :  { %v483_v52 = vld [vmem:[#allocation8 + $0xa8] sm:$0xff]  ;;  %v490_v56 = vld [vmem:[#allocation8 + $0xe0] sm:$0xff]  ;;  %v5032_v58 = vcombine.low %v478_v47, %v482_v48 }
  0x8a   :  { %5012 = vmatmul.mubr.msk.bf16.vlgmr.msra.gmra.mrb[0].mxu0 %vm262_vm0, %v5760_v24  ;;  %5013 = vmatmul.mubr.msk.bf16.vlgmr.msra.gmra.mrb[0].mxu1 %vm262_vm0, %v5760_v24  ;;  %v5035_v57 = vcombine.high %v479_v51, %v483_v52  ;;  %v487_v59 = vld [vmem:[#allocation8 + $0xc8] sm:$0xff]  ;;  %v494_v61 = vld [vmem:[#allocation8 + $0x100] sm:$0xff]  ;;  %v5041_v62 = vcombine.high %v486_v55, %v490_v56  ;;  %v5040_v4 = vcombine.low %v486_v55, %v490_v56 }
  0x8b   :  { %353 = vmatpush1.bf16.msra.mxu0 %v5000_v26  ;;  %384 = vmatprep.mubr.bf16.mxu0 %v6026_v0  ;;  %v491_v60 = vld [vmem:[#allocation8 + $0xe8] sm:$0xff]  ;;  %v498_v63 = vld [vmem:[#allocation8 + $0x120] sm:$0xff] }
  0x8c   :  { %354 = vmatprep.subr.bf16.mxu0 %v5009_v29  ;;  %396 = vmatpush1.bf16.msra.mxu1 %v5002_v30  ;;  %v495_v1 = vld [vmem:[#allocation8 + $0x108] sm:$0xff]  ;;  %v5043_v3 = vcombine.high %v487_v59, %v491_v60  ;;  %v502_v5 = vld [vmem:[#allocation8 + $0x140] sm:$0xff]  ;;  %v5049_v7 = vcombine.high %v494_v61, %v498_v63  ;;  %v5042_v8 = vcombine.low %v487_v59, %v491_v60 }
  0x8d   :  { %427 = vmatprep.mubr.bf16.mxu1 %v6026_v0  ;;  %397 = vmatprep.subr.bf16.mxu1 %v5011_v33  ;;  %v5034_v0 = vcombine.low %v479_v51, %v483_v52  ;;  %v499_v2 = vld [vmem:[#allocation8 + $0x128] sm:$0xff]  ;;  %v506_v6 = vld [vmem:[#allocation8 + $0x160] sm:$0xff]  ;;  %v5048_v12 = vcombine.low %v494_v61, %v498_v63 }
  0x8e   :  { %v503_v9 = vld [vmem:[#allocation8 + $0x148] sm:$0xff]  ;;  %v5051_v11 = vcombine.high %v495_v1, %v499_v2  ;;  %v510_v13 = vld [vmem:[#allocation8 + $0x180] sm:$0xff]  ;;  %v5057_v15 = vcombine.high %v502_v5, %v506_v6  ;;  %v5050_v16 = vcombine.low %v495_v1, %v499_v2  ;;  %v5056_v20 = vcombine.low %v502_v5, %v506_v6 }
  0x8f   :  { %355 = vmatpush1.bf16.msra.mxu0 %v5008_v34  ;;  %v507_v10 = vld [vmem:[#allocation8 + $0x168] sm:$0xff]  ;;  %v514_v14 = vld [vmem:[#allocation8 + $0x1a0] sm:$0xff] }
  0x90   :  { %3576 = vmatprep.subr.bf16.mxu0 %v5017_v37  ;;  %398 = vmatpush1.bf16.msra.mxu1 %v5010_v38  ;;  %v511_v17 = vld [vmem:[#allocation8 + $0x188] sm:$0xff]  ;;  %v5059_v19 = vcombine.high %v503_v9, %v507_v10  ;;  %v518_v21 = vld [vmem:[#allocation8 + $0x1c0] sm:$0xff]  ;;  %v5065_v23 = vcombine.high %v510_v13, %v514_v14  ;;  %v5064_v28 = vcombine.low %v510_v13, %v514_v14 }
  0x91   :  { %3748 = vmatprep.subr.bf16.mxu1 %v5019_v41  ;;  %v515_v18 = vld [vmem:[#allocation8 + $0x1a8] sm:$0xff]  ;;  %v522_v22 = vld [vmem:[#allocation8 + $0x1e0] sm:$0xff] }
  0x92   :  { %5014 = vmatmul.mubr.msk.bf16.vlgmr.msra.gmra.mrb[4].mxu0 %vm262_vm0, %v5760_v24  ;;  %v519_v25 = vld [vmem:[#allocation8 + $0x1c8] sm:$0xff]  ;;  %v5067_v27 = vcombine.high %v511_v17, %v515_v18  ;;  %v526_v29 = vld [vmem:[#allocation8 + $0x200] sm:$0xff]  ;;  %v5073_v31 = vcombine.high %v518_v21, %v522_v22  ;;  %v5066_v32 = vcombine.low %v511_v17, %v515_v18  ;;  %v5072_v36 = vcombine.low %v518_v21, %v522_v22 }
  0x93   :  { %3577 = vmatpush1.bf16.msra.mxu0 %v5016_v42  ;;  %5015 = vmatmul.mubr.msk.bf16.vlgmr.msra.gmra.mrb[4].mxu1 %vm262_vm0, %v5760_v24  ;;  %v5058_v24 = vcombine.low %v503_v9, %v507_v10  ;;  %v523_v26 = vld [vmem:[#allocation8 + $0x1e8] sm:$0xff]  ;;  %v530_v30 = vld [vmem:[#allocation8 + $0x220] sm:$0xff] }
  0x94   :  { %3578 = vmatprep.subr.bf16.mxu0 %v5025_v45  ;;  %3749 = vmatpush1.bf16.msra.mxu1 %v5018_v46  ;;  %v527_v33 = vld [vmem:[#allocation8 + $0x208] sm:$0xff]  ;;  %v5075_v35 = vcombine.high %v519_v25, %v523_v26  ;;  %v534_v37 = vld [vmem:[#allocation8 + $0x240] sm:$0xff]  ;;  %v5081_v39 = vcombine.high %v526_v29, %v530_v30  ;;  %v5074_v40 = vcombine.low %v519_v25, %v523_v26 }
  0x95   :  { %3750 = vmatprep.subr.bf16.mxu1 %v5027_v49  ;;  %v531_v34 = vld [vmem:[#allocation8 + $0x228] sm:$0xff]  ;;  %v538_v38 = vld [vmem:[#allocation8 + $0x260] sm:$0xff]  ;;  %v5080_v44 = vcombine.low %v526_v29, %v530_v30 }
  0x96   :  { %v535_v41 = vld [vmem:[#allocation8 + $0x248] sm:$0xff]  ;;  %v5083_v43 = vcombine.high %v527_v33, %v531_v34  ;;  %v542_v45 = vld [vmem:[#allocation8 + $0x280] sm:$0xff]  ;;  %v5089_v47 = vcombine.high %v534_v37, %v538_v38  ;;  %v5082_v48 = vcombine.low %v527_v33, %v531_v34  ;;  %v5088_v52 = vcombine.low %v534_v37, %v538_v38 }
  0x97   :  { %3579 = vmatpush1.bf16.msra.mxu0 %v5024_v50  ;;  %v539_v42 = vld [vmem:[#allocation8 + $0x268] sm:$0xff]  ;;  %v546_v46 = vld [vmem:[#allocation8 + $0x2a0] sm:$0xff] }
  0x98   :  { %3580 = vmatprep.subr.bf16.mxu0 %v5033_v53  ;;  %3751 = vmatpush1.bf16.msra.mxu1 %v5026_v54  ;;  %v543_v49 = vld [vmem:[#allocation8 + $0x288] sm:$0xff]  ;;  %v5091_v51 = vcombine.high %v535_v41, %v539_v42  ;;  %v550_v53 = vld [vmem:[#allocation8 + $0x2c0] sm:$0xff]  ;;  %v5097_v55 = vcombine.high %v542_v45, %v546_v46  ;;  %v5090_v56 = vcombine.low %v535_v41, %v539_v42  ;;  %v137_v42 = vlaneseq }
  0x99   :  { %3752 = vmatprep.subr.bf16.mxu1 %v5035_v57  ;;  %v547_v50 = vld [vmem:[#allocation8 + $0x2a8] sm:$0xff]  ;;  %v554_v54 = vld [vmem:[#allocation8 + $0x2e0] sm:$0xff]  ;;  %v5096_v60 = vcombine.low %v542_v45, %v546_v46  ;;  %v6184_v45 = vld [vmem:[#allocation7] sm:$0xff] }
  0x9a   :  { %v551_v57 = vld [vmem:[#allocation8 + $0x2c8] sm:$0xff]  ;;  %v5099_v59 = vcombine.high %v543_v49, %v547_v50  ;;  %v558_v61 = vld [vmem:[#allocation8 + $0x300] sm:$0xff]  ;;  %v5105_v63 = vcombine.high %v550_v53, %v554_v54 }
  0x9b   :  { %3581 = vmatpush1.bf16.msra.mxu0 %v5032_v58  ;;  %v555_v58 = vld [vmem:[#allocation8 + $0x2e8] sm:$0xff]  ;;  %v566_v5 = vld [vmem:[#allocation8 + $0x340] sm:$0xff] }
  0x9c   :  { %3582 = vmatprep.subr.bf16.mxu0 %v5041_v62  ;;  %3753 = vmatpush1.bf16.msra.mxu1 %v5034_v0  ;;  %v562_v62 = vld [vmem:[#allocation8 + $0x320] sm:$0xff]  ;;  %v5098_v0 = vcombine.low %v543_v49, %v547_v50  ;;  %v559_v1 = vld [vmem:[#allocation8 + $0x308] sm:$0xff] }
  0x9d   :  { %3754 = vmatprep.subr.bf16.mxu1 %v5043_v3  ;;  %v563_v2 = vld [vmem:[#allocation8 + $0x328] sm:$0xff]  ;;  %v5107_v3 = vcombine.high %v551_v57, %v555_v58  ;;  %v570_v6 = vld [vmem:[#allocation8 + $0x360] sm:$0xff] }
  0x9e   :  { %v567_v9 = vld [vmem:[#allocation8 + $0x348] sm:$0xff]  ;;  %v5121_v13 = vcombine.high %v566_v5, %v570_v6  ;;  %v5114_v14 = vcombine.low %v559_v1, %v563_v2  ;;  %v574_v18 = vld [vmem:[#allocation8 + $0x380] sm:$0xff] }
  0x9f   :  { %3583 = vmatpush1.bf16.msra.mxu0 %v5040_v4  ;;  %v5104_v4 = vcombine.low %v550_v53, %v554_v54  ;;  %v571_v10 = vld [vmem:[#allocation8 + $0x368] sm:$0xff]  ;;  %v582_v26 = vld [vmem:[#allocation8 + $0x3c0] sm:$0xff] }
  0xa0   :  { %3584 = vmatprep.subr.bf16.mxu0 %v5049_v7  ;;  %3755 = vmatpush1.bf16.msra.mxu1 %v5042_v8  ;;  %v5113_v7 = vcombine.high %v558_v61, %v562_v62  ;;  %v5106_v8 = vcombine.low %v551_v57, %v555_v58  ;;  %v5122_v17 = vcombine.low %v567_v9, %v571_v10  ;;  %v579_v22 = vld [vmem:[#allocation8 + $0x3a8] sm:$0xff]  ;;  %v6165_v34 = vld [vmem:[#allocation8 + $0x400] sm:$0xff] }
  0xa1   :  { %3756 = vmatprep.subr.bf16.mxu1 %v5051_v11  ;;  %v5115_v11 = vcombine.high %v559_v1, %v563_v2  ;;  %v587_v30 = vld [vmem:[#allocation8 + $0x3e8] sm:$0xff] }
  0xa2   :  { %v6173_v38 = vld [vmem:[#allocation8 + $0x428] sm:$0xff] }
  0xa3   :  { %3585 = vmatpush1.bf16.msra.mxu0 %v5048_v12  ;;  %v5112_v12 = vcombine.low %v558_v61, %v562_v62 }
  0xa4   :  { %3586 = vmatprep.subr.bf16.mxu0 %v5057_v15  ;;  %3757 = vmatpush1.bf16.msra.mxu1 %v5050_v16  ;;  %v5123_v15 = vcombine.high %v567_v9, %v571_v10  ;;  %v5120_v16 = vcombine.low %v566_v5, %v570_v6 }
  0xa5   :  { %3758 = vmatprep.subr.bf16.mxu1 %v5059_v19  ;;  %v578_v19 = vld [vmem:[#allocation8 + $0x3a0] sm:$0xff] }
  0xa6   :  { %v5129_v21 = vcombine.high %v574_v18, %v578_v19 }
  0xa7   :  { %3587 = vmatpush1.bf16.msra.mxu0 %v5056_v20  ;;  %v575_v20 = vld [vmem:[#allocation8 + $0x388] sm:$0xff] }
  0xa8   :  { %3588 = vmatprep.subr.bf16.mxu0 %v5065_v23  ;;  %3759 = vmatpush1.bf16.msra.mxu1 %v5058_v24  ;;  %v5128_v23 = vcombine.low %v574_v18, %v578_v19  ;;  %v5130_v24 = vcombine.low %v575_v20, %v579_v22  ;;  %v5131_v25 = vcombine.high %v575_v20, %v579_v22 }
  0xa9   :  { %3760 = vmatprep.subr.bf16.mxu1 %v5067_v27  ;;  %v586_v27 = vld [vmem:[#allocation8 + $0x3e0] sm:$0xff] }
  0xaa   :  { %v5137_v29 = vcombine.high %v582_v26, %v586_v27 }
  0xab   :  { %3589 = vmatpush1.bf16.msra.mxu0 %v5064_v28  ;;  %v583_v28 = vld [vmem:[#allocation8 + $0x3c8] sm:$0xff] }
  0xac   :  { %3590 = vmatprep.subr.bf16.mxu0 %v5073_v31  ;;  %3761 = vmatpush1.bf16.msra.mxu1 %v5066_v32  ;;  %v5136_v31 = vcombine.low %v582_v26, %v586_v27  ;;  %v5138_v32 = vcombine.low %v583_v28, %v587_v30  ;;  %v5139_v33 = vcombine.high %v583_v28, %v587_v30  ;;  %v606_v26 = vld [vmem:[#allocation8 + $0x480] sm:$0xff] }
  0xad   :  { %3762 = vmatprep.subr.bf16.mxu1 %v5075_v35  ;;  %v6167_v35 = vld [vmem:[#allocation8 + $0x420] sm:$0xff] }
  0xae   :  { %v5145_v37 = vcombine.high %v6165_v34, %v6167_v35  ;;  %v610_v30 = vld [vmem:[#allocation8 + $0x4a0] sm:$0xff] }
  0xaf   :  { %3591 = vmatpush1.bf16.msra.mxu0 %v5072_v36  ;;  %v6169_v36 = vld [vmem:[#allocation8 + $0x408] sm:$0xff] }
  0xb0   :  { %3592 = vmatprep.subr.bf16.mxu0 %v5081_v39  ;;  %3763 = vmatpush1.bf16.msra.mxu1 %v5074_v40  ;;  %v5144_v39 = vcombine.low %v6165_v34, %v6167_v35  ;;  %v5146_v40 = vcombine.low %v6169_v36, %v6173_v38  ;;  %v5147_v41 = vcombine.high %v6169_v36, %v6173_v38 }
  0xb1   :  { %3764 = vmatprep.subr.bf16.mxu1 %v5083_v43  ;;  %v6181_v43 = vshrl.u32 %v137_v42, 7  ;;  %v5160_v36 = vcombine.low %v606_v26, %v610_v30 }
  0xb3   :  { %3593 = vmatpush1.bf16.msra.mxu0 %v5080_v44  ;;  %v139_v44 = vsub.s32 0, %v6181_v43  ;;  %v143_v46 = vsub.s32 1, %v6181_v43  ;;  %v155_v54 = vsub.s32 4, %v6181_v43 }
  0xb4   :  { %3594 = vmatprep.subr.bf16.mxu0 %v5089_v47  ;;  %3765 = vmatpush1.bf16.msra.mxu1 %v5082_v48  ;;  %v147_v47 = vsub.s32 2, %v6181_v43  ;;  %v151_v48 = vsub.s32 3, %v6181_v43 }
  0xb5   :  { %3766 = vmatprep.subr.bf16.mxu1 %v5091_v51  ;;  %v140_v49 = vrot.slane %v6184_v45, %v139_v44  ;;  %v144_v50 = vrot.slane %v6184_v45, %v143_v46 }
  0xb6   :  { %v148_v51 = vrot.slane %v6184_v45, %v147_v47  ;;  %v152_v53 = vrot.slane %v6184_v45, %v151_v48 }
  0xb7   :  { %3595 = vmatpush1.bf16.msra.mxu0 %v5088_v52 }
  0xb8   :  { %3596 = vmatprep.subr.bf16.mxu0 %v5097_v55  ;;  %3767 = vmatpush1.bf16.msra.mxu1 %v5090_v56  ;;  %v159_v55 = vsub.s32 5, %v6181_v43 }
  0xb9   :  { %3768 = vmatprep.subr.bf16.mxu1 %v5099_v59 }
  0xba   :  { %v160_v5 = vrot.slane %v6184_v45, %v159_v55 }
  0xbb   :  { %3597 = vmatpush1.bf16.msra.mxu0 %v5096_v60 }
  0xbc   :  { %3598 = vmatprep.subr.bf16.mxu0 %v5105_v63  ;;  %3769 = vmatpush1.bf16.msra.mxu1 %v5098_v0 }
  0xbd   :  { %3770 = vmatprep.subr.bf16.mxu1 %v5107_v3 }
  0xbf   :  { %3599 = vmatpush1.bf16.msra.mxu0 %v5104_v4  ;;  %v156_v4 = vrot.slane %v6184_v45, %v155_v54 }
  0xc0   :  { %3600 = vmatprep.subr.bf16.mxu0 %v5113_v7  ;;  %3771 = vmatpush1.bf16.msra.mxu1 %v5106_v8  ;;  %v598_v8 = vld [vmem:[#allocation8 + $0x440] sm:$0xff] }
  0xc1   :  { %3772 = vmatprep.subr.bf16.mxu1 %v5115_v11 }
  0xc3   :  { %3601 = vmatpush1.bf16.msra.mxu0 %v5112_v12 }
  0xc4   :  { %3602 = vmatprep.subr.bf16.mxu0 %v5121_v13  ;;  %3773 = vmatpush1.bf16.msra.mxu1 %v5114_v14  ;;  %v602_v14 = vld [vmem:[#allocation8 + $0x460] sm:$0xff] }
  0xc5   :  { %3774 = vmatprep.subr.bf16.mxu1 %v5123_v15  ;;  %v599_v15 = vld [vmem:[#allocation8 + $0x448] sm:$0xff] }
  0xc7   :  { %3603 = vmatpush1.bf16.msra.mxu0 %v5120_v16  ;;  %v603_v16 = vld [vmem:[#allocation8 + $0x468] sm:$0xff] }
  0xc8   :  { %3775 = vmatpush1.bf16.msra.mxu1 %v5122_v17  ;;  %3604 = vmatprep.subr.bf16.mxu0 %v5129_v21 }
  0xc9   :  { %3776 = vmatprep.subr.bf16.mxu1 %v5131_v25  ;;  %v5155_v25 = vcombine.high %v599_v15, %v603_v16 }
  0xcb   :  { %3605 = vmatpush1.bf16.msra.mxu0 %v5128_v23 }
  0xcc   :  { %3777 = vmatpush1.bf16.msra.mxu1 %v5130_v24  ;;  %3606 = vmatprep.subr.bf16.mxu0 %v5137_v29  ;;  %v5153_v24 = vcombine.high %v598_v8, %v602_v14 }
  0xcd   :  { %3778 = vmatprep.subr.bf16.mxu1 %v5139_v33 }
  0xcf   :  { %3607 = vmatpush1.bf16.msra.mxu0 %v5136_v31  ;;  %v607_v31 = vld [vmem:[#allocation8 + $0x488] sm:$0xff] }
  0xd0   :  { %3779 = vmatpush1.bf16.msra.mxu1 %v5138_v32  ;;  %3619 = vmatprep.subr.bf16.mxu0 %v5145_v37  ;;  %v611_v32 = vld [vmem:[#allocation8 + $0x4a8] sm:$0xff] }
  0xd1   :  { %3791 = vmatprep.subr.bf16.mxu1 %v5147_v41  ;;  %v5162_v38 = vcombine.low %v607_v31, %v611_v32 }
 0x15d   :  { %v300_v52 = vpop.f32.mrb[0].mxu0  ;;  %v343_v60 = vpop.f32.mrb[0].mxu1 }
 0x15e   :  { %v301_v56 = vadd.f32 %v300_v52, %v140_v49  ;;  %v302_v57 = vpop.f32.mrb[1].mxu0  ;;  %v344_v63 = vadd.f32 %v343_v60, %v148_v51  ;;  %v345_v0 = vpop.f32.mrb[1].mxu1  ;;  %v5154_v52 = vcombine.low %v599_v15, %v603_v16 }
 0x15f   :  { %v303_v58 = vadd.f32 %v302_v57, %v144_v50  ;;  %v304_v59 = vpop.f32.mrb[2].mxu0  ;;  %v346_v2 = vadd.f32 %v345_v0, %v152_v53  ;;  %v347_v3 = vpop.f32.mrb[2].mxu1  ;;  %v5161_v57 = vcombine.high %v606_v26, %v610_v30 }
 0x160   :  { %v305_v61 = vadd.f32 %v304_v59, %v140_v49  ;;  %v306_v62 = vpop.f32.mrb[3].mxu0  ;;  %v438_v6 = vmax.f32 %v301_v56, 0.0  ;;  %v440_v9 = vmax.f32 %v344_v63, 0.0  ;;  %v348_v10 = vadd.f32 %v347_v3, %v148_v51  ;;  %v349_v11 = vpop.f32.mrb[3].mxu1  ;;  %v614_v59 = vld [vmem:[#allocation8 + $0x4c0] sm:$0xff]  ;;  %v619_v63 = vld [vmem:[#allocation8 + $0x4e8] sm:$0xff] }
 0x161   :  { %v307_v1 = vadd.f32 %v306_v62, %v144_v50  ;;  %v439_v12 = vmax.f32 %v303_v58, 0.0  ;;  %v441_v17 = vmax.f32 %v346_v2, 0.0  ;;  %v350_v18 = vadd.f32 %v349_v11, %v152_v53  ;;  %v615_v62 = vld [vmem:[#allocation8 + $0x4c8] sm:$0xff]  ;;  %v626_v2 = vld [vmem:[#allocation8 + $0x520] sm:$0xff] }
 0x162   :  { %v446_v7 = vmax.f32 %v305_v61, 0.0  ;;  %v448_v20 = vmax.f32 %v348_v10, 0.0  ;;  %v5152_v51 = vcombine.low %v598_v8, %v602_v14  ;;  %v5163_v58 = vcombine.high %v607_v31, %v611_v32  ;;  %v618_v61 = vld [vmem:[#allocation8 + $0x4e0] sm:$0xff]  ;;  %v623_v3 = vld [vmem:[#allocation8 + $0x508] sm:$0xff] }
 0x163   :  { %v447_v13 = vmax.f32 %v307_v1, 0.0  ;;  %v449_v22 = vmax.f32 %v350_v18, 0.0  ;;  %v5171_v0 = vcombine.high %v615_v62, %v619_v63  ;;  %v622_v1 = vld [vmem:[#allocation8 + $0x500] sm:$0xff]  ;;  %v631_v11 = vld [vmem:[#allocation8 + $0x548] sm:$0xff] }
 0x164   :  { %v6209_v19 = vpack.c.bf16 %v446_v7, %v438_v6  ;;  %v6213_v27 = vpack.c.bf16 %v448_v20, %v440_v9  ;;  %v5170_v6 = vcombine.low %v615_v62, %v619_v63  ;;  %v5177_v7 = vcombine.high %v622_v1, %v626_v2  ;;  %v630_v9 = vld [vmem:[#allocation8 + $0x540] sm:$0xff]  ;;  %v639_v20 = vld [vmem:[#allocation8 + $0x588] sm:$0xff] }
 0x165   :  { %v6211_v21 = vpack.c.bf16 %v447_v13, %v439_v12  ;;  %v386_v23 = vpop.f32.mrb[4].mxu0  ;;  %v6217_v33 = vpack.c.bf16 %v449_v22, %v441_v17  ;;  %v634_v10 = vld [vmem:[#allocation8 + $0x560] sm:$0xff]  ;;  %v635_v12 = vld [vmem:[#allocation8 + $0x568] sm:$0xff]  ;;  %v5176_v13 = vcombine.low %v622_v1, %v626_v2 }
 0x166   :  { %v387_v28 = vadd.f32 %v386_v23, %v156_v4  ;;  %v388_v29 = vpop.f32.mrb[5].mxu0  ;;  %v5185_v15 = vcombine.high %v630_v9, %v634_v10  ;;  %v5187_v16 = vcombine.high %v631_v11, %v635_v12  ;;  %v638_v17 = vld [vmem:[#allocation8 + $0x580] sm:$0xff]  ;;  %v643_v22 = vld [vmem:[#allocation8 + $0x5a8] sm:$0xff]  ;;  %v5184_v23 = vcombine.low %v630_v9, %v634_v10  ;;  %v429_v26 = vpop.f32.mrb[4].mxu1 }
 0x167   :  { %3608 = vmatprep.mubr.bf16.mxu0 %v6211_v21  ;;  %3780 = vmatprep.mubr.bf16.mxu1 %v6211_v21  ;;  %v389_v37 = vadd.f32 %v388_v29, %v160_v5  ;;  %v390_v41 = vpop.f32.mrb[6].mxu0  ;;  %v642_v18 = vld [vmem:[#allocation8 + $0x5a0] sm:$0xff]  ;;  %v5195_v30 = vcombine.high %v639_v20, %v643_v22  ;;  %v431_v32 = vpop.f32.mrb[5].mxu1  ;;  %v663_v10 = vld [vmem:[#allocation8 + $0x648] sm:$0xff] }
 0x168   :  { %3609 = vmatmul.mubr.bf16.vlgmr.msra.gmra.mrb[8].mxu0 %v6209_v19  ;;  %3781 = vmatmul.mubr.bf16.vlgmr.msra.gmra.mrb[8].mxu1 %v6209_v19  ;;  %v442_v42 = vmax.f32 %v387_v28, 0.0  ;;  %v391_v49 = vadd.f32 %v390_v41, %v156_v4  ;;  %v392_v50 = vpop.f32.mrb[7].mxu0  ;;  %v627_v4 = vld [vmem:[#allocation8 + $0x528] sm:$0xff]  ;;  %v167_v28 = vsub.s32 7, %v6181_v43  ;;  %v5193_v29 = vcombine.high %v638_v17, %v642_v18  ;;  %v646_v31 = vld [vmem:[#allocation8 + $0x5c0] sm:$0xff] }
 0x169   :  { %3620 = vmatpush1.bf16.msra.mxu0 %v5144_v39  ;;  %3792 = vmatpush1.bf16.msra.mxu1 %v5146_v40  ;;  %v443_v53 = vmax.f32 %v389_v37, 0.0  ;;  %v393_v56 = vadd.f32 %v392_v50, %v160_v5  ;;  %v5169_v40 = vcombine.high %v614_v59, %v618_v61  ;;  %v5168_v5 = vcombine.low %v614_v59, %v618_v61  ;;  %v650_v37 = vld [vmem:[#allocation8 + $0x5e0] sm:$0xff]  ;;  %v647_v41 = vld [vmem:[#allocation8 + $0x5c8] sm:$0xff] }
 0x16a   :  { %3621 = vmatprep.subr.bf16.mxu0 %v5153_v24  ;;  %3793 = vmatprep.subr.bf16.mxu1 %v5155_v25  ;;  %v450_v60 = vmax.f32 %v391_v49, 0.0  ;;  %v5179_v8 = vcombine.high %v623_v3, %v627_v4  ;;  %v5178_v14 = vcombine.low %v623_v3, %v627_v4  ;;  %v5186_v24 = vcombine.low %v631_v11, %v635_v12  ;;  %v654_v62 = vld [vmem:[#allocation8 + $0x600] sm:$0xff]  ;;  %v667_v11 = vld [vmem:[#allocation8 + $0x668] sm:$0xff] }
 0x16b   :  { %3651 = vmatprep.mubr.bf16.mxu0 %v6217_v33  ;;  %3823 = vmatprep.mubr.bf16.mxu1 %v6217_v33  ;;  %v451_v34 = vmax.f32 %v393_v56, 0.0  ;;  %v163_v25 = vsub.s32 6, %v6181_v43  ;;  %v168_v50 = vrot.slane %v6184_v45, %v167_v28  ;;  %v5200_v2 = vcombine.low %v646_v31, %v650_v37  ;;  %v666_v9 = vld [vmem:[#allocation8 + $0x660] sm:$0xff] }
 0x16c   :  { %v6229_v35 = vpack.c.bf16 %v450_v60, %v442_v42  ;;  %v651_v42 = vld [vmem:[#allocation8 + $0x5e8] sm:$0xff]  ;;  %v5201_v60 = vcombine.high %v646_v31, %v650_v37 }
 0x16d   :  { %3622 = vmatpush1.bf16.msra.mxu0 %v5152_v51  ;;  %3794 = vmatpush1.bf16.msra.mxu1 %v5154_v52  ;;  %v6231_v39 = vpack.c.bf16 %v451_v34, %v443_v53  ;;  %v164_v49 = vrot.slane %v6184_v45, %v163_v25  ;;  %v433_v51 = vpop.f32.mrb[6].mxu1  ;;  %v5192_v52 = vcombine.low %v638_v17, %v642_v18  ;;  %v658_v34 = vld [vmem:[#allocation8 + $0x620] sm:$0xff]  ;;  %v671_v18 = vld [vmem:[#allocation8 + $0x688] sm:$0xff] }
 0x16e   :  { %3623 = vmatprep.subr.bf16.mxu0 %v5161_v57  ;;  %3795 = vmatprep.subr.bf16.mxu1 %v5163_v58  ;;  %v5194_v53 = vcombine.low %v639_v20, %v643_v22  ;;  %v432_v57 = vadd.f32 %v431_v32, %v168_v50  ;;  %v435_v59 = vpop.f32.mrb[7].mxu1  ;;  %v5203_v61 = vcombine.high %v647_v41, %v651_v42  ;;  %v674_v17 = vld [vmem:[#allocation8 + $0x6a0] sm:$0xff]  ;;  %v675_v20 = vld [vmem:[#allocation8 + $0x6a8] sm:$0xff] }
 0x16f   :  { %v430_v56 = vadd.f32 %v429_v26, %v164_v49  ;;  %v434_v58 = vadd.f32 %v433_v51, %v164_v49  ;;  %v436_v63 = vadd.f32 %v435_v59, %v168_v50  ;;  %v5202_v3 = vcombine.low %v647_v41, %v651_v42  ;;  %v679_v31 = vld [vmem:[#allocation8 + $0x6c8] sm:$0xff]  ;;  %v686_v50 = vld [vmem:[#allocation8 + $0x700] sm:$0xff] }
 0x170   :  { %v445_v45 = vmax.f32 %v432_v57, 0.0  ;;  %v5208_v12 = vcombine.low %v654_v62, %v658_v34  ;;  %v5227_v26 = vcombine.high %v671_v18, %v675_v20  ;;  %v683_v32 = vld [vmem:[#allocation8 + $0x6e8] sm:$0xff]  ;;  %v5226_v41 = vcombine.low %v671_v18, %v675_v20  ;;  %v690_v51 = vld [vmem:[#allocation8 + $0x720] sm:$0xff] }
 0x171   :  { %3624 = vmatpush1.bf16.msra.mxu0 %v5160_v36  ;;  %3796 = vmatpush1.bf16.msra.mxu1 %v5162_v38  ;;  %v655_v36 = vld [vmem:[#allocation8 + $0x608] sm:$0xff]  ;;  %v453_v1 = vmax.f32 %v436_v63, 0.0  ;;  %v5235_v49 = vcombine.high %v679_v31, %v683_v32  ;;  %v5234_v57 = vcombine.low %v679_v31, %v683_v32  ;;  %v722_v18 = vld [vmem:[#allocation8 + $0x820] sm:$0xff] }
 0x172   :  { %3625 = vmatprep.subr.bf16.mxu0 %v5169_v40  ;;  %3797 = vmatprep.subr.bf16.mxu1 %v5171_v0  ;;  %v659_v38 = vld [vmem:[#allocation8 + $0x628] sm:$0xff]  ;;  %v444_v40 = vmax.f32 %v430_v56, 0.0  ;;  %v452_v0 = vmax.f32 %v434_v58, 0.0  ;;  %v5241_v58 = vcombine.high %v686_v50, %v690_v51  ;;  %v730_v31 = vld [vmem:[#allocation8 + $0x860] sm:$0xff] }
 0x173   :  { %v699_v63 = vld [vmem:[#allocation8 + $0x768] sm:$0xff] }
 0x174   :  { %v6241_v4 = vpack.c.bf16 %v452_v0, %v444_v40  ;;  %v706_v0 = vld [vmem:[#allocation8 + $0x7a0] sm:$0xff]  ;;  %v719_v20 = vld [vmem:[#allocation8 + $0x808] sm:$0xff] }
 0x175   :  { %3626 = vmatpush1.bf16.msra.mxu0 %v5168_v5  ;;  %3798 = vmatpush1.bf16.msra.mxu1 %v5170_v6  ;;  %v5209_v5 = vcombine.high %v654_v62, %v658_v34  ;;  %v5211_v6 = vcombine.high %v655_v36, %v659_v38  ;;  %v695_v62 = vld [vmem:[#allocation8 + $0x748] sm:$0xff]  ;;  %v5240_v34 = vcombine.low %v686_v50, %v690_v51  ;;  %v734_v51 = vld [vmem:[#allocation8 + $0x880] sm:$0xff] }
 0x176   :  { %3627 = vmatprep.subr.bf16.mxu0 %v5177_v7  ;;  %3799 = vmatprep.subr.bf16.mxu1 %v5179_v8  ;;  %v662_v7 = vld [vmem:[#allocation8 + $0x640] sm:$0xff]  ;;  %v6243_v8 = vpack.c.bf16 %v453_v1, %v445_v45  ;;  %v5251_v40 = vcombine.high %v695_v62, %v699_v63  ;;  %v703_v1 = vld [vmem:[#allocation8 + $0x788] sm:$0xff] }
 0x177   :  { %v5216_v22 = vcombine.low %v662_v7, %v666_v9  ;;  %v702_v45 = vld [vmem:[#allocation8 + $0x780] sm:$0xff]  ;;  %v727_v32 = vld [vmem:[#allocation8 + $0x848] sm:$0xff] }
 0x179   :  { %3628 = vmatpush1.bf16.msra.mxu0 %v5176_v13  ;;  %3800 = vmatpush1.bf16.msra.mxu1 %v5178_v14  ;;  %v5210_v13 = vcombine.low %v655_v36, %v659_v38  ;;  %v5217_v14 = vcombine.high %v662_v7, %v666_v9  ;;  %v710_v9 = vld [vmem:[#allocation8 + $0x7c0] sm:$0xff] }
 0x17a   :  { %3629 = vmatprep.subr.bf16.mxu0 %v5185_v15  ;;  %3801 = vmatprep.subr.bf16.mxu1 %v5187_v16  ;;  %v5219_v15 = vcombine.high %v663_v10, %v667_v11  ;;  %v670_v16 = vld [vmem:[#allocation8 + $0x680] sm:$0xff] }
 0x17b   :  { %v5224_v37 = vcombine.low %v670_v16, %v674_v17 }
 0x17d   :  { %3630 = vmatpush1.bf16.msra.mxu0 %v5184_v23  ;;  %3802 = vmatpush1.bf16.msra.mxu1 %v5186_v24  ;;  %v5218_v23 = vcombine.low %v663_v10, %v667_v11  ;;  %v5225_v24 = vcombine.high %v670_v16, %v674_v17  ;;  %v714_v10 = vld [vmem:[#allocation8 + $0x7e0] sm:$0xff]  ;;  %v711_v11 = vld [vmem:[#allocation8 + $0x7c8] sm:$0xff] }
 0x17e   :  { %3631 = vmatprep.subr.bf16.mxu0 %v5193_v29  ;;  %3803 = vmatprep.subr.bf16.mxu1 %v5195_v30  ;;  %v678_v29 = vld [vmem:[#allocation8 + $0x6c0] sm:$0xff] }
 0x17f   :  { %v682_v30 = vld [vmem:[#allocation8 + $0x6e0] sm:$0xff] }
 0x180   :  { %v5233_v42 = vcombine.high %v678_v29, %v682_v30  ;;  %v5232_v56 = vcombine.low %v678_v29, %v682_v30  ;;  %v718_v17 = vld [vmem:[#allocation8 + $0x800] sm:$0xff] }
 0x181   :  { %3632 = vmatpush1.bf16.msra.mxu0 %v5192_v52  ;;  %3804 = vmatpush1.bf16.msra.mxu1 %v5194_v53  ;;  %v687_v52 = vld [vmem:[#allocation8 + $0x708] sm:$0xff]  ;;  %v726_v30 = vld [vmem:[#allocation8 + $0x840] sm:$0xff] }
 0x182   :  { %3633 = vmatprep.subr.bf16.mxu0 %v5201_v60  ;;  %3805 = vmatprep.subr.bf16.mxu1 %v5203_v61  ;;  %v691_v53 = vld [vmem:[#allocation8 + $0x728] sm:$0xff]  ;;  %v694_v60 = vld [vmem:[#allocation8 + $0x740] sm:$0xff] }
 0x183   :  { %v5243_v59 = vcombine.high %v687_v52, %v691_v53  ;;  %v698_v61 = vld [vmem:[#allocation8 + $0x760] sm:$0xff]  ;;  %v5242_v36 = vcombine.low %v687_v52, %v691_v53  ;;  %v735_v53 = vld [vmem:[#allocation8 + $0x888] sm:$0xff] }
 0x184   :  { %v5249_v38 = vcombine.high %v694_v60, %v698_v61  ;;  %v738_v52 = vld [vmem:[#allocation8 + $0x8a0] sm:$0xff] }
 0x185   :  { %3634 = vmatpush1.bf16.msra.mxu0 %v5200_v2  ;;  %3806 = vmatpush1.bf16.msra.mxu1 %v5202_v3  ;;  %v707_v2 = vld [vmem:[#allocation8 + $0x7a8] sm:$0xff]  ;;  %v5248_v3 = vcombine.low %v694_v60, %v698_v61  ;;  %v742_v61 = vld [vmem:[#allocation8 + $0x8c0] sm:$0xff] }
 0x186   :  { %3635 = vmatprep.subr.bf16.mxu0 %v5209_v5  ;;  %3807 = vmatprep.subr.bf16.mxu1 %v5211_v6  ;;  %v5250_v5 = vcombine.low %v695_v62, %v699_v63  ;;  %v5257_v6 = vcombine.high %v702_v45, %v706_v0  ;;  %v5259_v7 = vcombine.high %v703_v1, %v707_v2  ;;  %v746_v62 = vld [vmem:[#allocation8 + $0x8e0] sm:$0xff]  ;;  %v743_v63 = vld [vmem:[#allocation8 + $0x8c8] sm:$0xff] }
 0x189   :  { %3636 = vmatpush1.bf16.msra.mxu0 %v5208_v12  ;;  %3808 = vmatpush1.bf16.msra.mxu1 %v5210_v13  ;;  %v715_v12 = vld [vmem:[#allocation8 + $0x7e8] sm:$0xff]  ;;  %v5256_v13 = vcombine.low %v702_v45, %v706_v0  ;;  %v750_v0 = vld [vmem:[#allocation8 + $0x900] sm:$0xff] }
 0x18a   :  { %3637 = vmatprep.subr.bf16.mxu0 %v5217_v14  ;;  %3809 = vmatprep.subr.bf16.mxu1 %v5219_v15  ;;  %v5258_v14 = vcombine.low %v703_v1, %v707_v2  ;;  %v5265_v15 = vcombine.high %v710_v9, %v714_v10  ;;  %v5267_v16 = vcombine.high %v711_v11, %v715_v12  ;;  %v754_v1 = vld [vmem:[#allocation8 + $0x920] sm:$0xff]  ;;  %v751_v2 = vld [vmem:[#allocation8 + $0x908] sm:$0xff] }
 0x18d   :  { %3638 = vmatpush1.bf16.msra.mxu0 %v5216_v22  ;;  %3810 = vmatpush1.bf16.msra.mxu1 %v5218_v23  ;;  %v723_v22 = vld [vmem:[#allocation8 + $0x828] sm:$0xff]  ;;  %v5264_v23 = vcombine.low %v710_v9, %v714_v10  ;;  %v758_v10 = vld [vmem:[#allocation8 + $0x940] sm:$0xff] }
 0x18e   :  { %3639 = vmatprep.subr.bf16.mxu0 %v5225_v24  ;;  %3811 = vmatprep.subr.bf16.mxu1 %v5227_v26  ;;  %v5266_v24 = vcombine.low %v711_v11, %v715_v12  ;;  %v5273_v26 = vcombine.high %v718_v17, %v722_v18  ;;  %v5275_v29 = vcombine.high %v719_v20, %v723_v22  ;;  %v762_v11 = vld [vmem:[#allocation8 + $0x960] sm:$0xff]  ;;  %v759_v12 = vld [vmem:[#allocation8 + $0x948] sm:$0xff] }
 0x191   :  { %3640 = vmatpush1.bf16.msra.mxu0 %v5224_v37  ;;  %3812 = vmatpush1.bf16.msra.mxu1 %v5226_v41  ;;  %v731_v37 = vld [vmem:[#allocation8 + $0x868] sm:$0xff]  ;;  %v5272_v41 = vcombine.low %v718_v17, %v722_v18  ;;  %v766_v18 = vld [vmem:[#allocation8 + $0x980] sm:$0xff] }
 0x192   :  { %3641 = vmatprep.subr.bf16.mxu0 %v5233_v42  ;;  %3813 = vmatprep.subr.bf16.mxu1 %v5235_v49  ;;  %v5274_v42 = vcombine.low %v719_v20, %v723_v22  ;;  %v5281_v49 = vcombine.high %v726_v30, %v730_v31  ;;  %v5283_v50 = vcombine.high %v727_v32, %v731_v37  ;;  %v770_v20 = vld [vmem:[#allocation8 + $0x9a0] sm:$0xff]  ;;  %v767_v22 = vld [vmem:[#allocation8 + $0x988] sm:$0xff] }
 0x195   :  { %3642 = vmatpush1.bf16.msra.mxu0 %v5232_v56  ;;  %3814 = vmatpush1.bf16.msra.mxu1 %v5234_v57  ;;  %v739_v56 = vld [vmem:[#allocation8 + $0x8a8] sm:$0xff]  ;;  %v5280_v57 = vcombine.low %v726_v30, %v730_v31  ;;  %v774_v31 = vld [vmem:[#allocation8 + $0x9c0] sm:$0xff] }
 0x196   :  { %3643 = vmatprep.subr.bf16.mxu0 %v5241_v58  ;;  %3815 = vmatprep.subr.bf16.mxu1 %v5243_v59  ;;  %v5282_v58 = vcombine.low %v727_v32, %v731_v37  ;;  %v5289_v59 = vcombine.high %v734_v51, %v738_v52  ;;  %v5291_v60 = vcombine.high %v735_v53, %v739_v56  ;;  %v778_v32 = vld [vmem:[#allocation8 + $0x9e0] sm:$0xff]  ;;  %v775_v37 = vld [vmem:[#allocation8 + $0x9c8] sm:$0xff] }
 0x199   :  { %3644 = vmatpush1.bf16.msra.mxu0 %v5240_v34  ;;  %3816 = vmatpush1.bf16.msra.mxu1 %v5242_v36  ;;  %v747_v34 = vld [vmem:[#allocation8 + $0x8e8] sm:$0xff]  ;;  %v5288_v36 = vcombine.low %v734_v51, %v738_v52  ;;  %v782_v52 = vld [vmem:[#allocation8 + $0xa00] sm:$0xff] }
 0x19a   :  { %3645 = vmatprep.subr.bf16.mxu0 %v5249_v38  ;;  %3817 = vmatprep.subr.bf16.mxu1 %v5251_v40  ;;  %v5290_v38 = vcombine.low %v735_v53, %v739_v56  ;;  %v5297_v40 = vcombine.high %v742_v61, %v746_v62  ;;  %v5299_v45 = vcombine.high %v743_v63, %v747_v34  ;;  %v786_v53 = vld [vmem:[#allocation8 + $0xa20] sm:$0xff]  ;;  %v783_v56 = vld [vmem:[#allocation8 + $0xa08] sm:$0xff] }
 0x19d   :  { %3646 = vmatpush1.bf16.msra.mxu0 %v5248_v3  ;;  %3818 = vmatpush1.bf16.msra.mxu1 %v5250_v5  ;;  %v755_v3 = vld [vmem:[#allocation8 + $0x928] sm:$0xff]  ;;  %v5296_v5 = vcombine.low %v742_v61, %v746_v62  ;;  %v790_v62 = vld [vmem:[#allocation8 + $0xa40] sm:$0xff] }
 0x19e   :  { %3647 = vmatprep.subr.bf16.mxu0 %v5257_v6  ;;  %3819 = vmatprep.subr.bf16.mxu1 %v5259_v7  ;;  %v5298_v6 = vcombine.low %v743_v63, %v747_v34  ;;  %v5305_v7 = vcombine.high %v750_v0, %v754_v1  ;;  %v5307_v9 = vcombine.high %v751_v2, %v755_v3  ;;  %v794_v63 = vld [vmem:[#allocation8 + $0xa60] sm:$0xff]  ;;  %v791_v34 = vld [vmem:[#allocation8 + $0xa48] sm:$0xff] }
 0x1a1   :  { %3648 = vmatpush1.bf16.msra.mxu0 %v5256_v13  ;;  %3820 = vmatpush1.bf16.msra.mxu1 %v5258_v14  ;;  %v763_v13 = vld [vmem:[#allocation8 + $0x968] sm:$0xff]  ;;  %v5304_v14 = vcombine.low %v750_v0, %v754_v1  ;;  %v798_v1 = vld [vmem:[#allocation8 + $0xa80] sm:$0xff] }
 0x1a2   :  { %3649 = vmatprep.subr.bf16.mxu0 %v5265_v15  ;;  %3821 = vmatprep.subr.bf16.mxu1 %v5267_v16  ;;  %v5306_v15 = vcombine.low %v751_v2, %v755_v3  ;;  %v5313_v16 = vcombine.high %v758_v10, %v762_v11  ;;  %v5315_v17 = vcombine.high %v759_v12, %v763_v13  ;;  %v802_v2 = vld [vmem:[#allocation8 + $0xaa0] sm:$0xff]  ;;  %v799_v3 = vld [vmem:[#allocation8 + $0xa88] sm:$0xff] }
 0x1a5   :  { %3650 = vmatpush1.bf16.msra.mxu0 %v5264_v23  ;;  %3822 = vmatpush1.bf16.msra.mxu1 %v5266_v24  ;;  %v771_v23 = vld [vmem:[#allocation8 + $0x9a8] sm:$0xff]  ;;  %v5312_v24 = vcombine.low %v758_v10, %v762_v11  ;;  %v806_v11 = vld [vmem:[#allocation8 + $0xac0] sm:$0xff] }
 0x1a6   :  { %3662 = vmatprep.subr.bf16.mxu0 %v5273_v26  ;;  %3834 = vmatprep.subr.bf16.mxu1 %v5275_v29  ;;  %v5314_v26 = vcombine.low %v759_v12, %v763_v13  ;;  %v5321_v29 = vcombine.high %v766_v18, %v770_v20  ;;  %v5323_v30 = vcombine.high %v767_v22, %v771_v23  ;;  %v810_v12 = vld [vmem:[#allocation8 + $0xae0] sm:$0xff]  ;;  %v807_v13 = vld [vmem:[#allocation8 + $0xac8] sm:$0xff] }
 0x1a8   :  { %3652 = vmatmul.mubr.bf16.vlgmr.msra.gmra.mrb[8].mxu0 %v6213_v27  ;;  %3824 = vmatmul.mubr.bf16.vlgmr.msra.gmra.mrb[8].mxu1 %v6213_v27 }
 0x1a9   :  { %3663 = vmatpush1.bf16.msra.mxu0 %v5272_v41  ;;  %3835 = vmatpush1.bf16.msra.mxu1 %v5274_v42  ;;  %v779_v41 = vld [vmem:[#allocation8 + $0x9e8] sm:$0xff]  ;;  %v5320_v42 = vcombine.low %v766_v18, %v770_v20  ;;  %v814_v20 = vld [vmem:[#allocation8 + $0xb00] sm:$0xff] }
 0x1aa   :  { %3664 = vmatprep.subr.bf16.mxu0 %v5281_v49  ;;  %3836 = vmatprep.subr.bf16.mxu1 %v5283_v50  ;;  %v5322_v49 = vcombine.low %v767_v22, %v771_v23  ;;  %v5329_v50 = vcombine.high %v774_v31, %v778_v32  ;;  %v5331_v51 = vcombine.high %v775_v37, %v779_v41  ;;  %v818_v22 = vld [vmem:[#allocation8 + $0xb20] sm:$0xff]  ;;  %v815_v23 = vld [vmem:[#allocation8 + $0xb08] sm:$0xff] }
 0x1ab   :  { %3694 = vmatprep.mubr.bf16.mxu0 %v6231_v39  ;;  %3866 = vmatprep.mubr.bf16.mxu1 %v6231_v39 }
 0x1ad   :  { %3665 = vmatpush1.bf16.msra.mxu0 %v5280_v57  ;;  %3837 = vmatpush1.bf16.msra.mxu1 %v5282_v58  ;;  %v787_v57 = vld [vmem:[#allocation8 + $0xa28] sm:$0xff]  ;;  %v5328_v58 = vcombine.low %v774_v31, %v778_v32  ;;  %v822_v32 = vld [vmem:[#allocation8 + $0xb40] sm:$0xff] }
 0x1ae   :  { %3666 = vmatprep.subr.bf16.mxu0 %v5289_v59  ;;  %3838 = vmatprep.subr.bf16.mxu1 %v5291_v60  ;;  %v5330_v59 = vcombine.low %v775_v37, %v779_v41  ;;  %v5337_v60 = vcombine.high %v782_v52, %v786_v53  ;;  %v5339_v61 = vcombine.high %v783_v56, %v787_v57  ;;  %v826_v37 = vld [vmem:[#allocation8 + $0xb60] sm:$0xff]  ;;  %v823_v41 = vld [vmem:[#allocation8 + $0xb48] sm:$0xff] }
 0x1b1   :  { %3667 = vmatpush1.bf16.msra.mxu0 %v5288_v36  ;;  %3839 = vmatpush1.bf16.msra.mxu1 %v5290_v38  ;;  %v795_v36 = vld [vmem:[#allocation8 + $0xa68] sm:$0xff]  ;;  %v5336_v38 = vcombine.low %v782_v52, %v786_v53  ;;  %v830_v53 = vld [vmem:[#allocation8 + $0xb80] sm:$0xff] }
 0x1b2   :  { %3668 = vmatprep.subr.bf16.mxu0 %v5297_v40  ;;  %3840 = vmatprep.subr.bf16.mxu1 %v5299_v45  ;;  %v5338_v40 = vcombine.low %v783_v56, %v787_v57  ;;  %v5345_v45 = vcombine.high %v790_v62, %v794_v63  ;;  %v5347_v0 = vcombine.high %v791_v34, %v795_v36  ;;  %v834_v56 = vld [vmem:[#allocation8 + $0xba0] sm:$0xff]  ;;  %v831_v57 = vld [vmem:[#allocation8 + $0xb88] sm:$0xff] }
 0x1b5   :  { %3669 = vmatpush1.bf16.msra.mxu0 %v5296_v5  ;;  %3841 = vmatpush1.bf16.msra.mxu1 %v5298_v6  ;;  %v803_v5 = vld [vmem:[#allocation8 + $0xaa8] sm:$0xff]  ;;  %v5344_v6 = vcombine.low %v790_v62, %v794_v63  ;;  %v838_v63 = vld [vmem:[#allocation8 + $0xbc0] sm:$0xff] }
 0x1b6   :  { %3670 = vmatprep.subr.bf16.mxu0 %v5305_v7  ;;  %3842 = vmatprep.subr.bf16.mxu1 %v5307_v9  ;;  %v5346_v7 = vcombine.low %v791_v34, %v795_v36  ;;  %v5353_v9 = vcombine.high %v798_v1, %v802_v2  ;;  %v5355_v10 = vcombine.high %v799_v3, %v803_v5  ;;  %v842_v34 = vld [vmem:[#allocation8 + $0xbe0] sm:$0xff]  ;;  %v839_v36 = vld [vmem:[#allocation8 + $0xbc8] sm:$0xff] }
 0x1b9   :  { %3671 = vmatpush1.bf16.msra.mxu0 %v5304_v14  ;;  %3843 = vmatpush1.bf16.msra.mxu1 %v5306_v15  ;;  %v811_v14 = vld [vmem:[#allocation8 + $0xae8] sm:$0xff]  ;;  %v5352_v15 = vcombine.low %v798_v1, %v802_v2  ;;  %v846_v2 = vld [vmem:[#allocation8 + $0xc00] sm:$0xff] }
 0x1ba   :  { %3672 = vmatprep.subr.bf16.mxu0 %v5313_v16  ;;  %3844 = vmatprep.subr.bf16.mxu1 %v5315_v17  ;;  %v5354_v16 = vcombine.low %v799_v3, %v803_v5  ;;  %v5361_v17 = vcombine.high %v806_v11, %v810_v12  ;;  %v5363_v18 = vcombine.high %v807_v13, %v811_v14  ;;  %v850_v3 = vld [vmem:[#allocation8 + $0xc20] sm:$0xff]  ;;  %v847_v5 = vld [vmem:[#allocation8 + $0xc08] sm:$0xff] }
 0x1bd   :  { %3673 = vmatpush1.bf16.msra.mxu0 %v5312_v24  ;;  %3845 = vmatpush1.bf16.msra.mxu1 %v5314_v26  ;;  %v819_v24 = vld [vmem:[#allocation8 + $0xb28] sm:$0xff]  ;;  %v5360_v26 = vcombine.low %v806_v11, %v810_v12  ;;  %v854_v12 = vld [vmem:[#allocation8 + $0xc40] sm:$0xff] }
 0x1be   :  { %3674 = vmatprep.subr.bf16.mxu0 %v5321_v29  ;;  %3846 = vmatprep.subr.bf16.mxu1 %v5323_v30  ;;  %v5362_v29 = vcombine.low %v807_v13, %v811_v14  ;;  %v5369_v30 = vcombine.high %v814_v20, %v818_v22  ;;  %v5371_v31 = vcombine.high %v815_v23, %v819_v24  ;;  %v858_v13 = vld [vmem:[#allocation8 + $0xc60] sm:$0xff]  ;;  %v855_v14 = vld [vmem:[#allocation8 + $0xc48] sm:$0xff] }
 0x1c1   :  { %3675 = vmatpush1.bf16.msra.mxu0 %v5320_v42  ;;  %3847 = vmatpush1.bf16.msra.mxu1 %v5322_v49  ;;  %v827_v42 = vld [vmem:[#allocation8 + $0xb68] sm:$0xff]  ;;  %v5368_v49 = vcombine.low %v814_v20, %v818_v22  ;;  %v862_v22 = vld [vmem:[#allocation8 + $0xc80] sm:$0xff] }
 0x1c2   :  { %3676 = vmatprep.subr.bf16.mxu0 %v5329_v50  ;;  %3848 = vmatprep.subr.bf16.mxu1 %v5331_v51  ;;  %v5370_v50 = vcombine.low %v815_v23, %v819_v24  ;;  %v5377_v51 = vcombine.high %v822_v32, %v826_v37  ;;  %v5379_v52 = vcombine.high %v823_v41, %v827_v42  ;;  %v866_v23 = vld [vmem:[#allocation8 + $0xca0] sm:$0xff]  ;;  %v863_v24 = vld [vmem:[#allocation8 + $0xc88] sm:$0xff] }
 0x1c5   :  { %3677 = vmatpush1.bf16.msra.mxu0 %v5328_v58  ;;  %3849 = vmatpush1.bf16.msra.mxu1 %v5330_v59  ;;  %v835_v58 = vld [vmem:[#allocation8 + $0xba8] sm:$0xff]  ;;  %v5376_v59 = vcombine.low %v822_v32, %v826_v37  ;;  %v870_v37 = vld [vmem:[#allocation8 + $0xcc0] sm:$0xff] }
 0x1c6   :  { %3678 = vmatprep.subr.bf16.mxu0 %v5337_v60  ;;  %3850 = vmatprep.subr.bf16.mxu1 %v5339_v61  ;;  %v5378_v60 = vcombine.low %v823_v41, %v827_v42  ;;  %v5385_v61 = vcombine.high %v830_v53, %v834_v56  ;;  %v5387_v62 = vcombine.high %v831_v57, %v835_v58  ;;  %v874_v41 = vld [vmem:[#allocation8 + $0xce0] sm:$0xff]  ;;  %v871_v42 = vld [vmem:[#allocation8 + $0xcc8] sm:$0xff] }
 0x1c9   :  { %3679 = vmatpush1.bf16.msra.mxu0 %v5336_v38  ;;  %3851 = vmatpush1.bf16.msra.mxu1 %v5338_v40  ;;  %v843_v38 = vld [vmem:[#allocation8 + $0xbe8] sm:$0xff]  ;;  %v5384_v40 = vcombine.low %v830_v53, %v834_v56  ;;  %v878_v56 = vld [vmem:[#allocation8 + $0xd00] sm:$0xff] }
 0x1ca   :  { %3680 = vmatprep.subr.bf16.mxu0 %v5345_v45  ;;  %3852 = vmatprep.subr.bf16.mxu1 %v5347_v0  ;;  %v5386_v45 = vcombine.low %v831_v57, %v835_v58  ;;  %v5393_v0 = vcombine.high %v838_v63, %v842_v34  ;;  %v5395_v1 = vcombine.high %v839_v36, %v843_v38  ;;  %v882_v57 = vld [vmem:[#allocation8 + $0xd20] sm:$0xff]  ;;  %v879_v58 = vld [vmem:[#allocation8 + $0xd08] sm:$0xff] }
 0x1cd   :  { %3681 = vmatpush1.bf16.msra.mxu0 %v5344_v6  ;;  %3853 = vmatpush1.bf16.msra.mxu1 %v5346_v7  ;;  %v851_v6 = vld [vmem:[#allocation8 + $0xc28] sm:$0xff]  ;;  %v5392_v7 = vcombine.low %v838_v63, %v842_v34  ;;  %v886_v34 = vld [vmem:[#allocation8 + $0xd40] sm:$0xff] }
 0x1ce   :  { %3682 = vmatprep.subr.bf16.mxu0 %v5353_v9  ;;  %3854 = vmatprep.subr.bf16.mxu1 %v5355_v10  ;;  %v5394_v9 = vcombine.low %v839_v36, %v843_v38  ;;  %v5401_v10 = vcombine.high %v846_v2, %v850_v3  ;;  %v5403_v11 = vcombine.high %v847_v5, %v851_v6  ;;  %v890_v36 = vld [vmem:[#allocation8 + $0xd60] sm:$0xff]  ;;  %v887_v38 = vld [vmem:[#allocation8 + $0xd48] sm:$0xff] }
 0x1d1   :  { %3683 = vmatpush1.bf16.msra.mxu0 %v5352_v15  ;;  %3855 = vmatpush1.bf16.msra.mxu1 %v5354_v16  ;;  %v859_v15 = vld [vmem:[#allocation8 + $0xc68] sm:$0xff]  ;;  %v5400_v16 = vcombine.low %v846_v2, %v850_v3  ;;  %v894_v3 = vld [vmem:[#allocation8 + $0xd80] sm:$0xff] }
 0x1d2   :  { %3684 = vmatprep.subr.bf16.mxu0 %v5361_v17  ;;  %3856 = vmatprep.subr.bf16.mxu1 %v5363_v18  ;;  %v5402_v17 = vcombine.low %v847_v5, %v851_v6  ;;  %v5409_v18 = vcombine.high %v854_v12, %v858_v13  ;;  %v5411_v20 = vcombine.high %v855_v14, %v859_v15  ;;  %v898_v5 = vld [vmem:[#allocation8 + $0xda0] sm:$0xff]  ;;  %v895_v6 = vld [vmem:[#allocation8 + $0xd88] sm:$0xff] }
 0x1d5   :  { %3685 = vmatpush1.bf16.msra.mxu0 %v5360_v26  ;;  %3857 = vmatpush1.bf16.msra.mxu1 %v5362_v29  ;;  %v867_v26 = vld [vmem:[#allocation8 + $0xca8] sm:$0xff]  ;;  %v5408_v29 = vcombine.low %v854_v12, %v858_v13  ;;  %v902_v13 = vld [vmem:[#allocation8 + $0xdc0] sm:$0xff] }
 0x1d6   :  { %3686 = vmatprep.subr.bf16.mxu0 %v5369_v30  ;;  %3858 = vmatprep.subr.bf16.mxu1 %v5371_v31  ;;  %v5410_v30 = vcombine.low %v855_v14, %v859_v15  ;;  %v5417_v31 = vcombine.high %v862_v22, %v866_v23  ;;  %v5419_v32 = vcombine.high %v863_v24, %v867_v26  ;;  %v906_v14 = vld [vmem:[#allocation8 + $0xde0] sm:$0xff]  ;;  %v903_v15 = vld [vmem:[#allocation8 + $0xdc8] sm:$0xff] }
 0x1d9   :  { %3687 = vmatpush1.bf16.msra.mxu0 %v5368_v49  ;;  %3859 = vmatpush1.bf16.msra.mxu1 %v5370_v50  ;;  %v875_v49 = vld [vmem:[#allocation8 + $0xce8] sm:$0xff]  ;;  %v5416_v50 = vcombine.low %v862_v22, %v866_v23  ;;  %v910_v23 = vld [vmem:[#allocation8 + $0xe00] sm:$0xff] }
 0x1da   :  { %3688 = vmatprep.subr.bf16.mxu0 %v5377_v51  ;;  %3860 = vmatprep.subr.bf16.mxu1 %v5379_v52  ;;  %v5418_v51 = vcombine.low %v863_v24, %v867_v26  ;;  %v5425_v52 = vcombine.high %v870_v37, %v874_v41  ;;  %v5427_v53 = vcombine.high %v871_v42, %v875_v49  ;;  %v914_v24 = vld [vmem:[#allocation8 + $0xe20] sm:$0xff]  ;;  %v911_v26 = vld [vmem:[#allocation8 + $0xe08] sm:$0xff] }
 0x1dd   :  { %3689 = vmatpush1.bf16.msra.mxu0 %v5376_v59  ;;  %3861 = vmatpush1.bf16.msra.mxu1 %v5378_v60  ;;  %v883_v59 = vld [vmem:[#allocation8 + $0xd28] sm:$0xff]  ;;  %v5424_v60 = vcombine.low %v870_v37, %v874_v41  ;;  %v918_v41 = vld [vmem:[#allocation8 + $0xe40] sm:$0xff] }
 0x1de   :  { %3690 = vmatprep.subr.bf16.mxu0 %v5385_v61  ;;  %3862 = vmatprep.subr.bf16.mxu1 %v5387_v62  ;;  %v5426_v61 = vcombine.low %v871_v42, %v875_v49  ;;  %v5433_v62 = vcombine.high %v878_v56, %v882_v57  ;;  %v5435_v63 = vcombine.high %v879_v58, %v883_v59  ;;  %v922_v42 = vld [vmem:[#allocation8 + $0xe60] sm:$0xff]  ;;  %v919_v49 = vld [vmem:[#allocation8 + $0xe48] sm:$0xff] }
 0x1e1   :  { %3691 = vmatpush1.bf16.msra.mxu0 %v5384_v40  ;;  %3863 = vmatpush1.bf16.msra.mxu1 %v5386_v45  ;;  %v891_v40 = vld [vmem:[#allocation8 + $0xd68] sm:$0xff]  ;;  %v5432_v45 = vcombine.low %v878_v56, %v882_v57  ;;  %v926_v57 = vld [vmem:[#allocation8 + $0xe80] sm:$0xff] }
 0x1e2   :  { %3692 = vmatprep.subr.bf16.mxu0 %v5393_v0  ;;  %3864 = vmatprep.subr.bf16.mxu1 %v5395_v1  ;;  %v5434_v0 = vcombine.low %v879_v58, %v883_v59  ;;  %v5441_v1 = vcombine.high %v886_v34, %v890_v36  ;;  %v5443_v2 = vcombine.high %v887_v38, %v891_v40  ;;  %v930_v58 = vld [vmem:[#allocation8 + $0xea0] sm:$0xff]  ;;  %v927_v59 = vld [vmem:[#allocation8 + $0xe88] sm:$0xff] }
 0x1e5   :  { %3693 = vmatpush1.bf16.msra.mxu0 %v5392_v7  ;;  %3865 = vmatpush1.bf16.msra.mxu1 %v5394_v9  ;;  %v899_v7 = vld [vmem:[#allocation8 + $0xda8] sm:$0xff]  ;;  %v5440_v9 = vcombine.low %v886_v34, %v890_v36  ;;  %v934_v36 = vld [vmem:[#allocation8 + $0xec0] sm:$0xff] }
 0x1e6   :  { %3705 = vmatprep.subr.bf16.mxu0 %v5401_v10  ;;  %3877 = vmatprep.subr.bf16.mxu1 %v5403_v11  ;;  %v5442_v10 = vcombine.low %v887_v38, %v891_v40  ;;  %v5449_v11 = vcombine.high %v894_v3, %v898_v5  ;;  %v5451_v12 = vcombine.high %v895_v6, %v899_v7  ;;  %v938_v38 = vld [vmem:[#allocation8 + $0xee0] sm:$0xff]  ;;  %v935_v40 = vld [vmem:[#allocation8 + $0xec8] sm:$0xff] }
 0x1e8   :  { %3695 = vmatmul.mubr.bf16.vlgmr.msra.gmra.mrb[8].mxu0 %v6229_v35  ;;  %3867 = vmatmul.mubr.bf16.vlgmr.msra.gmra.mrb[8].mxu1 %v6229_v35 }
 0x1e9   :  { %3706 = vmatpush1.bf16.msra.mxu0 %v5400_v16  ;;  %3878 = vmatpush1.bf16.msra.mxu1 %v5402_v17  ;;  %v907_v16 = vld [vmem:[#allocation8 + $0xde8] sm:$0xff]  ;;  %v5448_v17 = vcombine.low %v894_v3, %v898_v5  ;;  %v942_v5 = vld [vmem:[#allocation8 + $0xf00] sm:$0xff] }
 0x1ea   :  { %3707 = vmatprep.subr.bf16.mxu0 %v5409_v18  ;;  %3879 = vmatprep.subr.bf16.mxu1 %v5411_v20  ;;  %v5450_v18 = vcombine.low %v895_v6, %v899_v7  ;;  %v5457_v20 = vcombine.high %v902_v13, %v906_v14  ;;  %v5459_v22 = vcombine.high %v903_v15, %v907_v16  ;;  %v946_v6 = vld [vmem:[#allocation8 + $0xf20] sm:$0xff]  ;;  %v943_v7 = vld [vmem:[#allocation8 + $0xf08] sm:$0xff] }
 0x1eb   :  { %3737 = vmatprep.mubr.bf16.mxu0 %v6243_v8  ;;  %3909 = vmatprep.mubr.bf16.mxu1 %v6243_v8 }
 0x1ed   :  { %3708 = vmatpush1.bf16.msra.mxu0 %v5408_v29  ;;  %3880 = vmatpush1.bf16.msra.mxu1 %v5410_v30  ;;  %v915_v29 = vld [vmem:[#allocation8 + $0xe28] sm:$0xff]  ;;  %v5456_v30 = vcombine.low %v902_v13, %v906_v14  ;;  %v950_v14 = vld [vmem:[#allocation8 + $0xf40] sm:$0xff] }
 0x1ee   :  { %3709 = vmatprep.subr.bf16.mxu0 %v5417_v31  ;;  %3881 = vmatprep.subr.bf16.mxu1 %v5419_v32  ;;  %v5458_v31 = vcombine.low %v903_v15, %v907_v16  ;;  %v5465_v32 = vcombine.high %v910_v23, %v914_v24  ;;  %v5467_v37 = vcombine.high %v911_v26, %v915_v29  ;;  %v954_v15 = vld [vmem:[#allocation8 + $0xf60] sm:$0xff]  ;;  %v951_v16 = vld [vmem:[#allocation8 + $0xf48] sm:$0xff] }
 0x1f1   :  { %3710 = vmatpush1.bf16.msra.mxu0 %v5416_v50  ;;  %3882 = vmatpush1.bf16.msra.mxu1 %v5418_v51  ;;  %v923_v50 = vld [vmem:[#allocation8 + $0xe68] sm:$0xff]  ;;  %v5464_v51 = vcombine.low %v910_v23, %v914_v24  ;;  %v958_v24 = vld [vmem:[#allocation8 + $0xf80] sm:$0xff] }
 0x1f2   :  { %3711 = vmatprep.subr.bf16.mxu0 %v5425_v52  ;;  %3883 = vmatprep.subr.bf16.mxu1 %v5427_v53  ;;  %v5466_v52 = vcombine.low %v911_v26, %v915_v29  ;;  %v5473_v53 = vcombine.high %v918_v41, %v922_v42  ;;  %v5475_v56 = vcombine.high %v919_v49, %v923_v50  ;;  %v962_v26 = vld [vmem:[#allocation8 + $0xfa0] sm:$0xff]  ;;  %v959_v29 = vld [vmem:[#allocation8 + $0xf88] sm:$0xff] }
 0x1f5   :  { %3712 = vmatpush1.bf16.msra.mxu0 %v5424_v60  ;;  %3884 = vmatpush1.bf16.msra.mxu1 %v5426_v61  ;;  %v931_v60 = vld [vmem:[#allocation8 + $0xea8] sm:$0xff]  ;;  %v5472_v61 = vcombine.low %v918_v41, %v922_v42  ;;  %v966_v42 = vld [vmem:[#allocation8 + $0xfc0] sm:$0xff] }
 0x1f6   :  { %3713 = vmatprep.subr.bf16.mxu0 %v5433_v62  ;;  %3885 = vmatprep.subr.bf16.mxu1 %v5435_v63  ;;  %v5474_v62 = vcombine.low %v919_v49, %v923_v50  ;;  %v5481_v63 = vcombine.high %v926_v57, %v930_v58  ;;  %v5483_v34 = vcombine.high %v927_v59, %v931_v60  ;;  %v970_v49 = vld [vmem:[#allocation8 + $0xfe0] sm:$0xff]  ;;  %v967_v50 = vld [vmem:[#allocation8 + $0xfc8] sm:$0xff] }
 0x1f9   :  { %3714 = vmatpush1.bf16.msra.mxu0 %v5432_v45  ;;  %3886 = vmatpush1.bf16.msra.mxu1 %v5434_v0  ;;  %v939_v45 = vld [vmem:[#allocation8 + $0xee8] sm:$0xff]  ;;  %v5480_v0 = vcombine.low %v926_v57, %v930_v58  ;;  %v464_v58 = vld [vmem:[#allocation8 + $0x10] sm:$0xff] }
 0x1fa   :  { %3715 = vmatprep.subr.bf16.mxu0 %v5441_v1  ;;  %3887 = vmatprep.subr.bf16.mxu1 %v5443_v2  ;;  %v5482_v1 = vcombine.low %v927_v59, %v931_v60  ;;  %v5489_v2 = vcombine.high %v934_v36, %v938_v38  ;;  %v5491_v3 = vcombine.high %v935_v40, %v939_v45  ;;  %v468_v59 = vld [vmem:[#allocation8 + $0x30] sm:$0xff]  ;;  %v465_v60 = vld [vmem:[#allocation8 + $0x18] sm:$0xff] }
 0x1fd   :  { %3716 = vmatpush1.bf16.msra.mxu0 %v5440_v9  ;;  %3888 = vmatpush1.bf16.msra.mxu1 %v5442_v10  ;;  %v947_v9 = vld [vmem:[#allocation8 + $0xf28] sm:$0xff]  ;;  %v5488_v10 = vcombine.low %v934_v36, %v938_v38  ;;  %v472_v38 = vld [vmem:[#allocation8 + $0x50] sm:$0xff] }
 0x1fe   :  { %3717 = vmatprep.subr.bf16.mxu0 %v5449_v11  ;;  %3889 = vmatprep.subr.bf16.mxu1 %v5451_v12  ;;  %v5490_v11 = vcombine.low %v935_v40, %v939_v45  ;;  %v5497_v12 = vcombine.high %v942_v5, %v946_v6  ;;  %v5499_v13 = vcombine.high %v943_v7, %v947_v9  ;;  %v476_v40 = vld [vmem:[#allocation8 + $0x70] sm:$0xff]  ;;  %v473_v45 = vld [vmem:[#allocation8 + $0x58] sm:$0xff] }
 0x201   :  { %3718 = vmatpush1.bf16.msra.mxu0 %v5448_v17  ;;  %3890 = vmatpush1.bf16.msra.mxu1 %v5450_v18  ;;  %v955_v17 = vld [vmem:[#allocation8 + $0xf68] sm:$0xff]  ;;  %v5496_v18 = vcombine.low %v942_v5, %v946_v6  ;;  %v480_v6 = vld [vmem:[#allocation8 + $0x90] sm:$0xff] }
 0x202   :  { %3719 = vmatprep.subr.bf16.mxu0 %v5457_v20  ;;  %3891 = vmatprep.subr.bf16.mxu1 %v5459_v22  ;;  %v5498_v20 = vcombine.low %v943_v7, %v947_v9  ;;  %v5505_v22 = vcombine.high %v950_v14, %v954_v15  ;;  %v5507_v23 = vcombine.high %v951_v16, %v955_v17  ;;  %v484_v7 = vld [vmem:[#allocation8 + $0xb0] sm:$0xff]  ;;  %v481_v9 = vld [vmem:[#allocation8 + $0x98] sm:$0xff] }
 0x205   :  { %3720 = vmatpush1.bf16.msra.mxu0 %v5456_v30  ;;  %3892 = vmatpush1.bf16.msra.mxu1 %v5458_v31  ;;  %v963_v30 = vld [vmem:[#allocation8 + $0xfa8] sm:$0xff]  ;;  %v5504_v31 = vcombine.low %v950_v14, %v954_v15  ;;  %v488_v15 = vld [vmem:[#allocation8 + $0xd0] sm:$0xff] }
 0x206   :  { %3721 = vmatprep.subr.bf16.mxu0 %v5465_v32  ;;  %3893 = vmatprep.subr.bf16.mxu1 %v5467_v37  ;;  %v5506_v32 = vcombine.low %v951_v16, %v955_v17  ;;  %v5513_v37 = vcombine.high %v958_v24, %v962_v26  ;;  %v5515_v41 = vcombine.high %v959_v29, %v963_v30  ;;  %v492_v16 = vld [vmem:[#allocation8 + $0xf0] sm:$0xff]  ;;  %v489_v17 = vld [vmem:[#allocation8 + $0xd8] sm:$0xff] }
 0x209   :  { %3722 = vmatpush1.bf16.msra.mxu0 %v5464_v51  ;;  %3894 = vmatpush1.bf16.msra.mxu1 %v5466_v52  ;;  %v971_v51 = vld [vmem:[#allocation8 + $0xfe8] sm:$0xff]  ;;  %v5512_v52 = vcombine.low %v958_v24, %v962_v26  ;;  %v496_v26 = vld [vmem:[#allocation8 + $0x110] sm:$0xff] }
 0x20a   :  { %3723 = vmatprep.subr.bf16.mxu0 %v5473_v53  ;;  %3895 = vmatprep.subr.bf16.mxu1 %v5475_v56  ;;  %v5514_v53 = vcombine.low %v959_v29, %v963_v30  ;;  %v5521_v56 = vcombine.high %v966_v42, %v970_v49  ;;  %v5523_v57 = vcombine.high %v967_v50, %v971_v51  ;;  %v500_v29 = vld [vmem:[#allocation8 + $0x130] sm:$0xff]  ;;  %v501_v30 = vld [vmem:[#allocation8 + $0x138] sm:$0xff] }
 0x20d   :  { %3724 = vmatpush1.bf16.msra.mxu0 %v5472_v61  ;;  %3896 = vmatpush1.bf16.msra.mxu1 %v5474_v62  ;;  %v469_v61 = vld [vmem:[#allocation8 + $0x38] sm:$0xff]  ;;  %v5520_v62 = vcombine.low %v966_v42, %v970_v49  ;;  %v504_v42 = vld [vmem:[#allocation8 + $0x150] sm:$0xff] }
 0x20e   :  { %3725 = vmatprep.subr.bf16.mxu0 %v5481_v63  ;;  %3897 = vmatprep.subr.bf16.mxu1 %v5483_v34  ;;  %v5522_v63 = vcombine.low %v967_v50, %v971_v51  ;;  %v5021_v34 = vcombine.high %v464_v58, %v468_v59  ;;  %v5023_v36 = vcombine.high %v465_v60, %v469_v61  ;;  %v508_v49 = vld [vmem:[#allocation8 + $0x170] sm:$0xff]  ;;  %v505_v50 = vld [vmem:[#allocation8 + $0x158] sm:$0xff] }
 0x20f   :  { %v509_v51 = vld [vmem:[#allocation8 + $0x178] sm:$0xff] }
 0x211   :  { %3726 = vmatpush1.bf16.msra.mxu0 %v5480_v0  ;;  %3898 = vmatpush1.bf16.msra.mxu1 %v5482_v1  ;;  %v477_v0 = vld [vmem:[#allocation8 + $0x78] sm:$0xff]  ;;  %v5020_v1 = vcombine.low %v464_v58, %v468_v59  ;;  %v512_v58 = vld [vmem:[#allocation8 + $0x190] sm:$0xff] }
 0x212   :  { %3727 = vmatprep.subr.bf16.mxu0 %v5489_v2  ;;  %3899 = vmatprep.subr.bf16.mxu1 %v5491_v3  ;;  %v5022_v2 = vcombine.low %v465_v60, %v469_v61  ;;  %v5029_v3 = vcombine.high %v472_v38, %v476_v40  ;;  %v5031_v5 = vcombine.high %v473_v45, %v477_v0  ;;  %v516_v59 = vld [vmem:[#allocation8 + $0x1b0] sm:$0xff]  ;;  %v513_v60 = vld [vmem:[#allocation8 + $0x198] sm:$0xff] }
 0x213   :  { %v517_v61 = vld [vmem:[#allocation8 + $0x1b8] sm:$0xff] }
 0x215   :  { %3728 = vmatpush1.bf16.msra.mxu0 %v5488_v10  ;;  %3900 = vmatpush1.bf16.msra.mxu1 %v5490_v11  ;;  %v485_v10 = vld [vmem:[#allocation8 + $0xb8] sm:$0xff]  ;;  %v5028_v11 = vcombine.low %v472_v38, %v476_v40  ;;  %v520_v38 = vld [vmem:[#allocation8 + $0x1d0] sm:$0xff] }
 0x216   :  { %3729 = vmatprep.subr.bf16.mxu0 %v5497_v12  ;;  %3901 = vmatprep.subr.bf16.mxu1 %v5499_v13  ;;  %v5030_v12 = vcombine.low %v473_v45, %v477_v0  ;;  %v5037_v13 = vcombine.high %v480_v6, %v484_v7  ;;  %v5039_v14 = vcombine.high %v481_v9, %v485_v10  ;;  %v524_v40 = vld [vmem:[#allocation8 + $0x1f0] sm:$0xff]  ;;  %v521_v45 = vld [vmem:[#allocation8 + $0x1d8] sm:$0xff] }
 0x217   :  { %v525_v0 = vld [vmem:[#allocation8 + $0x1f8] sm:$0xff] }
 0x219   :  { %3730 = vmatpush1.bf16.msra.mxu0 %v5496_v18  ;;  %3902 = vmatpush1.bf16.msra.mxu1 %v5498_v20  ;;  %v493_v18 = vld [vmem:[#allocation8 + $0xf8] sm:$0xff]  ;;  %v5036_v20 = vcombine.low %v480_v6, %v484_v7  ;;  %v528_v6 = vld [vmem:[#allocation8 + $0x210] sm:$0xff] }
 0x21a   :  { %3731 = vmatprep.subr.bf16.mxu0 %v5505_v22  ;;  %3903 = vmatprep.subr.bf16.mxu1 %v5507_v23  ;;  %v5038_v22 = vcombine.low %v481_v9, %v485_v10  ;;  %v5045_v23 = vcombine.high %v488_v15, %v492_v16  ;;  %v5047_v24 = vcombine.high %v489_v17, %v493_v18  ;;  %v532_v7 = vld [vmem:[#allocation8 + $0x230] sm:$0xff]  ;;  %v529_v9 = vld [vmem:[#allocation8 + $0x218] sm:$0xff] }
 0x21b   :  { %v533_v10 = vld [vmem:[#allocation8 + $0x238] sm:$0xff] }
 0x21d   :  { %3732 = vmatpush1.bf16.msra.mxu0 %v5504_v31  ;;  %3904 = vmatpush1.bf16.msra.mxu1 %v5506_v32  ;;  %v5044_v31 = vcombine.low %v488_v15, %v492_v16  ;;  %v5046_v32 = vcombine.low %v489_v17, %v493_v18  ;;  %v536_v15 = vld [vmem:[#allocation8 + $0x250] sm:$0xff]  ;;  %v537_v17 = vld [vmem:[#allocation8 + $0x258] sm:$0xff] }
 0x21e   :  { %3733 = vmatprep.subr.bf16.mxu0 %v5513_v37  ;;  %3905 = vmatprep.subr.bf16.mxu1 %v5515_v41  ;;  %v5053_v37 = vcombine.high %v496_v26, %v500_v29  ;;  %v540_v16 = vld [vmem:[#allocation8 + $0x270] sm:$0xff]  ;;  %v541_v18 = vld [vmem:[#allocation8 + $0x278] sm:$0xff] }
 0x221   :  { %3734 = vmatpush1.bf16.msra.mxu0 %v5512_v52  ;;  %3906 = vmatpush1.bf16.msra.mxu1 %v5514_v53  ;;  %v5052_v52 = vcombine.low %v496_v26, %v500_v29  ;;  %v544_v26 = vld [vmem:[#allocation8 + $0x290] sm:$0xff] }
 0x222   :  { %3735 = vmatprep.subr.bf16.mxu0 %v5521_v56  ;;  %3907 = vmatprep.subr.bf16.mxu1 %v5523_v57  ;;  %v5061_v56 = vcombine.high %v504_v42, %v508_v49  ;;  %v5063_v57 = vcombine.high %v505_v50, %v509_v51  ;;  %v548_v29 = vld [vmem:[#allocation8 + $0x2b0] sm:$0xff] }
 0x225   :  { %3736 = vmatpush1.bf16.msra.mxu0 %v5520_v62  ;;  %3908 = vmatpush1.bf16.msra.mxu1 %v5522_v63  ;;  %v5060_v62 = vcombine.low %v504_v42, %v508_v49  ;;  %v5062_v63 = vcombine.low %v505_v50, %v509_v51  ;;  %v552_v42 = vld [vmem:[#allocation8 + $0x2d0] sm:$0xff]  ;;  %v553_v50 = vld [vmem:[#allocation8 + $0x2d8] sm:$0xff] }
 0x226   :  { %3920 = vmatprep.subr.bf16.mxu0 %v5021_v34  ;;  %4092 = vmatprep.subr.bf16.mxu1 %v5023_v36  ;;  %v5069_v34 = vcombine.high %v512_v58, %v516_v59  ;;  %v5071_v36 = vcombine.high %v513_v60, %v517_v61  ;;  %v556_v49 = vld [vmem:[#allocation8 + $0x2f0] sm:$0xff]  ;;  %v557_v51 = vld [vmem:[#allocation8 + $0x2f8] sm:$0xff] }
 0x228   :  { %3738 = vmatmul.mubr.bf16.vlgmr.msra.gmra.mrb[8].mxu0 %v6241_v4  ;;  %3910 = vmatmul.mubr.bf16.vlgmr.msra.gmra.mrb[8].mxu1 %v6241_v4 }
 0x229   :  { %3921 = vmatpush1.bf16.msra.mxu0 %v5020_v1  ;;  %3952 = vmatprep.mubr.bf16.mxu0 %v6211_v21  ;;  %v5068_v1 = vcombine.low %v512_v58, %v516_v59  ;;  %v560_v58 = vld [vmem:[#allocation8 + $0x310] sm:$0xff] }
 0x22a   :  { %4093 = vmatpush1.bf16.msra.mxu1 %v5022_v2  ;;  %4124 = vmatprep.mubr.bf16.mxu1 %v6211_v21  ;;  %v497_v21 = vld [vmem:[#allocation8 + $0x118] sm:$0xff]  ;;  %v5070_v2 = vcombine.low %v513_v60, %v517_v61  ;;  %v564_v59 = vld [vmem:[#allocation8 + $0x330] sm:$0xff] }
 0x22b   :  { %3922 = vmatprep.subr.bf16.mxu0 %v5029_v3  ;;  %4094 = vmatprep.subr.bf16.mxu1 %v5031_v5  ;;  %v5055_v41 = vcombine.high %v497_v21, %v501_v30  ;;  %v5054_v53 = vcombine.low %v497_v21, %v501_v30  ;;  %v5077_v3 = vcombine.high %v520_v38, %v524_v40  ;;  %v545_v21 = vld [vmem:[#allocation8 + $0x298] sm:$0xff] }
 0x22c   :  { %v5079_v5 = vcombine.high %v521_v45, %v525_v0  ;;  %v549_v30 = vld [vmem:[#allocation8 + $0x2b8] sm:$0xff] }
 0x22d   :  { %3923 = vmatpush1.bf16.msra.mxu0 %v5028_v11  ;;  %v5076_v11 = vcombine.low %v520_v38, %v524_v40  ;;  %v561_v60 = vld [vmem:[#allocation8 + $0x318] sm:$0xff]  ;;  %v568_v38 = vld [vmem:[#allocation8 + $0x350] sm:$0xff] }
 0x22e   :  { %4095 = vmatpush1.bf16.msra.mxu1 %v5030_v12  ;;  %3924 = vmatprep.subr.bf16.mxu0 %v5037_v13  ;;  %v5078_v12 = vcombine.low %v521_v45, %v525_v0  ;;  %v5085_v13 = vcombine.high %v528_v6, %v532_v7  ;;  %v565_v61 = vld [vmem:[#allocation8 + $0x338] sm:$0xff]  ;;  %v572_v40 = vld [vmem:[#allocation8 + $0x370] sm:$0xff] }
 0x22f   :  { %4096 = vmatprep.subr.bf16.mxu1 %v5039_v14  ;;  %v5087_v14 = vcombine.high %v529_v9, %v533_v10  ;;  %v569_v45 = vld [vmem:[#allocation8 + $0x358] sm:$0xff] }
 0x230   :  { %v573_v0 = vld [vmem:[#allocation8 + $0x378] sm:$0xff] }
 0x231   :  { %3925 = vmatpush1.bf16.msra.mxu0 %v5036_v20  ;;  %v5084_v20 = vcombine.low %v528_v6, %v532_v7  ;;  %v576_v6 = vld [vmem:[#allocation8 + $0x390] sm:$0xff] }
 0x232   :  { %4097 = vmatpush1.bf16.msra.mxu1 %v5038_v22  ;;  %3926 = vmatprep.subr.bf16.mxu0 %v5045_v23  ;;  %v5086_v22 = vcombine.low %v529_v9, %v533_v10  ;;  %v5093_v23 = vcombine.high %v536_v15, %v540_v16  ;;  %v580_v7 = vld [vmem:[#allocation8 + $0x3b0] sm:$0xff]  ;;  %v577_v9 = vld [vmem:[#allocation8 + $0x398] sm:$0xff] }
 0x233   :  { %4098 = vmatprep.subr.bf16.mxu1 %v5047_v24  ;;  %v5095_v24 = vcombine.high %v537_v17, %v541_v18  ;;  %v581_v10 = vld [vmem:[#allocation8 + $0x3b8] sm:$0xff] }
 0x235   :  { %3927 = vmatpush1.bf16.msra.mxu0 %v5044_v31  ;;  %v5092_v31 = vcombine.low %v536_v15, %v540_v16  ;;  %v584_v15 = vld [vmem:[#allocation8 + $0x3d0] sm:$0xff] }
 0x236   :  { %4099 = vmatpush1.bf16.msra.mxu1 %v5046_v32  ;;  %3928 = vmatprep.subr.bf16.mxu0 %v5053_v37  ;;  %v5094_v32 = vcombine.low %v537_v17, %v541_v18  ;;  %v5101_v37 = vcombine.high %v544_v26, %v548_v29  ;;  %v588_v16 = vld [vmem:[#allocation8 + $0x3f0] sm:$0xff]  ;;  %v585_v17 = vld [vmem:[#allocation8 + $0x3d8] sm:$0xff] }
 0x237   :  { %4100 = vmatprep.subr.bf16.mxu1 %v5055_v41  ;;  %v5103_v41 = vcombine.high %v545_v21, %v549_v30  ;;  %v589_v18 = vld [vmem:[#allocation8 + $0x3f8] sm:$0xff] }
 0x239   :  { %3929 = vmatpush1.bf16.msra.mxu0 %v5052_v52  ;;  %v5100_v52 = vcombine.low %v544_v26, %v548_v29  ;;  %v592_v26 = vld [vmem:[#allocation8 + $0x410] sm:$0xff] }
 0x23a   :  { %4101 = vmatpush1.bf16.msra.mxu1 %v5054_v53  ;;  %3930 = vmatprep.subr.bf16.mxu0 %v5061_v56  ;;  %v5102_v53 = vcombine.low %v545_v21, %v549_v30  ;;  %v5109_v56 = vcombine.high %v552_v42, %v556_v49  ;;  %v596_v29 = vld [vmem:[#allocation8 + $0x430] sm:$0xff]  ;;  %v593_v21 = vld [vmem:[#allocation8 + $0x418] sm:$0xff] }
 0x23b   :  { %4102 = vmatprep.subr.bf16.mxu1 %v5063_v57  ;;  %v5111_v57 = vcombine.high %v553_v50, %v557_v51  ;;  %v597_v30 = vld [vmem:[#allocation8 + $0x438] sm:$0xff] }
 0x23d   :  { %3931 = vmatpush1.bf16.msra.mxu0 %v5060_v62  ;;  %v5108_v62 = vcombine.low %v552_v42, %v556_v49  ;;  %v600_v42 = vld [vmem:[#allocation8 + $0x450] sm:$0xff] }
 0x23e   :  { %4103 = vmatpush1.bf16.msra.mxu1 %v5062_v63  ;;  %3932 = vmatprep.subr.bf16.mxu0 %v5069_v34  ;;  %v5110_v63 = vcombine.low %v553_v50, %v557_v51  ;;  %v5117_v34 = vcombine.high %v560_v58, %v564_v59  ;;  %v604_v49 = vld [vmem:[#allocation8 + $0x470] sm:$0xff]  ;;  %v5148_v50 = vcombine.low %v592_v26, %v596_v29  ;;  %v601_v51 = vld [vmem:[#allocation8 + $0x458] sm:$0xff] }
 0x23f   :  { %4104 = vmatprep.subr.bf16.mxu1 %v5071_v36  ;;  %v5119_v36 = vcombine.high %v561_v60, %v565_v61 }
 0x241   :  { %3933 = vmatpush1.bf16.msra.mxu0 %v5068_v1  ;;  %v5116_v1 = vcombine.low %v560_v58, %v564_v59  ;;  %v612_v58 = vld [vmem:[#allocation8 + $0x4b0] sm:$0xff] }
 0x242   :  { %4105 = vmatpush1.bf16.msra.mxu1 %v5070_v2  ;;  %3934 = vmatprep.subr.bf16.mxu0 %v5077_v3  ;;  %v5118_v2 = vcombine.low %v561_v60, %v565_v61  ;;  %v5125_v3 = vcombine.high %v568_v38, %v572_v40  ;;  %v609_v60 = vld [vmem:[#allocation8 + $0x498] sm:$0xff] }
 0x243   :  { %4106 = vmatprep.subr.bf16.mxu1 %v5079_v5  ;;  %v5127_v5 = vcombine.high %v569_v45, %v573_v0  ;;  %v613_v61 = vld [vmem:[#allocation8 + $0x4b8] sm:$0xff] }
 0x245   :  { %3935 = vmatpush1.bf16.msra.mxu0 %v5076_v11  ;;  %v5124_v11 = vcombine.low %v568_v38, %v572_v40  ;;  %v616_v38 = vld [vmem:[#allocation8 + $0x4d0] sm:$0xff] }
 0x246   :  { %4107 = vmatpush1.bf16.msra.mxu1 %v5078_v12  ;;  %3936 = vmatprep.subr.bf16.mxu0 %v5085_v13  ;;  %v5126_v12 = vcombine.low %v569_v45, %v573_v0  ;;  %v5133_v13 = vcombine.high %v576_v6, %v580_v7  ;;  %v620_v40 = vld [vmem:[#allocation8 + $0x4f0] sm:$0xff]  ;;  %v617_v45 = vld [vmem:[#allocation8 + $0x4d8] sm:$0xff] }
 0x247   :  { %4108 = vmatprep.subr.bf16.mxu1 %v5087_v14  ;;  %v5135_v14 = vcombine.high %v577_v9, %v581_v10  ;;  %v621_v0 = vld [vmem:[#allocation8 + $0x4f8] sm:$0xff] }
 0x249   :  { %3937 = vmatpush1.bf16.msra.mxu0 %v5084_v20  ;;  %v5132_v20 = vcombine.low %v576_v6, %v580_v7  ;;  %v628_v6 = vld [vmem:[#allocation8 + $0x530] sm:$0xff]  ;;  %v625_v7 = vld [vmem:[#allocation8 + $0x518] sm:$0xff] }
 0x24a   :  { %4109 = vmatpush1.bf16.msra.mxu1 %v5086_v22  ;;  %3938 = vmatprep.subr.bf16.mxu0 %v5093_v23  ;;  %v5134_v22 = vcombine.low %v577_v9, %v581_v10  ;;  %v5141_v23 = vcombine.high %v584_v15, %v588_v16  ;;  %v629_v9 = vld [vmem:[#allocation8 + $0x538] sm:$0xff]  ;;  %v5174_v10 = vcombine.low %v617_v45, %v621_v0 }
 0x24b   :  { %4110 = vmatprep.subr.bf16.mxu1 %v5095_v24  ;;  %v5143_v24 = vcombine.high %v585_v17, %v589_v18 }
 0x24d   :  { %3939 = vmatpush1.bf16.msra.mxu0 %v5092_v31  ;;  %v5140_v31 = vcombine.low %v584_v15, %v588_v16  ;;  %v633_v15 = vld [vmem:[#allocation8 + $0x558] sm:$0xff] }
 0x24e   :  { %4111 = vmatpush1.bf16.msra.mxu1 %v5094_v32  ;;  %3940 = vmatprep.subr.bf16.mxu0 %v5101_v37  ;;  %v5142_v32 = vcombine.low %v585_v17, %v589_v18  ;;  %v5149_v37 = vcombine.high %v592_v26, %v596_v29  ;;  %v637_v16 = vld [vmem:[#allocation8 + $0x578] sm:$0xff]  ;;  %v5182_v18 = vcombine.low %v625_v7, %v629_v9 }
 0x24f   :  { %4112 = vmatprep.subr.bf16.mxu1 %v5103_v41  ;;  %v5151_v41 = vcombine.high %v593_v21, %v597_v30  ;;  %v641_v26 = vld [vmem:[#allocation8 + $0x598] sm:$0xff] }
 0x250   :  { %v645_v29 = vld [vmem:[#allocation8 + $0x5b8] sm:$0xff] }
 0x251   :  { %3941 = vmatpush1.bf16.msra.mxu0 %v5100_v52  ;;  %v605_v52 = vld [vmem:[#allocation8 + $0x478] sm:$0xff] }
 0x252   :  { %4113 = vmatpush1.bf16.msra.mxu1 %v5102_v53  ;;  %3942 = vmatprep.subr.bf16.mxu0 %v5109_v56  ;;  %v5150_v53 = vcombine.low %v593_v21, %v597_v30  ;;  %v5157_v56 = vcombine.high %v600_v42, %v604_v49  ;;  %v5159_v59 = vcombine.high %v601_v51, %v605_v52 }
 0x253   :  { %4114 = vmatprep.subr.bf16.mxu1 %v5111_v57  ;;  %v608_v57 = vld [vmem:[#allocation8 + $0x490] sm:$0xff]  ;;  %v5190_v30 = vcombine.low %v633_v15, %v637_v16 }
 0x255   :  { %3943 = vmatpush1.bf16.msra.mxu0 %v5108_v62  ;;  %v5156_v62 = vcombine.low %v600_v42, %v604_v49  ;;  %v649_v42 = vld [vmem:[#allocation8 + $0x5d8] sm:$0xff] }
 0x256   :  { %4115 = vmatpush1.bf16.msra.mxu1 %v5110_v63  ;;  %3944 = vmatprep.subr.bf16.mxu0 %v5117_v34  ;;  %v5158_v63 = vcombine.low %v601_v51, %v605_v52  ;;  %v5165_v34 = vcombine.high %v608_v57, %v612_v58  ;;  %v653_v49 = vld [vmem:[#allocation8 + $0x5f8] sm:$0xff]  ;;  %v5198_v51 = vcombine.low %v641_v26, %v645_v29 }
 0x257   :  { %4116 = vmatprep.subr.bf16.mxu1 %v5119_v36  ;;  %v5167_v36 = vcombine.high %v609_v60, %v613_v61 }
 0x259   :  { %3945 = vmatpush1.bf16.msra.mxu0 %v5116_v1  ;;  %v5164_v1 = vcombine.low %v608_v57, %v612_v58  ;;  %v660_v57 = vld [vmem:[#allocation8 + $0x630] sm:$0xff]  ;;  %v657_v58 = vld [vmem:[#allocation8 + $0x618] sm:$0xff] }
 0x25a   :  { %4117 = vmatpush1.bf16.msra.mxu1 %v5118_v2  ;;  %3946 = vmatprep.subr.bf16.mxu0 %v5125_v3  ;;  %v5173_v2 = vcombine.high %v616_v38, %v620_v40  ;;  %v5175_v3 = vcombine.high %v617_v45, %v621_v0 }
 0x25b   :  { %4118 = vmatprep.subr.bf16.mxu1 %v5127_v5  ;;  %v624_v5 = vld [vmem:[#allocation8 + $0x510] sm:$0xff] }
 0x25c   :  { %v5180_v17 = vcombine.low %v624_v5, %v628_v6 }
 0x25d   :  { %3947 = vmatpush1.bf16.msra.mxu0 %v5124_v11  ;;  %v5181_v11 = vcombine.high %v624_v5, %v628_v6  ;;  %v673_v5 = vld [vmem:[#allocation8 + $0x698] sm:$0xff] }
 0x25e   :  { %4119 = vmatpush1.bf16.msra.mxu1 %v5126_v12  ;;  %3948 = vmatprep.subr.bf16.mxu0 %v5133_v13  ;;  %v5183_v12 = vcombine.high %v625_v7, %v629_v9  ;;  %v632_v13 = vld [vmem:[#allocation8 + $0x550] sm:$0xff]  ;;  %v677_v6 = vld [vmem:[#allocation8 + $0x6b8] sm:$0xff] }
 0x25f   :  { %4120 = vmatprep.subr.bf16.mxu1 %v5135_v14  ;;  %v636_v14 = vld [vmem:[#allocation8 + $0x570] sm:$0xff] }
 0x260   :  { %v5188_v21 = vcombine.low %v632_v13, %v636_v14 }
 0x261   :  { %3949 = vmatpush1.bf16.msra.mxu0 %v5132_v20  ;;  %v5189_v20 = vcombine.high %v632_v13, %v636_v14  ;;  %v681_v13 = vld [vmem:[#allocation8 + $0x6d8] sm:$0xff] }
 0x262   :  { %4121 = vmatpush1.bf16.msra.mxu1 %v5134_v22  ;;  %3950 = vmatprep.subr.bf16.mxu0 %v5141_v23  ;;  %v5191_v22 = vcombine.high %v633_v15, %v637_v16  ;;  %v640_v23 = vld [vmem:[#allocation8 + $0x590] sm:$0xff]  ;;  %v685_v14 = vld [vmem:[#allocation8 + $0x6f8] sm:$0xff]  ;;  %v5230_v16 = vcombine.low %v673_v5, %v677_v6 }
 0x263   :  { %4122 = vmatprep.subr.bf16.mxu1 %v5143_v24  ;;  %v644_v24 = vld [vmem:[#allocation8 + $0x5b0] sm:$0xff] }
 0x265   :  { %3951 = vmatpush1.bf16.msra.mxu0 %v5140_v31  ;;  %v5197_v31 = vcombine.high %v640_v23, %v644_v24 }
 0x266   :  { %4123 = vmatpush1.bf16.msra.mxu1 %v5142_v32  ;;  %3963 = vmatprep.subr.bf16.mxu0 %v5149_v37  ;;  %v5199_v32 = vcombine.high %v641_v26, %v645_v29  ;;  %v648_v37 = vld [vmem:[#allocation8 + $0x5d0] sm:$0xff]  ;;  %v5238_v29 = vcombine.low %v681_v13, %v685_v14 }
 0x267   :  { %4135 = vmatprep.subr.bf16.mxu1 %v5151_v41  ;;  %v652_v41 = vld [vmem:[#allocation8 + $0x5f0] sm:$0xff] }
 0x268   :  { %3953 = vmatmul.mubr.bf16.vlgmr.msra.gmra.mrb[12].mxu0 %v6209_v19  ;;  %v5205_v52 = vcombine.high %v648_v37, %v652_v41 }
 0x269   :  { %4125 = vmatmul.mubr.bf16.vlgmr.msra.gmra.mrb[12].mxu1 %v6209_v19  ;;  %3964 = vmatpush1.bf16.msra.mxu0 %v5148_v50  ;;  %v5166_v19 = vcombine.low %v609_v60, %v613_v61  ;;  %v5196_v50 = vcombine.low %v640_v23, %v644_v24  ;;  %v5204_v60 = vcombine.low %v648_v37, %v652_v41  ;;  %v689_v23 = vld [vmem:[#allocation8 + $0x718] sm:$0xff] }
 0x26a   :  { %3995 = vmatprep.mubr.bf16.mxu0 %v6217_v33  ;;  %4136 = vmatpush1.bf16.msra.mxu1 %v5150_v53  ;;  %v5207_v53 = vcombine.high %v649_v42, %v653_v49  ;;  %v5206_v61 = vcombine.low %v649_v42, %v653_v49  ;;  %v693_v24 = vld [vmem:[#allocation8 + $0x738] sm:$0xff] }
 0x26b   :  { %4167 = vmatprep.mubr.bf16.mxu1 %v6217_v33  ;;  %3965 = vmatprep.subr.bf16.mxu0 %v5157_v56  ;;  %v5172_v33 = vcombine.low %v616_v38, %v620_v40  ;;  %v656_v56 = vld [vmem:[#allocation8 + $0x610] sm:$0xff]  ;;  %v665_v38 = vld [vmem:[#allocation8 + $0x658] sm:$0xff]  ;;  %v5246_v49 = vcombine.low %v689_v23, %v693_v24 }
 0x26c   :  { %4137 = vmatprep.subr.bf16.mxu1 %v5159_v59  ;;  %v661_v59 = vld [vmem:[#allocation8 + $0x638] sm:$0xff]  ;;  %v5212_v45 = vcombine.low %v656_v56, %v660_v57 }
 0x26d   :  { %3966 = vmatpush1.bf16.msra.mxu0 %v5156_v62  ;;  %v5213_v62 = vcombine.high %v656_v56, %v660_v57  ;;  %v669_v40 = vld [vmem:[#allocation8 + $0x678] sm:$0xff]  ;;  %v5214_v0 = vcombine.low %v657_v58, %v661_v59 }
 0x26e   :  { %4138 = vmatpush1.bf16.msra.mxu1 %v5158_v63  ;;  %3967 = vmatprep.subr.bf16.mxu0 %v5165_v34  ;;  %v5215_v63 = vcombine.high %v657_v58, %v661_v59  ;;  %v664_v34 = vld [vmem:[#allocation8 + $0x650] sm:$0xff]  ;;  %v5222_v9 = vcombine.low %v665_v38, %v669_v40  ;;  %v697_v37 = vld [vmem:[#allocation8 + $0x758] sm:$0xff] }
 0x26f   :  { %4139 = vmatprep.subr.bf16.mxu1 %v5167_v36  ;;  %v668_v36 = vld [vmem:[#allocation8 + $0x670] sm:$0xff]  ;;  %v701_v41 = vld [vmem:[#allocation8 + $0x778] sm:$0xff] }
 0x270   :  { %v5220_v7 = vcombine.low %v664_v34, %v668_v36  ;;  %v705_v56 = vld [vmem:[#allocation8 + $0x798] sm:$0xff]  ;;  %v5254_v59 = vcombine.low %v697_v37, %v701_v41 }
 0x271   :  { %3968 = vmatpush1.bf16.msra.mxu0 %v5164_v1  ;;  %v5221_v1 = vcombine.high %v664_v34, %v668_v36  ;;  %v709_v57 = vld [vmem:[#allocation8 + $0x7b8] sm:$0xff] }
 0x272   :  { %4140 = vmatpush1.bf16.msra.mxu1 %v5166_v19  ;;  %3969 = vmatprep.subr.bf16.mxu0 %v5173_v2  ;;  %v5223_v19 = vcombine.high %v665_v38, %v669_v40  ;;  %v672_v2 = vld [vmem:[#allocation8 + $0x690] sm:$0xff]  ;;  %v713_v34 = vld [vmem:[#allocation8 + $0x7d8] sm:$0xff]  ;;  %v5262_v40 = vcombine.low %v705_v56, %v709_v57 }
 0x273   :  { %4141 = vmatprep.subr.bf16.mxu1 %v5175_v3  ;;  %v676_v3 = vld [vmem:[#allocation8 + $0x6b0] sm:$0xff]  ;;  %v717_v36 = vld [vmem:[#allocation8 + $0x7f8] sm:$0xff] }
 0x274   :  { %v5228_v15 = vcombine.low %v672_v2, %v676_v3 }
 0x275   :  { %3970 = vmatpush1.bf16.msra.mxu0 %v5172_v33  ;;  %v5229_v33 = vcombine.high %v672_v2, %v676_v3  ;;  %v721_v2 = vld [vmem:[#allocation8 + $0x818] sm:$0xff] }
 0x276   :  { %4142 = vmatpush1.bf16.msra.mxu1 %v5174_v10  ;;  %3971 = vmatprep.subr.bf16.mxu0 %v5181_v11  ;;  %v5231_v10 = vcombine.high %v673_v5, %v677_v6  ;;  %v680_v11 = vld [vmem:[#allocation8 + $0x6d0] sm:$0xff]  ;;  %v725_v3 = vld [vmem:[#allocation8 + $0x838] sm:$0xff]  ;;  %v5270_v6 = vcombine.low %v713_v34, %v717_v36 }
 0x277   :  { %4143 = vmatprep.subr.bf16.mxu1 %v5183_v12  ;;  %v684_v12 = vld [vmem:[#allocation8 + $0x6f0] sm:$0xff] }
 0x278   :  { %v5236_v26 = vcombine.low %v680_v11, %v684_v12 }
 0x279   :  { %3972 = vmatpush1.bf16.msra.mxu0 %v5180_v17  ;;  %v5237_v17 = vcombine.high %v680_v11, %v684_v12  ;;  %v729_v12 = vld [vmem:[#allocation8 + $0x858] sm:$0xff] }
 0x27a   :  { %4144 = vmatpush1.bf16.msra.mxu1 %v5182_v18  ;;  %3973 = vmatprep.subr.bf16.mxu0 %v5189_v20  ;;  %v5239_v18 = vcombine.high %v681_v13, %v685_v14  ;;  %v688_v20 = vld [vmem:[#allocation8 + $0x710] sm:$0xff]  ;;  %v733_v13 = vld [vmem:[#allocation8 + $0x878] sm:$0xff]  ;;  %v5278_v14 = vcombine.low %v721_v2, %v725_v3 }
 0x27b   :  { %4145 = vmatprep.subr.bf16.mxu1 %v5191_v22  ;;  %v692_v22 = vld [vmem:[#allocation8 + $0x730] sm:$0xff] }
 0x27c   :  { %v5244_v42 = vcombine.low %v688_v20, %v692_v22 }
 0x27d   :  { %3974 = vmatpush1.bf16.msra.mxu0 %v5188_v21  ;;  %v5245_v21 = vcombine.high %v688_v20, %v692_v22  ;;  %v737_v20 = vld [vmem:[#allocation8 + $0x898] sm:$0xff] }
 0x27e   :  { %4146 = vmatpush1.bf16.msra.mxu1 %v5190_v30  ;;  %3975 = vmatprep.subr.bf16.mxu0 %v5197_v31  ;;  %v5247_v30 = vcombine.high %v689_v23, %v693_v24  ;;  %v696_v31 = vld [vmem:[#allocation8 + $0x750] sm:$0xff]  ;;  %v741_v22 = vld [vmem:[#allocation8 + $0x8b8] sm:$0xff]  ;;  %v5286_v24 = vcombine.low %v729_v12, %v733_v13 }
 0x27f   :  { %4147 = vmatprep.subr.bf16.mxu1 %v5199_v32  ;;  %v700_v32 = vld [vmem:[#allocation8 + $0x770] sm:$0xff] }
 0x280   :  { %v5252_v58 = vcombine.low %v696_v31, %v700_v32 }
 0x281   :  { %3976 = vmatpush1.bf16.msra.mxu0 %v5196_v50  ;;  %v5253_v50 = vcombine.high %v696_v31, %v700_v32  ;;  %v745_v31 = vld [vmem:[#allocation8 + $0x8d8] sm:$0xff] }
 0x282   :  { %4148 = vmatpush1.bf16.msra.mxu1 %v5198_v51  ;;  %3977 = vmatprep.subr.bf16.mxu0 %v5205_v52  ;;  %v5255_v51 = vcombine.high %v697_v37, %v701_v41  ;;  %v704_v52 = vld [vmem:[#allocation8 + $0x790] sm:$0xff]  ;;  %v749_v32 = vld [vmem:[#allocation8 + $0x8f8] sm:$0xff] }
 0x283   :  { %4149 = vmatprep.subr.bf16.mxu1 %v5207_v53  ;;  %v708_v53 = vld [vmem:[#allocation8 + $0x7b0] sm:$0xff] }
 0x284   :  { %v5260_v38 = vcombine.low %v704_v52, %v708_v53 }
 0x285   :  { %3978 = vmatpush1.bf16.msra.mxu0 %v5204_v60  ;;  %v5261_v60 = vcombine.high %v704_v52, %v708_v53  ;;  %v757_v52 = vld [vmem:[#allocation8 + $0x938] sm:$0xff]  ;;  %v5302_v53 = vcombine.low %v745_v31, %v749_v32 }
 0x286   :  { %4150 = vmatpush1.bf16.msra.mxu1 %v5206_v61  ;;  %3979 = vmatprep.subr.bf16.mxu0 %v5213_v62  ;;  %v5263_v61 = vcombine.high %v705_v56, %v709_v57  ;;  %v712_v62 = vld [vmem:[#allocation8 + $0x7d0] sm:$0xff] }
 0x287   :  { %4151 = vmatprep.subr.bf16.mxu1 %v5215_v63  ;;  %v716_v63 = vld [vmem:[#allocation8 + $0x7f0] sm:$0xff] }
 0x288   :  { %v5268_v5 = vcombine.low %v712_v62, %v716_v63 }
 0x289   :  { %3980 = vmatpush1.bf16.msra.mxu0 %v5212_v45  ;;  %v5269_v45 = vcombine.high %v712_v62, %v716_v63 }
 0x28a   :  { %4152 = vmatpush1.bf16.msra.mxu1 %v5214_v0  ;;  %3981 = vmatprep.subr.bf16.mxu0 %v5221_v1  ;;  %v5271_v0 = vcombine.high %v713_v34, %v717_v36  ;;  %v720_v1 = vld [vmem:[#allocation8 + $0x810] sm:$0xff] }
 0x28b   :  { %4153 = vmatprep.subr.bf16.mxu1 %v5223_v19  ;;  %v724_v19 = vld [vmem:[#allocation8 + $0x830] sm:$0xff] }
 0x28c   :  { %v5276_v11 = vcombine.low %v720_v1, %v724_v19 }
 0x28d   :  { %3982 = vmatpush1.bf16.msra.mxu0 %v5220_v7  ;;  %v5277_v7 = vcombine.high %v720_v1, %v724_v19 }
 0x28e   :  { %4154 = vmatpush1.bf16.msra.mxu1 %v5222_v9  ;;  %3983 = vmatprep.subr.bf16.mxu0 %v5229_v33  ;;  %v5279_v9 = vcombine.high %v721_v2, %v725_v3  ;;  %v728_v33 = vld [vmem:[#allocation8 + $0x850] sm:$0xff] }
 0x28f   :  { %4155 = vmatprep.subr.bf16.mxu1 %v5231_v10  ;;  %v732_v10 = vld [vmem:[#allocation8 + $0x870] sm:$0xff] }
 0x290   :  { %v5284_v23 = vcombine.low %v728_v33, %v732_v10 }
 0x291   :  { %3984 = vmatpush1.bf16.msra.mxu0 %v5228_v15  ;;  %v5285_v15 = vcombine.high %v728_v33, %v732_v10 }
 0x292   :  { %4156 = vmatpush1.bf16.msra.mxu1 %v5230_v16  ;;  %3985 = vmatprep.subr.bf16.mxu0 %v5237_v17  ;;  %v736_v16 = vld [vmem:[#allocation8 + $0x890] sm:$0xff] }
 0x293   :  { %4157 = vmatprep.subr.bf16.mxu1 %v5239_v18  ;;  %v740_v17 = vld [vmem:[#allocation8 + $0x8b0] sm:$0xff]  ;;  %v5287_v18 = vcombine.high %v729_v12, %v733_v13 }
 0x294   :  { %v5292_v37 = vcombine.low %v736_v16, %v740_v17  ;;  %v784_v13 = vld [vmem:[#allocation8 + $0xa10] sm:$0xff] }
 0x295   :  { %3986 = vmatpush1.bf16.msra.mxu0 %v5236_v26  ;;  %v5293_v26 = vcombine.high %v736_v16, %v740_v17  ;;  %v789_v16 = vld [vmem:[#allocation8 + $0xa38] sm:$0xff] }
 0x296   :  { %4158 = vmatpush1.bf16.msra.mxu1 %v5238_v29  ;;  %3987 = vmatprep.subr.bf16.mxu0 %v5245_v21  ;;  %v5295_v29 = vcombine.high %v737_v20, %v741_v22  ;;  %v744_v21 = vld [vmem:[#allocation8 + $0x8d0] sm:$0xff] }
 0x297   :  { %4159 = vmatprep.subr.bf16.mxu1 %v5247_v30  ;;  %v748_v30 = vld [vmem:[#allocation8 + $0x8f0] sm:$0xff] }
 0x298   :  { %v5301_v41 = vcombine.high %v744_v21, %v748_v30 }
 0x299   :  { %3988 = vmatpush1.bf16.msra.mxu0 %v5244_v42  ;;  %v5303_v42 = vcombine.high %v745_v31, %v749_v32 }
 0x29a   :  { %4160 = vmatpush1.bf16.msra.mxu1 %v5246_v49  ;;  %3989 = vmatprep.subr.bf16.mxu0 %v5253_v50  ;;  %v752_v49 = vld [vmem:[#allocation8 + $0x910] sm:$0xff] }
 0x29b   :  { %4161 = vmatprep.subr.bf16.mxu1 %v5255_v51  ;;  %v756_v50 = vld [vmem:[#allocation8 + $0x930] sm:$0xff]  ;;  %v753_v51 = vld [vmem:[#allocation8 + $0x918] sm:$0xff] }
 0x29c   :  { %v5309_v56 = vcombine.high %v752_v49, %v756_v50  ;;  %v5311_v57 = vcombine.high %v753_v51, %v757_v52  ;;  %v5308_v62 = vcombine.low %v752_v49, %v756_v50  ;;  %v5310_v63 = vcombine.low %v753_v51, %v757_v52 }
 0x29d   :  { %3990 = vmatpush1.bf16.msra.mxu0 %v5252_v58  ;;  %v760_v58 = vld [vmem:[#allocation8 + $0x950] sm:$0xff] }
 0x29e   :  { %4162 = vmatpush1.bf16.msra.mxu1 %v5254_v59  ;;  %3991 = vmatprep.subr.bf16.mxu0 %v5261_v60  ;;  %v764_v59 = vld [vmem:[#allocation8 + $0x970] sm:$0xff]  ;;  %v761_v60 = vld [vmem:[#allocation8 + $0x958] sm:$0xff] }
 0x29f   :  { %4163 = vmatprep.subr.bf16.mxu1 %v5263_v61  ;;  %v765_v61 = vld [vmem:[#allocation8 + $0x978] sm:$0xff]  ;;  %v5317_v34 = vcombine.high %v760_v58, %v764_v59  ;;  %v5316_v1 = vcombine.low %v760_v58, %v764_v59 }
 0x2a0   :  { %v5319_v36 = vcombine.high %v761_v60, %v765_v61  ;;  %v5318_v19 = vcombine.low %v761_v60, %v765_v61 }
 0x2a1   :  { %3992 = vmatpush1.bf16.msra.mxu0 %v5260_v38  ;;  %v768_v38 = vld [vmem:[#allocation8 + $0x990] sm:$0xff] }
 0x2a2   :  { %4164 = vmatpush1.bf16.msra.mxu1 %v5262_v40  ;;  %3993 = vmatprep.subr.bf16.mxu0 %v5269_v45  ;;  %v772_v40 = vld [vmem:[#allocation8 + $0x9b0] sm:$0xff]  ;;  %v769_v45 = vld [vmem:[#allocation8 + $0x998] sm:$0xff] }
 0x2a3   :  { %4165 = vmatprep.subr.bf16.mxu1 %v5271_v0  ;;  %v773_v0 = vld [vmem:[#allocation8 + $0x9b8] sm:$0xff]  ;;  %v5325_v2 = vcombine.high %v768_v38, %v772_v40  ;;  %v5324_v33 = vcombine.low %v768_v38, %v772_v40 }
 0x2a4   :  { %v5327_v3 = vcombine.high %v769_v45, %v773_v0  ;;  %v5326_v10 = vcombine.low %v769_v45, %v773_v0 }
 0x2a5   :  { %3994 = vmatpush1.bf16.msra.mxu0 %v5268_v5  ;;  %v776_v5 = vld [vmem:[#allocation8 + $0x9d0] sm:$0xff] }
 0x2a6   :  { %4166 = vmatpush1.bf16.msra.mxu1 %v5270_v6  ;;  %4006 = vmatprep.subr.bf16.mxu0 %v5277_v7  ;;  %v780_v6 = vld [vmem:[#allocation8 + $0x9f0] sm:$0xff]  ;;  %v777_v7 = vld [vmem:[#allocation8 + $0x9d8] sm:$0xff] }
 0x2a7   :  { %4178 = vmatprep.subr.bf16.mxu1 %v5279_v9  ;;  %v781_v9 = vld [vmem:[#allocation8 + $0x9f8] sm:$0xff]  ;;  %v5332_v17 = vcombine.low %v776_v5, %v780_v6 }
 0x2a8   :  { %3996 = vmatmul.mubr.bf16.vlgmr.msra.gmra.mrb[12].mxu0 %v6213_v27  ;;  %v5335_v12 = vcombine.high %v777_v7, %v781_v9 }
 0x2a9   :  { %4168 = vmatmul.mubr.bf16.vlgmr.msra.gmra.mrb[12].mxu1 %v6213_v27  ;;  %4007 = vmatpush1.bf16.msra.mxu0 %v5276_v11  ;;  %v5294_v27 = vcombine.low %v737_v20, %v741_v22  ;;  %v5333_v11 = vcombine.high %v776_v5, %v780_v6 }
 0x2aa   :  { %4038 = vmatprep.mubr.bf16.mxu0 %v6231_v39  ;;  %4179 = vmatpush1.bf16.msra.mxu1 %v5278_v14  ;;  %v788_v14 = vld [vmem:[#allocation8 + $0xa30] sm:$0xff] }
 0x2ab   :  { %4210 = vmatprep.mubr.bf16.mxu1 %v6231_v39  ;;  %4008 = vmatprep.subr.bf16.mxu0 %v5285_v15  ;;  %v5300_v39 = vcombine.low %v744_v21, %v748_v30  ;;  %v785_v15 = vld [vmem:[#allocation8 + $0xa18] sm:$0xff]  ;;  %v5341_v20 = vcombine.high %v784_v13, %v788_v14  ;;  %v5340_v21 = vcombine.low %v784_v13, %v788_v14 }
 0x2ac   :  { %4180 = vmatprep.subr.bf16.mxu1 %v5287_v18  ;;  %v5334_v18 = vcombine.low %v777_v7, %v781_v9  ;;  %v5343_v22 = vcombine.high %v785_v15, %v789_v16  ;;  %v5342_v30 = vcombine.low %v785_v15, %v789_v16 }
 0x2ad   :  { %4009 = vmatpush1.bf16.msra.mxu0 %v5284_v23  ;;  %v792_v23 = vld [vmem:[#allocation8 + $0xa50] sm:$0xff] }
 0x2ae   :  { %4181 = vmatpush1.bf16.msra.mxu1 %v5286_v24  ;;  %4010 = vmatprep.subr.bf16.mxu0 %v5293_v26  ;;  %v796_v24 = vld [vmem:[#allocation8 + $0xa70] sm:$0xff]  ;;  %v793_v26 = vld [vmem:[#allocation8 + $0xa58] sm:$0xff] }
 0x2af   :  { %4182 = vmatprep.subr.bf16.mxu1 %v5295_v29  ;;  %v797_v29 = vld [vmem:[#allocation8 + $0xa78] sm:$0xff]  ;;  %v5349_v31 = vcombine.high %v792_v23, %v796_v24  ;;  %v5348_v49 = vcombine.low %v792_v23, %v796_v24 }
 0x2b0   :  { %v5351_v32 = vcombine.high %v793_v26, %v797_v29  ;;  %v5350_v50 = vcombine.low %v793_v26, %v797_v29 }
 0x2b1   :  { %4011 = vmatpush1.bf16.msra.mxu0 %v5292_v37  ;;  %v800_v37 = vld [vmem:[#allocation8 + $0xa90] sm:$0xff] }
 0x2b2   :  { %4183 = vmatpush1.bf16.msra.mxu1 %v5294_v27  ;;  %4012 = vmatprep.subr.bf16.mxu0 %v5301_v41  ;;  %v804_v27 = vld [vmem:[#allocation8 + $0xab0] sm:$0xff]  ;;  %v801_v41 = vld [vmem:[#allocation8 + $0xa98] sm:$0xff] }
 0x2b3   :  { %4184 = vmatprep.subr.bf16.mxu1 %v5303_v42  ;;  %v805_v42 = vld [vmem:[#allocation8 + $0xab8] sm:$0xff]  ;;  %v5357_v51 = vcombine.high %v800_v37, %v804_v27  ;;  %v5356_v58 = vcombine.low %v800_v37, %v804_v27 }
 0x2b4   :  { %v5359_v52 = vcombine.high %v801_v41, %v805_v42  ;;  %v5358_v59 = vcombine.low %v801_v41, %v805_v42 }
 0x2b5   :  { %4013 = vmatpush1.bf16.msra.mxu0 %v5300_v39  ;;  %v808_v39 = vld [vmem:[#allocation8 + $0xad0] sm:$0xff] }
 0x2b6   :  { %4185 = vmatpush1.bf16.msra.mxu1 %v5302_v53  ;;  %4014 = vmatprep.subr.bf16.mxu0 %v5309_v56  ;;  %v812_v53 = vld [vmem:[#allocation8 + $0xaf0] sm:$0xff]  ;;  %v809_v56 = vld [vmem:[#allocation8 + $0xad8] sm:$0xff] }
 0x2b7   :  { %4186 = vmatprep.subr.bf16.mxu1 %v5311_v57  ;;  %v813_v57 = vld [vmem:[#allocation8 + $0xaf8] sm:$0xff]  ;;  %v5365_v60 = vcombine.high %v808_v39, %v812_v53  ;;  %v5364_v38 = vcombine.low %v808_v39, %v812_v53 }
 0x2b8   :  { %v5367_v61 = vcombine.high %v809_v56, %v813_v57  ;;  %v5366_v40 = vcombine.low %v809_v56, %v813_v57  ;;  %v861_v39 = vld [vmem:[#allocation8 + $0xc78] sm:$0xff]  ;;  %v864_v57 = vld [vmem:[#allocation8 + $0xc90] sm:$0xff] }
 0x2b9   :  { %4015 = vmatpush1.bf16.msra.mxu0 %v5308_v62  ;;  %v816_v62 = vld [vmem:[#allocation8 + $0xb10] sm:$0xff] }
 0x2ba   :  { %4187 = vmatpush1.bf16.msra.mxu1 %v5310_v63  ;;  %4016 = vmatprep.subr.bf16.mxu0 %v5317_v34  ;;  %v820_v63 = vld [vmem:[#allocation8 + $0xb30] sm:$0xff]  ;;  %v817_v34 = vld [vmem:[#allocation8 + $0xb18] sm:$0xff] }
 0x2bb   :  { %4188 = vmatprep.subr.bf16.mxu1 %v5319_v36  ;;  %v821_v36 = vld [vmem:[#allocation8 + $0xb38] sm:$0xff]  ;;  %v5373_v45 = vcombine.high %v816_v62, %v820_v63  ;;  %v5372_v5 = vcombine.low %v816_v62, %v820_v63 }
 0x2bc   :  { %v5375_v0 = vcombine.high %v817_v34, %v821_v36  ;;  %v5374_v6 = vcombine.low %v817_v34, %v821_v36 }
 0x2bd   :  { %4017 = vmatpush1.bf16.msra.mxu0 %v5316_v1  ;;  %v824_v1 = vld [vmem:[#allocation8 + $0xb50] sm:$0xff] }
 0x2be   :  { %4189 = vmatpush1.bf16.msra.mxu1 %v5318_v19  ;;  %4018 = vmatprep.subr.bf16.mxu0 %v5325_v2  ;;  %v828_v19 = vld [vmem:[#allocation8 + $0xb70] sm:$0xff]  ;;  %v825_v2 = vld [vmem:[#allocation8 + $0xb58] sm:$0xff] }
 0x2bf   :  { %4190 = vmatprep.subr.bf16.mxu1 %v5327_v3  ;;  %v829_v3 = vld [vmem:[#allocation8 + $0xb78] sm:$0xff]  ;;  %v5381_v7 = vcombine.high %v824_v1, %v828_v19  ;;  %v5380_v13 = vcombine.low %v824_v1, %v828_v19 }
 0x2c0   :  { %v5383_v9 = vcombine.high %v825_v2, %v829_v3  ;;  %v5382_v14 = vcombine.low %v825_v2, %v829_v3  ;;  %v880_v3 = vld [vmem:[#allocation8 + $0xd10] sm:$0xff] }
 0x2c1   :  { %4019 = vmatpush1.bf16.msra.mxu0 %v5324_v33  ;;  %v832_v33 = vld [vmem:[#allocation8 + $0xb90] sm:$0xff] }
 0x2c2   :  { %4191 = vmatpush1.bf16.msra.mxu1 %v5326_v10  ;;  %4020 = vmatprep.subr.bf16.mxu0 %v5333_v11  ;;  %v836_v10 = vld [vmem:[#allocation8 + $0xbb0] sm:$0xff]  ;;  %v833_v11 = vld [vmem:[#allocation8 + $0xb98] sm:$0xff] }
 0x2c3   :  { %4192 = vmatprep.subr.bf16.mxu1 %v5335_v12  ;;  %v837_v12 = vld [vmem:[#allocation8 + $0xbb8] sm:$0xff]  ;;  %v5389_v15 = vcombine.high %v832_v33, %v836_v10  ;;  %v5388_v23 = vcombine.low %v832_v33, %v836_v10 }
 0x2c4   :  { %v5391_v16 = vcombine.high %v833_v11, %v837_v12  ;;  %v5390_v24 = vcombine.low %v833_v11, %v837_v12  ;;  %v888_v11 = vld [vmem:[#allocation8 + $0xd50] sm:$0xff] }
 0x2c5   :  { %4021 = vmatpush1.bf16.msra.mxu0 %v5332_v17  ;;  %v840_v17 = vld [vmem:[#allocation8 + $0xbd0] sm:$0xff] }
 0x2c6   :  { %4193 = vmatpush1.bf16.msra.mxu1 %v5334_v18  ;;  %4022 = vmatprep.subr.bf16.mxu0 %v5341_v20  ;;  %v844_v18 = vld [vmem:[#allocation8 + $0xbf0] sm:$0xff]  ;;  %v841_v20 = vld [vmem:[#allocation8 + $0xbd8] sm:$0xff] }
 0x2c7   :  { %4194 = vmatprep.subr.bf16.mxu1 %v5343_v22  ;;  %v845_v22 = vld [vmem:[#allocation8 + $0xbf8] sm:$0xff]  ;;  %v5397_v26 = vcombine.high %v840_v17, %v844_v18  ;;  %v5396_v37 = vcombine.low %v840_v17, %v844_v18  ;;  %v892_v12 = vld [vmem:[#allocation8 + $0xd70] sm:$0xff] }
 0x2c8   :  { %v5399_v29 = vcombine.high %v841_v20, %v845_v22  ;;  %v5398_v27 = vcombine.low %v841_v20, %v845_v22  ;;  %v5445_v18 = vcombine.high %v888_v11, %v892_v12  ;;  %v896_v22 = vld [vmem:[#allocation8 + $0xd90] sm:$0xff] }
 0x2c9   :  { %4023 = vmatpush1.bf16.msra.mxu0 %v5340_v21  ;;  %v848_v21 = vld [vmem:[#allocation8 + $0xc10] sm:$0xff] }
 0x2ca   :  { %4195 = vmatpush1.bf16.msra.mxu1 %v5342_v30  ;;  %4024 = vmatprep.subr.bf16.mxu0 %v5349_v31  ;;  %v852_v30 = vld [vmem:[#allocation8 + $0xc30] sm:$0xff]  ;;  %v849_v31 = vld [vmem:[#allocation8 + $0xc18] sm:$0xff] }
 0x2cb   :  { %4196 = vmatprep.subr.bf16.mxu1 %v5351_v32  ;;  %v853_v32 = vld [vmem:[#allocation8 + $0xc38] sm:$0xff]  ;;  %v5405_v41 = vcombine.high %v848_v21, %v852_v30 }
 0x2cc   :  { %v5407_v42 = vcombine.high %v849_v31, %v853_v32  ;;  %v5406_v53 = vcombine.low %v849_v31, %v853_v32  ;;  %v5444_v32 = vcombine.low %v888_v11, %v892_v12 }
 0x2cd   :  { %4025 = vmatpush1.bf16.msra.mxu0 %v5348_v49  ;;  %v856_v49 = vld [vmem:[#allocation8 + $0xc50] sm:$0xff] }
 0x2ce   :  { %4197 = vmatpush1.bf16.msra.mxu1 %v5350_v50  ;;  %4026 = vmatprep.subr.bf16.mxu0 %v5357_v51  ;;  %v860_v50 = vld [vmem:[#allocation8 + $0xc70] sm:$0xff]  ;;  %v5404_v51 = vcombine.low %v848_v21, %v852_v30  ;;  %v901_v21 = vld [vmem:[#allocation8 + $0xdb8] sm:$0xff] }
 0x2cf   :  { %4198 = vmatprep.subr.bf16.mxu1 %v5359_v52  ;;  %v857_v52 = vld [vmem:[#allocation8 + $0xc58] sm:$0xff]  ;;  %v5413_v56 = vcombine.high %v856_v49, %v860_v50  ;;  %v5412_v62 = vcombine.low %v856_v49, %v860_v50 }
 0x2d0   :  { %v5414_v63 = vcombine.low %v857_v52, %v861_v39 }
 0x2d1   :  { %4027 = vmatpush1.bf16.msra.mxu0 %v5356_v58  ;;  %v868_v58 = vld [vmem:[#allocation8 + $0xcb0] sm:$0xff] }
 0x2d2   :  { %4199 = vmatpush1.bf16.msra.mxu1 %v5358_v59  ;;  %4028 = vmatprep.subr.bf16.mxu0 %v5365_v60  ;;  %v5415_v59 = vcombine.high %v857_v52, %v861_v39  ;;  %v865_v60 = vld [vmem:[#allocation8 + $0xc98] sm:$0xff]  ;;  %v5421_v34 = vcombine.high %v864_v57, %v868_v58  ;;  %v5420_v1 = vcombine.low %v864_v57, %v868_v58 }
 0x2d3   :  { %4200 = vmatprep.subr.bf16.mxu1 %v5367_v61  ;;  %v869_v61 = vld [vmem:[#allocation8 + $0xcb8] sm:$0xff] }
 0x2d4   :  { %v5423_v36 = vcombine.high %v865_v60, %v869_v61 }
 0x2d5   :  { %4029 = vmatpush1.bf16.msra.mxu0 %v5364_v38  ;;  %v872_v38 = vld [vmem:[#allocation8 + $0xcd0] sm:$0xff] }
 0x2d6   :  { %4201 = vmatpush1.bf16.msra.mxu1 %v5366_v40  ;;  %4030 = vmatprep.subr.bf16.mxu0 %v5373_v45  ;;  %v876_v40 = vld [vmem:[#allocation8 + $0xcf0] sm:$0xff]  ;;  %v873_v45 = vld [vmem:[#allocation8 + $0xcd8] sm:$0xff] }
 0x2d7   :  { %4202 = vmatprep.subr.bf16.mxu1 %v5375_v0  ;;  %v877_v0 = vld [vmem:[#allocation8 + $0xcf8] sm:$0xff]  ;;  %v5429_v19 = vcombine.high %v872_v38, %v876_v40 }
 0x2d8   :  { %v5431_v2 = vcombine.high %v873_v45, %v877_v0 }
 0x2d9   :  { %4031 = vmatpush1.bf16.msra.mxu0 %v5372_v5  ;;  %v884_v5 = vld [vmem:[#allocation8 + $0xd30] sm:$0xff] }
 0x2da   :  { %4203 = vmatpush1.bf16.msra.mxu1 %v5374_v6  ;;  %4032 = vmatprep.subr.bf16.mxu0 %v5381_v7  ;;  %v881_v6 = vld [vmem:[#allocation8 + $0xd18] sm:$0xff]  ;;  %v5437_v33 = vcombine.high %v880_v3, %v884_v5 }
 0x2db   :  { %4204 = vmatprep.subr.bf16.mxu1 %v5383_v9  ;;  %v885_v7 = vld [vmem:[#allocation8 + $0xd38] sm:$0xff]  ;;  %v5430_v9 = vcombine.low %v873_v45, %v877_v0 }
 0x2dc   :  { %v5439_v10 = vcombine.high %v881_v6, %v885_v7  ;;  %v5438_v17 = vcombine.low %v881_v6, %v885_v7  ;;  %v913_v7 = vld [vmem:[#allocation8 + $0xe18] sm:$0xff] }
 0x2dd   :  { %4033 = vmatpush1.bf16.msra.mxu0 %v5380_v13  ;;  %v889_v13 = vld [vmem:[#allocation8 + $0xd58] sm:$0xff] }
 0x2de   :  { %4205 = vmatpush1.bf16.msra.mxu1 %v5382_v14  ;;  %4034 = vmatprep.subr.bf16.mxu0 %v5389_v15  ;;  %v893_v14 = vld [vmem:[#allocation8 + $0xd78] sm:$0xff]  ;;  %v5436_v15 = vcombine.low %v880_v3, %v884_v5 }
 0x2df   :  { %4206 = vmatprep.subr.bf16.mxu1 %v5391_v16  ;;  %v6269_v16 = vld [vmem:[#allocation10] sm:$0xff]  ;;  %v5447_v20 = vcombine.high %v889_v13, %v893_v14 }
 0x2e0   :  { %v983_v30 = vrot.slane %v6269_v16, %v143_v46  ;;  %v991_v31 = vrot.slane %v6269_v16, %v151_v48 }
 0x2e1   :  { %4035 = vmatpush1.bf16.msra.mxu0 %v5388_v23  ;;  %v900_v23 = vld [vmem:[#allocation8 + $0xdb0] sm:$0xff] }
 0x2e2   :  { %4207 = vmatpush1.bf16.msra.mxu1 %v5390_v24  ;;  %4036 = vmatprep.subr.bf16.mxu0 %v5397_v26  ;;  %v979_v24 = vrot.slane %v6269_v16, %v139_v44  ;;  %v987_v26 = vrot.slane %v6269_v16, %v147_v47  ;;  %v5453_v44 = vcombine.high %v896_v22, %v900_v23 }
 0x2e3   :  { %4208 = vmatprep.subr.bf16.mxu1 %v5399_v29  ;;  %v897_v29 = vld [vmem:[#allocation8 + $0xd98] sm:$0xff]  ;;  %v5452_v46 = vcombine.low %v896_v22, %v900_v23  ;;  %v924_v22 = vld [vmem:[#allocation8 + $0xe70] sm:$0xff] }
 0x2e4   :  { %v5455_v49 = vcombine.high %v897_v29, %v901_v21  ;;  %v921_v23 = vld [vmem:[#allocation8 + $0xe58] sm:$0xff] }
 0x2e5   :  { %4037 = vmatpush1.bf16.msra.mxu0 %v5396_v37  ;;  %v5446_v37 = vcombine.low %v889_v13, %v893_v14 }
 0x2e6   :  { %4209 = vmatpush1.bf16.msra.mxu1 %v5398_v27  ;;  %4049 = vmatprep.subr.bf16.mxu0 %v5405_v41  ;;  %v904_v27 = vld [vmem:[#allocation8 + $0xdd0] sm:$0xff] }
 0x2e7   :  { %4221 = vmatprep.subr.bf16.mxu1 %v5407_v42  ;;  %v908_v41 = vld [vmem:[#allocation8 + $0xdf0] sm:$0xff] }
 0x2e8   :  { %4039 = vmatmul.mubr.bf16.vlgmr.msra.gmra.mrb[12].mxu0 %v6229_v35 }
 0x2e9   :  { %4211 = vmatmul.mubr.bf16.vlgmr.msra.gmra.mrb[12].mxu1 %v6229_v35  ;;  %4050 = vmatpush1.bf16.msra.mxu0 %v5404_v51  ;;  %v5422_v35 = vcombine.low %v865_v60, %v869_v61  ;;  %v5454_v60 = vcombine.low %v897_v29, %v901_v21  ;;  %v5460_v61 = vcombine.low %v904_v27, %v908_v41 }
 0x2ea   :  { %4081 = vmatprep.mubr.bf16.mxu0 %v6243_v8  ;;  %4222 = vmatpush1.bf16.msra.mxu1 %v5406_v53  ;;  %v905_v53 = vld [vmem:[#allocation8 + $0xdd8] sm:$0xff] }
 0x2eb   :  { %4253 = vmatprep.mubr.bf16.mxu1 %v6243_v8  ;;  %4051 = vmatprep.subr.bf16.mxu0 %v5413_v56  ;;  %v5428_v8 = vcombine.low %v872_v38, %v876_v40  ;;  %v909_v56 = vld [vmem:[#allocation8 + $0xdf8] sm:$0xff]  ;;  %v5461_v38 = vcombine.high %v904_v27, %v908_v41 }
 0x2ec   :  { %4223 = vmatprep.subr.bf16.mxu1 %v5415_v59  ;;  %v5462_v0 = vcombine.low %v905_v53, %v909_v56 }
 0x2ed   :  { %4052 = vmatpush1.bf16.msra.mxu0 %v5412_v62 }
 0x2ee   :  { %4224 = vmatpush1.bf16.msra.mxu1 %v5414_v63  ;;  %4053 = vmatprep.subr.bf16.mxu0 %v5421_v34 }
 0x2ef   :  { %4225 = vmatprep.subr.bf16.mxu1 %v5423_v36 }
 0x2f1   :  { %4054 = vmatpush1.bf16.msra.mxu0 %v5420_v1  ;;  %v5463_v1 = vcombine.high %v905_v53, %v909_v56 }
 0x2f2   :  { %4226 = vmatpush1.bf16.msra.mxu1 %v5422_v35  ;;  %4055 = vmatprep.subr.bf16.mxu0 %v5429_v19  ;;  %v912_v35 = vld [vmem:[#allocation8 + $0xe10] sm:$0xff] }
 0x2f3   :  { %4227 = vmatprep.subr.bf16.mxu1 %v5431_v2  ;;  %v916_v19 = vld [vmem:[#allocation8 + $0xe30] sm:$0xff] }
 0x2f4   :  { %v5469_v14 = vcombine.high %v912_v35, %v916_v19 }
 0x2f5   :  { %4056 = vmatpush1.bf16.msra.mxu0 %v5428_v8  ;;  %v917_v8 = vld [vmem:[#allocation8 + $0xe38] sm:$0xff] }
 0x2f6   :  { %4228 = vmatpush1.bf16.msra.mxu1 %v5430_v9  ;;  %4057 = vmatprep.subr.bf16.mxu0 %v5437_v33  ;;  %v5470_v29 = vcombine.low %v913_v7, %v917_v8 }
 0x2f7   :  { %4229 = vmatprep.subr.bf16.mxu1 %v5439_v10 }
 0x2f9   :  { %4058 = vmatpush1.bf16.msra.mxu0 %v5436_v15 }
 0x2fa   :  { %4230 = vmatpush1.bf16.msra.mxu1 %v5438_v17  ;;  %4059 = vmatprep.subr.bf16.mxu0 %v5445_v18  ;;  %v5471_v18 = vcombine.high %v913_v7, %v917_v8 }
 0x2fb   :  { %v3739_v42 = vpop.f32.mrb[8].mxu0  ;;  %v3911_v47 = vpop.f32.mrb[8].mxu1  ;;  %4231 = vmatprep.subr.bf16.mxu1 %v5447_v20  ;;  %v920_v20 = vld [vmem:[#allocation8 + $0xe50] sm:$0xff] }
 0x2fc   :  { %v5681_v50 = vadd.f32 %v3739_v42, %v979_v24  ;;  %v5685_v51 = vadd.f32 %v3911_v47, %v987_v26  ;;  %v3741_v52 = vpop.f32.mrb[9].mxu0  ;;  %v3913_v39 = vpop.f32.mrb[9].mxu1  ;;  %v5477_v21 = vcombine.high %v920_v20, %v924_v22  ;;  %v5476_v27 = vcombine.low %v920_v20, %v924_v22 }
 0x2fd   :  { %v5682_v57 = vadd.f32 %v3741_v52, %v983_v30  ;;  %v5686_v48 = vadd.f32 %v3913_v39, %v991_v31  ;;  %v3743_v58 = vpop.f32.mrb[10].mxu0  ;;  %v3915_v59 = vpop.f32.mrb[10].mxu1  ;;  %4060 = vmatpush1.bf16.msra.mxu0 %v5444_v32  ;;  %v932_v32 = vld [vmem:[#allocation8 + $0xeb0] sm:$0xff]  ;;  %v941_v52 = vld [vmem:[#allocation8 + $0xef8] sm:$0xff] }
 0x2fe   :  { %v5683_v62 = vadd.f32 %v3743_v58, %v979_v24  ;;  %v5687_v63 = vadd.f32 %v3915_v59, %v987_v26  ;;  %4232 = vmatpush1.bf16.msra.mxu1 %v5446_v37  ;;  %v3745_v34 = vpop.f32.mrb[11].mxu0  ;;  %v3917_v36 = vpop.f32.mrb[11].mxu1  ;;  %4061 = vmatprep.subr.bf16.mxu0 %v5453_v44  ;;  %v4264_v2 = vmax.f32 %v5681_v50, 0.0  ;;  %v4266_v3 = vmax.f32 %v5685_v51, 0.0  ;;  %v925_v24 = vld [vmem:[#allocation8 + $0xe78] sm:$0xff]  ;;  %v940_v50 = vld [vmem:[#allocation8 + $0xef0] sm:$0xff] }
 0x2ff   :  { %v5684_v40 = vadd.f32 %v3745_v34, %v983_v30  ;;  %v5688_v45 = vadd.f32 %v3917_v36, %v991_v31  ;;  %4233 = vmatprep.subr.bf16.mxu1 %v5455_v49  ;;  %v4265_v9 = vmax.f32 %v5682_v57, 0.0  ;;  %v4267_v33 = vmax.f32 %v5686_v48, 0.0  ;;  %v928_v31 = vld [vmem:[#allocation8 + $0xe90] sm:$0xff]  ;;  %v929_v37 = vld [vmem:[#allocation8 + $0xe98] sm:$0xff] }
 0x300   :  { %v4272_v5 = vmax.f32 %v5683_v62, 0.0  ;;  %v4274_v6 = vmax.f32 %v5687_v63, 0.0  ;;  %v5468_v26 = vcombine.low %v912_v35, %v916_v19  ;;  %v5479_v30 = vcombine.high %v921_v23, %v925_v24  ;;  %v933_v44 = vld [vmem:[#allocation8 + $0xeb8] sm:$0xff]  ;;  %v936_v49 = vld [vmem:[#allocation8 + $0xed0] sm:$0xff] }
 0x301   :  { %v4273_v10 = vmax.f32 %v5684_v40, 0.0  ;;  %v4275_v11 = vmax.f32 %v5688_v45, 0.0  ;;  %4062 = vmatpush1.bf16.msra.mxu0 %v5452_v46  ;;  %v5478_v41 = vcombine.low %v921_v23, %v925_v24  ;;  %v5485_v42 = vcombine.high %v928_v31, %v932_v32  ;;  %v937_v51 = vld [vmem:[#allocation8 + $0xed8] sm:$0xff]  ;;  %v944_v57 = vld [vmem:[#allocation8 + $0xf10] sm:$0xff] }
 0x302   :  { %v6283_v12 = vpack.c.bf16 %v4272_v5, %v4264_v2  ;;  %v6285_v13 = vpack.c.bf16 %v4274_v6, %v4266_v3  ;;  %4234 = vmatpush1.bf16.msra.mxu1 %v5454_v60  ;;  %4063 = vmatprep.subr.bf16.mxu0 %v5461_v38  ;;  %v5487_v47 = vcombine.high %v929_v37, %v933_v44  ;;  %v948_v48 = vld [vmem:[#allocation8 + $0xf30] sm:$0xff]  ;;  %v945_v58 = vld [vmem:[#allocation8 + $0xf18] sm:$0xff] }
 0x303   :  { %v6287_v15 = vpack.c.bf16 %v4273_v10, %v4265_v9  ;;  %v6289_v17 = vpack.c.bf16 %v4275_v11, %v4267_v33  ;;  %4235 = vmatprep.subr.bf16.mxu1 %v5463_v1  ;;  %v5484_v39 = vcombine.low %v928_v31, %v932_v32  ;;  %v5486_v46 = vcombine.low %v929_v37, %v933_v44  ;;  %v949_v59 = vld [vmem:[#allocation8 + $0xf38] sm:$0xff]  ;;  %v952_v34 = vld [vmem:[#allocation8 + $0xf50] sm:$0xff]  ;;  %v5764_v31 = vld [vmem:[#allocation11 + $0x80] sm:$0xff]  }
 0x304   :  { %v5493_v53 = vcombine.high %v936_v49, %v940_v50  ;;  %v5495_v56 = vcombine.high %v937_v51, %v941_v52  ;;  %v5492_v60 = vcombine.low %v936_v49, %v940_v50  ;;  %v5501_v62 = vcombine.high %v944_v57, %v948_v48  ;;  %v956_v36 = vld [vmem:[#allocation8 + $0xf70] sm:$0xff]  ;;  %v953_v38 = vld [vmem:[#allocation8 + $0xf58] sm:$0xff]  ;;  %v5773_v50 = vld [vmem:[#allocation11 + $0x58] sm:$0xff]  }
 0x305   :  { %4064 = vmatpush1.bf16.msra.mxu0 %v5460_v61  ;;  %v5494_v61 = vcombine.low %v937_v51, %v941_v52  ;;  %v5503_v63 = vcombine.high %v945_v58, %v949_v59  ;;  %v957_v40 = vld [vmem:[#allocation8 + $0xf78] sm:$0xff]  ;;  %v5500_v45 = vcombine.low %v944_v57, %v948_v48  ;;  %v5509_v1 = vcombine.high %v952_v34, %v956_v36  ;;  %v960_v19 = vld [vmem:[#allocation8 + $0xf90] sm:$0xff]  ;;  %v5775_v51 = vld [vmem:[#allocation11 + $0x18] sm:$0xff]  }
 0x306   :  { %4236 = vmatpush1.bf16.msra.mxu1 %v5462_v0  ;;  %4065 = vmatprep.subr.bf16.mxu0 %v5469_v14  ;;  %v5502_v0 = vcombine.low %v945_v58, %v949_v59  ;;  %v5511_v35 = vcombine.high %v953_v38, %v957_v40  ;;  %v964_v2 = vld [vmem:[#allocation8 + $0xfb0] sm:$0xff]  ;;  %v961_v3 = vld [vmem:[#allocation8 + $0xf98] sm:$0xff]  ;;  %v5508_v6 = vcombine.low %v952_v34, %v956_v36  ;;  %v5777_v52 = vld [vmem:[#allocation11 + $0x60] sm:$0xff]  }
 0x307   :  { %4237 = vmatprep.subr.bf16.mxu1 %v5471_v18  ;;  %v965_v5 = vld [vmem:[#allocation8 + $0xfb8] sm:$0xff]  ;;  %v5510_v7 = vcombine.low %v953_v38, %v957_v40  ;;  %v5517_v8 = vcombine.high %v960_v19, %v964_v2  ;;  %v968_v33 = vld [vmem:[#allocation8 + $0xfd0] sm:$0xff]  ;;  %v5516_v18 = vcombine.low %v960_v19, %v964_v2  ;;  %v5791_v34 = vld [vmem:[#allocation11 + $0x38] sm:$0xff]  }
 0x308   :  { %v5519_v9 = vcombine.high %v961_v3, %v965_v5  ;;  %v972_v10 = vld [vmem:[#allocation8 + $0xff0] sm:$0xff]  ;;  %v969_v11 = vld [vmem:[#allocation8 + $0xfd8] sm:$0xff]  ;;  %v5518_v20 = vcombine.low %v961_v3, %v965_v5  ;;  %v5792_v36 = vld [vmem:[#allocation11 + $0xb8] sm:$0xff]  }
 0x309   :  { %4066 = vmatpush1.bf16.msra.mxu0 %v5468_v26  ;;  %v973_v14 = vld [vmem:[#allocation8 + $0xff8] sm:$0xff]  ;;  %v5525_v22 = vcombine.high %v968_v33, %v972_v10  ;;  %v5524_v24 = vcombine.low %v968_v33, %v972_v10  ;;  %v5765_v32 = vld [vmem:[#allocation11 + $0x48] sm:$0xff]   ;;  %v5793_v38 = vld [vmem:[#allocation11 + $0x140] sm:$0xff]  }
 0x30a   :  { %4238 = vmatpush1.bf16.msra.mxu1 %v5470_v29  ;;  %4067 = vmatprep.subr.bf16.mxu0 %v5477_v21  ;;  %v5527_v23 = vcombine.high %v969_v11, %v973_v14  ;;  %v5526_v26 = vcombine.low %v969_v11, %v973_v14  ;;  %v5761_v29 = vld [vmem:[#allocation11 + $0x40] sm:$0xff]   ;;  %v5766_v37 = vld [vmem:[#allocation11 + $0xc8] sm:$0xff]   ;;  %v5772_v49 = vld [vmem:[#allocation11 + $0x90] sm:$0xff]  }
 0x30b   :  { %4239 = vmatprep.subr.bf16.mxu1 %v5479_v30  ;;  %v5762_v21 = vld [vmem:[#allocation11 + $0xc0] sm:$0xff]   ;;  %v5767_v44 = vld [vmem:[#allocation11 + $0x8] sm:$0xff]   ;;  %v5785_v58 = vld [vmem:[#allocation11 + $0x70] sm:$0xff]  }
 0x30c   :  { %v5763_v30 = vld [vmem:[#allocation11] sm:$0xff]   ;;  %v5783_v57 = vld [vmem:[#allocation11 + $0x28] sm:$0xff]   ;;  %v5786_v59 = vld [vmem:[#allocation11 + $0xf0] sm:$0xff]  }
 0x30d   :  { %4068 = vmatpush1.bf16.msra.mxu0 %v5476_v27  ;;  %v5768_v27 = vld [vmem:[#allocation11 + $0x88] sm:$0xff]   ;;  %v5794_v40 = vld [vmem:[#allocation11 + $0x1c0] sm:$0xff]   ;;  %v5801_v3 = vld [vmem:[#allocation11 + $0x150] sm:$0xff]  }
 0x30e   :  { %4240 = vmatpush1.bf16.msra.mxu1 %v5478_v41  ;;  %4069 = vmatprep.subr.bf16.mxu0 %v5485_v42  ;;  %v5769_v41 = vld [vmem:[#allocation11 + $0x50] sm:$0xff]   ;;  %v5784_v48 = vld [vmem:[#allocation11 + $0xa8] sm:$0xff]   ;;  %v5809_v33 = vld [vmem:[#allocation11 + $0x160] sm:$0xff]  }
 0x30f   :  { %4241 = vmatprep.subr.bf16.mxu1 %v5487_v47  ;;  %v5770_v42 = vld [vmem:[#allocation11 + $0xd0] sm:$0xff]   ;;  %v5799_v19 = vld [vmem:[#allocation11 + $0x108] sm:$0xff]   ;;  %v5810_v10 = vld [vmem:[#allocation11 + $0x1e0] sm:$0xff]  }
 0x310   :  { %v5771_v47 = vld [vmem:[#allocation11 + $0x10] sm:$0xff]   ;;  %v5800_v2 = vld [vmem:[#allocation11 + $0x188] sm:$0xff]   ;;  %v5811_v11 = vld [vmem:[#allocation11 + $0x120] sm:$0xff]  }
 0x311   :  { %4070 = vmatpush1.bf16.msra.mxu0 %v5484_v39  ;;  %v5778_v39 = vld [vmem:[#allocation11 + $0xe0] sm:$0xff]   ;;  %v5802_v5 = vld [vmem:[#allocation11 + $0x1d0] sm:$0xff]  }
 0x312   :  { %4242 = vmatpush1.bf16.msra.mxu1 %v5486_v46  ;;  %4071 = vmatprep.subr.bf16.mxu0 %v5493_v53  ;;  %v5780_v46 = vld [vmem:[#allocation11 + $0xa0] sm:$0xff]   ;;  %v5781_v53 = vld [vmem:[#allocation11 + $0x68] sm:$0xff]  }
 0x313   :  { %4243 = vmatprep.subr.bf16.mxu1 %v5495_v56  ;;  %v5782_v56 = vld [vmem:[#allocation11 + $0xe8] sm:$0xff]   ;;  %v5812_v14 = vld [vmem:[#allocation11 + $0x1a0] sm:$0xff]  }
 0x315   :  { %4072 = vmatpush1.bf16.msra.mxu0 %v5492_v60  ;;  %v5787_v60 = vld [vmem:[#allocation11 + $0x30] sm:$0xff]  }
 0x316   :  { %4244 = vmatpush1.bf16.msra.mxu1 %v5494_v61  ;;  %4073 = vmatprep.subr.bf16.mxu0 %v5501_v62  ;;  %v5788_v61 = vld [vmem:[#allocation11 + $0xb0] sm:$0xff]   ;;  %v5789_v62 = vld [vmem:[#allocation11 + $0x78] sm:$0xff]  }
 0x317   :  { %4245 = vmatprep.subr.bf16.mxu1 %v5503_v63  ;;  %v5790_v63 = vld [vmem:[#allocation11 + $0xf8] sm:$0xff]  }
 0x319   :  { %4074 = vmatpush1.bf16.msra.mxu0 %v5500_v45  ;;  %v5795_v45 = vld [vmem:[#allocation11 + $0x100] sm:$0xff]  }
 0x31a   :  { %4246 = vmatpush1.bf16.msra.mxu1 %v5502_v0  ;;  %4075 = vmatprep.subr.bf16.mxu0 %v5509_v1  ;;  %v5796_v0 = vld [vmem:[#allocation11 + $0x180] sm:$0xff]   ;;  %v5797_v1 = vld [vmem:[#allocation11 + $0x148] sm:$0xff]  }
 0x31b   :  { %4247 = vmatprep.subr.bf16.mxu1 %v5511_v35  ;;  %v5798_v35 = vld [vmem:[#allocation11 + $0x1c8] sm:$0xff]  }
 0x31d   :  { %4076 = vmatpush1.bf16.msra.mxu0 %v5508_v6  ;;  %v5803_v6 = vld [vmem:[#allocation11 + $0x110] sm:$0xff]  }
 0x31e   :  { %4248 = vmatpush1.bf16.msra.mxu1 %v5510_v7  ;;  %4077 = vmatprep.subr.bf16.mxu0 %v5517_v8  ;;  %v5804_v7 = vld [vmem:[#allocation11 + $0x190] sm:$0xff]   ;;  %v5805_v8 = vld [vmem:[#allocation11 + $0x158] sm:$0xff]  }
 0x31f   :  { %4249 = vmatprep.subr.bf16.mxu1 %v5519_v9  ;;  %v5806_v9 = vld [vmem:[#allocation11 + $0x1d8] sm:$0xff]  }
 0x321   :  { %4078 = vmatpush1.bf16.msra.mxu0 %v5516_v18  ;;  %v5813_v18 = vld [vmem:[#allocation11 + $0x168] sm:$0xff]  }
 0x322   :  { %4250 = vmatpush1.bf16.msra.mxu1 %v5518_v20  ;;  %4079 = vmatprep.subr.bf16.mxu0 %v5525_v22  ;;  %v5814_v20 = vld [vmem:[#allocation11 + $0x1e8] sm:$0xff]  }
 0x323   :  { %4251 = vmatprep.subr.bf16.mxu1 %v5527_v23  ;;  %v5815_v22 = vld [vmem:[#allocation11 + $0x128] sm:$0xff]  }
 0x324   :  { %v5816_v23 = vld [vmem:[#allocation11 + $0x1a8] sm:$0xff]  }
 0x325   :  { %4080 = vmatpush1.bf16.msra.mxu0 %v5524_v24  ;;  %v5817_v24 = vld [vmem:[#allocation11 + $0x170] sm:$0xff]  }
 0x326   :  { %4252 = vmatpush1.bf16.msra.mxu1 %v5526_v26  ;;  %5593 = vmatprep.subr.bf16.mxu0 %v5761_v29  ;;  %v5818_v26 = vld [vmem:[#allocation11 + $0x1f0] sm:$0xff]  }
 0x327   :  { %5615 = vmatprep.subr.bf16.mxu1 %v5762_v21  ;;  %v5819_v29 = vld [vmem:[#allocation11 + $0x130] sm:$0xff]  }
 0x328   :  { %4082 = vmatmul.mubr.bf16.vlgmr.msra.gmra.mrb[12].mxu0 %v6241_v4  ;;  %v5820_v21 = vld [vmem:[#allocation11 + $0x1b0] sm:$0xff]  }
 0x329   :  { %4254 = vmatmul.mubr.bf16.vlgmr.msra.gmra.mrb[12].mxu1 %v6241_v4  ;;  %5594 = vmatpush3.bf16.msra.mxu0 %v5763_v30  ;;  %v5774_v4 = vld [vmem:[#allocation11 + $0xd8] sm:$0xff]  }
 0x32a   :  { %4839 = vmatprep.mubr.bf16.mxu0 %v6287_v15  ;;  %5616 = vmatpush3.bf16.msra.mxu1 %v5764_v31  ;;  %v5776_v15 = vld [vmem:[#allocation11 + $0x98] sm:$0xff]  }
 0x32b   :  { %4880 = vmatprep.mubr.bf16.mxu1 %v6289_v17  ;;  %5595 = vmatprep.subr.bf16.mxu0 %v5765_v32  ;;  %v5779_v17 = vld [vmem:[#allocation11 + $0x20] sm:$0xff]   ;;  %v5821_v30 = vld [vmem:[#allocation11 + $0x178] sm:$0xff]  }
 0x32c   :  { %5617 = vmatprep.subr.bf16.mxu1 %v5766_v37  ;;  %v5822_v31 = vld [vmem:[#allocation11 + $0x1f8] sm:$0xff]  }
 0x32d   :  { %5596 = vmatpush3.bf16.msra.mxu0 %v5767_v44  ;;  %v5823_v32 = vld [vmem:[#allocation11 + $0x138] sm:$0xff]   ;;  %v995_v44 = vrot.slane %v6269_v16, %v155_v54 }
 0x32e   :  { %5618 = vmatpush3.bf16.msra.mxu1 %v5768_v27  ;;  %5597 = vmatprep.subr.bf16.mxu0 %v5769_v41  ;;  %v5824_v37 = vld [vmem:[#allocation11 + $0x1b8] sm:$0xff]   ;;  %v1003_v27 = vrot.slane %v6269_v16, %v163_v25  ;;  %v999_v41 = vrot.slane %v6269_v16, %v159_v55 }
 0x32f   :  { %5619 = vmatprep.subr.bf16.mxu1 %v5770_v42  ;;  %v1007_v42 = vrot.slane %v6269_v16, %v167_v28 }
 0x331   :  { %5598 = vmatpush3.bf16.msra.mxu0 %v5771_v47 }
 0x332   :  { %5620 = vmatpush3.bf16.msra.mxu1 %v5772_v49  ;;  %5599 = vmatprep.subr.bf16.mxu0 %v5773_v50 }
 0x333   :  { %5621 = vmatprep.subr.bf16.mxu1 %v5774_v4 }
 0x335   :  { %5600 = vmatpush3.bf16.msra.mxu0 %v5775_v51 }
 0x336   :  { %5622 = vmatpush3.bf16.msra.mxu1 %v5776_v15  ;;  %5601 = vmatprep.subr.bf16.mxu0 %v5777_v52 }
 0x337   :  { %5623 = vmatprep.subr.bf16.mxu1 %v5778_v39 }
 0x339   :  { %5602 = vmatpush3.bf16.msra.mxu0 %v5779_v17 }
 0x33a   :  { %5624 = vmatpush3.bf16.msra.mxu1 %v5780_v46  ;;  %5603 = vmatprep.subr.bf16.mxu0 %v5781_v53 }
 0x33b   :  { %5625 = vmatprep.subr.bf16.mxu1 %v5782_v56 }
 0x33d   :  { %5604 = vmatpush3.bf16.msra.mxu0 %v5783_v57 }
 0x33e   :  { %5626 = vmatpush3.bf16.msra.mxu1 %v5784_v48  ;;  %5605 = vmatprep.subr.bf16.mxu0 %v5785_v58 }
 0x33f   :  { %5627 = vmatprep.subr.bf16.mxu1 %v5786_v59 }
 0x341   :  { %5606 = vmatpush3.bf16.msra.mxu0 %v5787_v60 }
 0x342   :  { %5628 = vmatpush3.bf16.msra.mxu1 %v5788_v61  ;;  %5607 = vmatprep.subr.bf16.mxu0 %v5789_v62 }
 0x343   :  { %5629 = vmatprep.subr.bf16.mxu1 %v5790_v63 }
 0x345   :  { %5608 = vmatpush3.bf16.msra.mxu0 %v5791_v34 }
 0x346   :  { %5630 = vmatpush3.bf16.msra.mxu1 %v5792_v36  ;;  %5637 = vmatprep.subr.bf16.mxu0 %v5793_v38 }
 0x347   :  { %5659 = vmatprep.subr.bf16.mxu1 %v5794_v40 }
 0x348   :  { %4840 = vmatmul.mubr.bf16.vlgmr.msra.gmra.mrb[16].mxu0 %v6283_v12  ;;  %v5807_v12 = vld [vmem:[#allocation11 + $0x118] sm:$0xff]  }
 0x349   :  { %4881 = vmatmul.mubr.bf16.vlgmr.msra.gmra.mrb[16].mxu1 %v6285_v13  ;;  %5638 = vmatpush3.bf16.msra.mxu0 %v5795_v45  ;;  %v5808_v13 = vld [vmem:[#allocation11 + $0x198] sm:$0xff]   ;;  %v5528_v45 = vld [vmem:[#allocation13] ss:$0 sm:$0xff] }
 0x34a   :  { %5660 = vmatpush3.bf16.msra.mxu1 %v5796_v0  ;;  %5639 = vmatprep.subr.bf16.mxu0 %v5797_v1 }
 0x34b   :  { %5661 = vmatprep.subr.bf16.mxu1 %v5798_v35 }
 0x34d   :  { %5640 = vmatpush3.bf16.msra.mxu0 %v5799_v19 }
 0x34e   :  { %5662 = vmatpush3.bf16.msra.mxu1 %v5800_v2  ;;  %5641 = vmatprep.subr.bf16.mxu0 %v5801_v3 }
 0x34f   :  { %5663 = vmatprep.subr.bf16.mxu1 %v5802_v5 }
 0x351   :  { %5642 = vmatpush3.bf16.msra.mxu0 %v5803_v6 }
 0x352   :  { %5664 = vmatpush3.bf16.msra.mxu1 %v5804_v7  ;;  %5643 = vmatprep.subr.bf16.mxu0 %v5805_v8 }
 0x353   :  { %5665 = vmatprep.subr.bf16.mxu1 %v5806_v9 }
 0x355   :  { %5644 = vmatpush3.bf16.msra.mxu0 %v5807_v12 }
 0x356   :  { %5666 = vmatpush3.bf16.msra.mxu1 %v5808_v13  ;;  %5645 = vmatprep.subr.bf16.mxu0 %v5809_v33 }
 0x357   :  { %5667 = vmatprep.subr.bf16.mxu1 %v5810_v10 }
 0x359   :  { %5646 = vmatpush3.bf16.msra.mxu0 %v5811_v11 }
 0x35a   :  { %5668 = vmatpush3.bf16.msra.mxu1 %v5812_v14  ;;  %5647 = vmatprep.subr.bf16.mxu0 %v5813_v18 }
 0x35b   :  { %5669 = vmatprep.subr.bf16.mxu1 %v5814_v20 }
 0x35d   :  { %5648 = vmatpush3.bf16.msra.mxu0 %v5815_v22 }
 0x35e   :  { %5670 = vmatpush3.bf16.msra.mxu1 %v5816_v23  ;;  %5649 = vmatprep.subr.bf16.mxu0 %v5817_v24 }
 0x35f   :  { %5671 = vmatprep.subr.bf16.mxu1 %v5818_v26 }
 0x361   :  { %5650 = vmatpush3.bf16.msra.mxu0 %v5819_v29 }
 0x362   :  { %5672 = vmatpush3.bf16.msra.mxu1 %v5820_v21  ;;  %5651 = vmatprep.subr.bf16.mxu0 %v5821_v30 }
 0x363   :  { %5673 = vmatprep.subr.bf16.mxu1 %v5822_v31 }
 0x365   :  { %5652 = vmatpush3.bf16.msra.mxu0 %v5823_v32 }
 0x366   :  { %5674 = vmatpush3.bf16.msra.mxu1 %v5824_v37 }
 0x3fb   :  { %v4083_v47 = vpop.f32.mrb[12].mxu0 }
 0x3fc   :  { %v5689_v49 = vadd.f32 %v4083_v47, %v995_v44  ;;  %v4255_v50 = vpop.f32.mrb[12].mxu1  ;;  %v4085_v4 = vpop.f32.mrb[13].mxu0 }
 0x3fd   :  { %v5693_v51 = vadd.f32 %v4255_v50, %v1003_v27  ;;  %v5690_v15 = vadd.f32 %v4085_v4, %v999_v41  ;;  %v4257_v52 = vpop.f32.mrb[13].mxu1  ;;  %v4087_v54 = vpop.f32.mrb[14].mxu0 }
 0x3fe   :  { %v5694_v39 = vadd.f32 %v4257_v52, %v1007_v42  ;;  %v5691_v17 = vadd.f32 %v4087_v54, %v995_v44  ;;  %v4259_v46 = vpop.f32.mrb[14].mxu1  ;;  %v4089_v25 = vpop.f32.mrb[15].mxu0  ;;  %v4268_v55 = vmax.f32 %v5689_v49, 0.0 }
 0x3ff   :  { %v5695_v53 = vadd.f32 %v4259_v46, %v1003_v27  ;;  %v5692_v56 = vadd.f32 %v4089_v25, %v999_v41  ;;  %v4261_v57 = vpop.f32.mrb[15].mxu1  ;;  %v4270_v58 = vmax.f32 %v5693_v51, 0.0  ;;  %v4269_v28 = vmax.f32 %v5690_v15, 0.0 }
 0x400   :  { %v4276_v48 = vmax.f32 %v5691_v17, 0.0  ;;  %v5696_v43 = vadd.f32 %v4261_v57, %v1007_v42  ;;  %v4271_v60 = vmax.f32 %v5694_v39, 0.0 }
 0x401   :  { %v4278_v16 = vmax.f32 %v5695_v53, 0.0  ;;  %v4277_v59 = vmax.f32 %v5692_v56, 0.0 }
 0x402   :  { %v4284_v61 = vpack.c.bf16 %v4276_v48, %v4268_v55  ;;  %v4279_v62 = vmax.f32 %v5696_v43, 0.0 }
 0x403   :  { %v4286_v63 = vpack.c.bf16 %v4278_v16, %v4270_v58  ;;  %v4285_v34 = vpack.c.bf16 %v4277_v59, %v4269_v28 }
 0x404   :  { %v4287_v36 = vpack.c.bf16 %v4279_v62, %v4271_v60 }
 0x405   :  { %4921 = vmatprep.mubr.bf16.mxu0 %v4285_v34 }
 0x406   :  { %4962 = vmatprep.mubr.bf16.mxu1 %v4287_v36  ;;  %4922 = vmatmul.mubr.bf16.vlgmr.msra.gmra.mrb[20].mxu0 %v4284_v61 }
 0x407   :  { %4963 = vmatmul.mubr.bf16.vlgmr.msra.gmra.mrb[20].mxu1 %v4286_v63 }
 0x41b   :  { %v5609_v38 = vpop.f32.mrb[16].mxu0 }
 0x41c   :  { %v5631_v40 = vpop.f32.mrb[16].mxu1  ;;  %v5610_v0 = vpop.f32.mrb[17].mxu0 }
 0x41d   :  { %v5611_v1 = vadd.f32 %v5610_v0, %v5609_v38  ;;  %v5632_v35 = vpop.f32.mrb[17].mxu1  ;;  %v5612_v19 = vpop.f32.mrb[18].mxu0 }
 0x41e   :  { %v5633_v2 = vadd.f32 %v5632_v35, %v5631_v40  ;;  %v5634_v3 = vpop.f32.mrb[18].mxu1  ;;  %v5613_v5 = vpop.f32.mrb[19].mxu0 }
 0x41f   :  { %v4842_v6 = vadd.f32 %v5611_v1, %v5528_v45  ;;  %v5614_v7 = vadd.f32 %v5613_v5, %v5612_v19  ;;  %v5635_v8 = vpop.f32.mrb[19].mxu1 }
 0x420   :  { %v5636_v9 = vadd.f32 %v5635_v8, %v5634_v3 }
 0x421   :  { %v4883_v12 = vadd.f32 %v5633_v2, %v4842_v6  ;;  %v4845_v13 = vadd.f32 %v5614_v7, %v5528_v45 }
 0x423   :  { %v4886_v33 = vadd.f32 %v5636_v9, %v4845_v13 }
 0x4d9   :  { %v5653_v10 = vpop.f32.mrb[20].mxu0 }
 0x4da   :  { %v5675_v11 = vpop.f32.mrb[20].mxu1  ;;  %v5654_v14 = vpop.f32.mrb[21].mxu0 }
 0x4db   :  { %v5655_v18 = vadd.f32 %v5654_v14, %v5653_v10  ;;  %v5676_v20 = vpop.f32.mrb[21].mxu1  ;;  %v5656_v22 = vpop.f32.mrb[22].mxu0 }
 0x4dc   :  { %v5677_v23 = vadd.f32 %v5676_v20, %v5675_v11  ;;  %v5678_v24 = vpop.f32.mrb[22].mxu1  ;;  %v5657_v26 = vpop.f32.mrb[23].mxu0 }
 0x4dd   :  { %v4924_v29 = vadd.f32 %v5655_v18, %v4883_v12  ;;  %v5658_v21 = vadd.f32 %v5657_v26, %v5656_v22  ;;  %v5679_v30 = vpop.f32.mrb[23].mxu1 }
 0x4de   :  { %v5680_v31 = vadd.f32 %v5679_v30, %v5678_v24 }
 0x4df   :  { %v4965_v32 = vadd.f32 %v5677_v23, %v4924_v29  ;;  %v4927_v37 = vadd.f32 %v5658_v21, %v4886_v33 }
 0x4e1   :  { %5825 = vtanh.f32 %v4965_v32  ;;  %v4968_v44 = vadd.f32 %v5680_v31, %v4927_v37 }
 0x4e3   :  { %5827 = vtanh.f32 %v4968_v44 }
 0x4eb   :  { %v5826_v27 = vpop.eup %5825 }
 0x4ec   :  { %4973 = vst [vmem:[#allocation14] sm:$0xff] %v5826_v27 }
 0x4ed   :  { %v5828_v41 = vpop.eup %5827 }
 0x4ee   :  { %4974 = vst [vmem:[#allocation14 + $0x8] sm:$0xff] %v5828_v41 }
 0x4ef   :  { %5994 = shalt.err (!%p5991_p4)
}
 0x4f0   :  { %s5995_s29 = scalar_lea.hbm %s6328_s7, 256 }
 0x4f1   :  { %p5996_p5 = scmp.ne.s32.totalorder %s6328_s7, %s5995_s29  ;;  %p5999_p6 = scmp.lt.u32.totalorder %s5995_s29, %s6328_s7 }
 0x4f3   :  { %p6001_p7 = pnand %p5999_p6, %p5996_p5 }
 0x4f5   :  { %6004 = shalt.err (!%p6001_p7)
}
 0x4f6   :  { %s6028_s18 = smov 128   ;;  %s6029_s19 = smov 8  }
 0x4f7   :  { %4986 = dma.vmem_to_hbm [thread:$0]  %s4981_s14, 256, %s6328_s7, [#allocation4], %s6028_s18, %s6028_s18, %s6029_s19  }
 0x4f8   :  { %6013 = dma.done.wait [#allocation4], 256  }
 0x4f9   :  { %6014 = vsyncadd [#allocation4], 4294967040 }
 0x4fa   :  { %4990 = vsyncpa [#allocation3], 1 }
 0x4fb   :  { %4991 = vsyncpa [#allocation6], 1 }
 0x4fc   :  { %4992 = vsyncpa [#allocation9], 1 }
 0x4fd   :  { %4993 = vsyncpa [#allocation12], 1 }
 0x4fe   :  { %4994 = vsyncpa [#allocation4], 1 }

</bundles_post_ra>
